<compile_context>
chip_gen: v7x
topology: tpu7x:2x2x1
jax: 0.10.0
libtpu: 0.0.40
codegen_flags: <defaults>
</compile_context>

<pallas_src>
import jax
import jax.numpy as jnp
import numpy as np
from jax.experimental import pallas as pl
from jax.experimental.pallas import tpu as pltpu


def _make_kernel(C, HB8, W, precision):
    W8 = W // 8

    def kernel(x_ref, g_ref, o_ref):
        # x_ref: (C, HB8, 8, W)    rows x[b, c, 8*(ib*HB8 + i) + r0, :]
        # g_ref: (W, W)            one-hot lane gather: G[w, c0*W8 + j] = (w == 8*j + c0)
        # o_ref: (C, 64, HB8, W8)  channel k = 32*(r0%2) + 16*(c0%2) + 4*(r0//2) + c0//2
        xb = x_ref[...].reshape(C * HB8 * 8, W)            # free: merge leading dims
        y = jnp.dot(xb, g_ref[...],
                    preferred_element_type=jnp.float32,
                    precision=precision)                   # ONE hoisted MXU matmul/step
        y = y.reshape(C, HB8, 8, W).astype(o_ref.dtype)    # free split + single cast
        for r0 in range(8):                                # row offset inside 8x8 cell
            yr = y[:, :, r0, :]                            # (C, HB8, W), static slice
            for c0 in range(8):                            # col offset inside 8x8 cell
                k = 32 * (r0 % 2) + 16 * (c0 % 2) + 4 * (r0 // 2) + (c0 // 2)
                o_ref[:, k, :, :] = yr[:, :, c0 * W8:(c0 + 1) * W8]

    return kernel


def _pick_hb8(n, c, h8, w, itemsize, budget_bytes=12 * 1024 * 1024):
    """Pick row-groups-of-8 per grid step.

    Accounts for double-buffered input/output blocks, the resident one-hot (x2 buffers),
    the f32 matmul temporary, and lane(128)/sublane(8) padding of the output tiles.
    Prefers the largest multiple-of-8 divisor of h8 that fits; never silently exceeds
    the budget by more than the minimal legal tile; guarantees >= 2 grid steps when
    n == 1 so both v7x TensorCores get work.
    """
    w8 = w // 8
    w_pad = -(-w // 128) * 128
    w8_pad = -(-w8 // 128) * 128
    g_rows_pad = -(-w // 8) * 8

    def working_set(hb8):
        hb8_pad = -(-hb8 // 8) * 8
        x_blk = 2 * c * hb8 * 8 * w_pad * itemsize          # double-buffered input
        o_blk = 2 * c * 64 * hb8_pad * w8_pad * itemsize    # double-buffered output
        g_buf = 2 * g_rows_pad * w_pad * itemsize           # resident one-hot
        y_tmp = c * hb8 * 8 * w_pad * (4 + itemsize)        # f32 result + cast copy
        return x_blk + o_blk + g_buf + y_tmp

    if h8 < 8:
        return h8                                           # tiny image: full plane
    cands = sorted({d for d in range(8, h8 + 1, 8) if h8 % d == 0} | {h8})
    fitting = [d for d in cands if working_set(d) <= budget_bytes]
    hb8 = max(fitting) if fitting else min(cands)           # fall back to smallest legal
    if n * (h8 // hb8) < 2:                                 # megacore: >= 2 grid steps
        smaller = [d for d in cands if d <= h8 // 2]
        if smaller:
            hb8 = max(smaller)
    return hb8


def model_forward(x):
    """pixel_unshuffle(2) followed by pixel_unshuffle(4) on an NCHW tensor."""
    n, c, h, w = x.shape
    assert h % 8 == 0 and w % 8 == 0, "H and W must be divisible by 8"
    if not jnp.issubdtype(x.dtype, jnp.floating):
        # TODO(synk): integer/bool inputs need a copy-only (non-MXU) gather path.
        raise NotImplementedError("pixel_unshuffle Pallas kernel supports float dtypes only")
    h8, w8 = h // 8, w // 8
    itemsize = jnp.dtype(x.dtype).itemsize

    hb8 = _pick_hb8(n, c, h8, w, itemsize)                  # row groups per grid step
    grid = (n, h8 // hb8)

    # One-hot lane-gather matrix, built once on the host (hoisted out of the kernel),
    # in the data's dtype (bf16 one-hot for bf16 data keeps VMEM/FLOP cost down).
    cols = jnp.arange(w)
    src = (cols % w8) * 8 + cols // w8          # column c0*w8 + j reads input lane 8*j + c0
    g = (cols[:, None] == src[None, :]).astype(x.dtype)

    # Free reshape: split H into (h8, 8) so the r0 rows arrive as their own axis.
    x5 = x.reshape(n, c, h8, 8, w)

    # f32 must keep full mantissas through the MXU "gather" (one-hot matmul).
    precision = jax.lax.Precision.HIGHEST if x.dtype == jnp.float32 else None

    kernel = _make_kernel(c, hb8, w, precision)
    out5 = pl.pallas_call(
        kernel,
        out_shape=jax.ShapeDtypeStruct((n, c, 64, h8, w8), x.dtype),
        grid=grid,
        in_specs=[
            pl.BlockSpec((None, c, hb8, 8, w), lambda b, ib: (b, 0, ib, 0, 0)),
            pl.BlockSpec((w, w), lambda b, ib: (0, 0)),     # constant block: DMA'd once
        ],
        out_specs=pl.BlockSpec((None, c, 64, hb8, w8), lambda b, ib: (b, 0, 0, ib, 0)),
        compiler_params=pltpu.CompilerParams(
            dimension_semantics=("parallel", "parallel"),
            vmem_limit_bytes=32 * 1024 * 1024),
        cost_estimate=pl.CostEstimate(
            flops=2 * n * c * h * w * w,
            transcendentals=0,
            bytes_accessed=2 * n * c * h * w * itemsize + w * w * itemsize),
    )(x5, g)

    # (n, c, 64, h8, w8) -> (n, c*64, h8, w8): contiguous, free reshape.
    return out5.reshape(n, c * 64, h8, w8)


def _ref_forward(x):
    """Pure-JAX reference reproducing the PyTorch module exactly."""
    def unshuffle(x, r):
        n, c, h, w = x.shape
        x = x.reshape(n, c, h // r, r, w // r, r)
        x = jnp.transpose(x, (0, 1, 3, 5, 2, 4))
        return x.reshape(n, c * r * r, h // r, w // r)
    return unshuffle(unshuffle(x, 2), 4)


if __name__ == "__main__":
    key = jax.random.PRNGKey(0)
    x = jax.random.normal(key, (2, 4, 16, 16), dtype=jnp.float32)

    out = jax.block_until_ready(model_forward(x))
    ref = _ref_forward(x)

    assert out.shape == (2, 4 * 64, 2, 2), out.shape
    np.testing.assert_allclose(np.asarray(out), np.asarray(ref), atol=1e-5, rtol=1e-5)
    print("KERNEL_OK")
</pallas_src>

<mosaic_0001>
module attributes {stable_mosaic.version = 11 : i64} {
  func.func @kernel(%arg0: i32, %arg1: i32, %arg2: memref<1x4x2x8x16xf32, #tpu.memory_space<vmem>>, %arg3: memref<16x16xf32, #tpu.memory_space<vmem>>, %arg4: memref<1x4x64x2x2xf32, #tpu.memory_space<vmem>>) attributes {dimension_semantics = [#tpu.dimension_semantics<parallel>, #tpu.dimension_semantics<parallel>], iteration_bounds = array<i64: 2, 1>, scalar_prefetch = 0 : i64, scratch_operands = 0 : i64, tpu.core_type = #tpu.core_type<tc>, window_params = [{transform_indices = @transform_0, window_bounds = array<i64: 1, 4, 2, 8, 16>}, {pipeline_mode = #tpu.pipeline_mode<synchronous>, transform_indices = @transform_1, window_bounds = array<i64: 16, 16>}, {transform_indices = @transform_2, window_bounds = array<i64: 1, 4, 64, 2, 2>}]} {
    %c0 = arith.constant 0 : index
    %c0_0 = arith.constant 0 : index
    %c0_1 = arith.constant 0 : index
    %c0_2 = arith.constant 0 : index
    %c0_3 = arith.constant 0 : index
    %0 = vector.load %arg2[%c0, %c0_0, %c0_1, %c0_2, %c0_3] : memref<1x4x2x8x16xf32, #tpu.memory_space<vmem>>, vector<1x4x2x8x16xf32>
    %1 = vector.shape_cast %0 : vector<1x4x2x8x16xf32> to vector<4x2x8x16xf32>
    %2 = vector.shape_cast %1 : vector<4x2x8x16xf32> to vector<64x16xf32>
    %c0_4 = arith.constant 0 : index
    %c0_5 = arith.constant 0 : index
    %3 = vector.load %arg3[%c0_4, %c0_5] : memref<16x16xf32, #tpu.memory_space<vmem>>, vector<16x16xf32>
    %cst = arith.constant dense<0.000000e+00> : vector<64x16xf32>
    %4 = tpu.matmul %2, %3, %cst {dimension_numbers = #tpu.dot_dimension_numbers<[1], [0], [0], [1], [0, 0, 1, 1], [], []>, precision = #tpu.contract_precision<fp32>} : vector<64x16xf32>, vector<16x16xf32>, vector<64x16xf32> -> vector<64x16xf32>
    %5 = vector.shape_cast %4 : vector<64x16xf32> to vector<4x2x8x16xf32>
    %6 = vector.extract_strided_slice %5 {offsets = [0, 0, 0, 0], sizes = [4, 2, 1, 16], strides = [1, 1, 1, 1]} : vector<4x2x8x16xf32> to vector<4x2x1x16xf32>
    %7 = vector.shape_cast %6 : vector<4x2x1x16xf32> to vector<4x2x16xf32>
    %8 = vector.extract_strided_slice %7 {offsets = [0, 0, 0], sizes = [4, 2, 2], strides = [1, 1, 1]} : vector<4x2x16xf32> to vector<4x2x2xf32>
    %c0_6 = arith.constant 0 : index
    %c0_7 = arith.constant 0 : index
    %c0_8 = arith.constant 0 : index
    %c0_9 = arith.constant 0 : index
    %c0_10 = arith.constant 0 : index
    %9 = vector.load %arg4[%c0_6, %c0_7, %c0_8, %c0_9, %c0_10] : memref<1x4x64x2x2xf32, #tpu.memory_space<vmem>>, vector<1x4x1x2x2xf32>
    %10 = vector.shape_cast %9 : vector<1x4x1x2x2xf32> to vector<4x2x2xf32>
    %11 = vector.shape_cast %8 : vector<4x2x2xf32> to vector<1x4x1x2x2xf32>
    tpu.vector_store %arg4[%c0_6, %c0_7, %c0_8, %c0_9, %c0_10], %11 {strides = array<i32>} : memref<1x4x64x2x2xf32, #tpu.memory_space<vmem>>, vector<1x4x1x2x2xf32>,
    %12 = vector.extract_strided_slice %7 {offsets = [0, 0, 2], sizes = [4, 2, 2], strides = [1, 1, 1]} : vector<4x2x16xf32> to vector<4x2x2xf32>
    %c0_11 = arith.constant 0 : index
    %c0_12 = arith.constant 0 : index
    %c16 = arith.constant 16 : index
    %c0_13 = arith.constant 0 : index
    %c0_14 = arith.constant 0 : index
    %13 = vector.load %arg4[%c0_11, %c0_12, %c16, %c0_13, %c0_14] : memref<1x4x64x2x2xf32, #tpu.memory_space<vmem>>, vector<1x4x1x2x2xf32>
    %14 = vector.shape_cast %13 : vector<1x4x1x2x2xf32> to vector<4x2x2xf32>
    %15 = vector.shape_cast %12 : vector<4x2x2xf32> to vector<1x4x1x2x2xf32>
    tpu.vector_store %arg4[%c0_11, %c0_12, %c16, %c0_13, %c0_14], %15 {strides = array<i32>} : memref<1x4x64x2x2xf32, #tpu.memory_space<vmem>>, vector<1x4x1x2x2xf32>,
    %16 = vector.extract_strided_slice %7 {offsets = [0, 0, 4], sizes = [4, 2, 2], strides = [1, 1, 1]} : vector<4x2x16xf32> to vector<4x2x2xf32>
    %c0_15 = arith.constant 0 : index
    %c0_16 = arith.constant 0 : index
    %c1 = arith.constant 1 : index
    %c0_17 = arith.constant 0 : index
    %c0_18 = arith.constant 0 : index
    %17 = vector.load %arg4[%c0_15, %c0_16, %c1, %c0_17, %c0_18] : memref<1x4x64x2x2xf32, #tpu.memory_space<vmem>>, vector<1x4x1x2x2xf32>
    %18 = vector.shape_cast %17 : vector<1x4x1x2x2xf32> to vector<4x2x2xf32>
    %19 = vector.shape_cast %16 : vector<4x2x2xf32> to vector<1x4x1x2x2xf32>
    tpu.vector_store %arg4[%c0_15, %c0_16, %c1, %c0_17, %c0_18], %19 {strides = array<i32>} : memref<1x4x64x2x2xf32, #tpu.memory_space<vmem>>, vector<1x4x1x2x2xf32>,
    %20 = vector.extract_strided_slice %7 {offsets = [0, 0, 6], sizes = [4, 2, 2], strides = [1, 1, 1]} : vector<4x2x16xf32> to vector<4x2x2xf32>
    %c0_19 = arith.constant 0 : index
    %c0_20 = arith.constant 0 : index
    %c17 = arith.constant 17 : index
    %c0_21 = arith.constant 0 : index
    %c0_22 = arith.constant 0 : index
    %21 = vector.load %arg4[%c0_19, %c0_20, %c17, %c0_21, %c0_22] : memref<1x4x64x2x2xf32, #tpu.memory_space<vmem>>, vector<1x4x1x2x2xf32>
    %22 = vector.shape_cast %21 : vector<1x4x1x2x2xf32> to vector<4x2x2xf32>
    %23 = vector.shape_cast %20 : vector<4x2x2xf32> to vector<1x4x1x2x2xf32>
    tpu.vector_store %arg4[%c0_19, %c0_20, %c17, %c0_21, %c0_22], %23 {strides = array<i32>} : memref<1x4x64x2x2xf32, #tpu.memory_space<vmem>>, vector<1x4x1x2x2xf32>,
    %24 = vector.extract_strided_slice %7 {offsets = [0, 0, 8], sizes = [4, 2, 2], strides = [1, 1, 1]} : vector<4x2x16xf32> to vector<4x2x2xf32>
    %c0_23 = arith.constant 0 : index
    %c0_24 = arith.constant 0 : index
    %c2 = arith.constant 2 : index
    %c0_25 = arith.constant 0 : index
    %c0_26 = arith.constant 0 : index
    %25 = vector.load %arg4[%c0_23, %c0_24, %c2, %c0_25, %c0_26] : memref<1x4x64x2x2xf32, #tpu.memory_space<vmem>>, vector<1x4x1x2x2xf32>
    %26 = vector.shape_cast %25 : vector<1x4x1x2x2xf32> to vector<4x2x2xf32>
    %27 = vector.shape_cast %24 : vector<4x2x2xf32> to vector<1x4x1x2x2xf32>
    tpu.vector_store %arg4[%c0_23, %c0_24, %c2, %c0_25, %c0_26], %27 {strides = array<i32>} : memref<1x4x64x2x2xf32, #tpu.memory_space<vmem>>, vector<1x4x1x2x2xf32>,
    %28 = vector.extract_strided_slice %7 {offsets = [0, 0, 10], sizes = [4, 2, 2], strides = [1, 1, 1]} : vector<4x2x16xf32> to vector<4x2x2xf32>
    %c0_27 = arith.constant 0 : index
    %c0_28 = arith.constant 0 : index
    %c18 = arith.constant 18 : index
    %c0_29 = arith.constant 0 : index
    %c0_30 = arith.constant 0 : index
    %29 = vector.load %arg4[%c0_27, %c0_28, %c18, %c0_29, %c0_30] : memref<1x4x64x2x2xf32, #tpu.memory_space<vmem>>, vector<1x4x1x2x2xf32>
    %30 = vector.shape_cast %29 : vector<1x4x1x2x2xf32> to vector<4x2x2xf32>
    %31 = vector.shape_cast %28 : vector<4x2x2xf32> to vector<1x4x1x2x2xf32>
    tpu.vector_store %arg4[%c0_27, %c0_28, %c18, %c0_29, %c0_30], %31 {strides = array<i32>} : memref<1x4x64x2x2xf32, #tpu.memory_space<vmem>>, vector<1x4x1x2x2xf32>,
    %32 = vector.extract_strided_slice %7 {offsets = [0, 0, 12], sizes = [4, 2, 2], strides = [1, 1, 1]} : vector<4x2x16xf32> to vector<4x2x2xf32>
    %c0_31 = arith.constant 0 : index
    %c0_32 = arith.constant 0 : index
    %c3 = arith.constant 3 : index
    %c0_33 = arith.constant 0 : index
    %c0_34 = arith.constant 0 : index
    %33 = vector.load %arg4[%c0_31, %c0_32, %c3, %c0_33, %c0_34] : memref<1x4x64x2x2xf32, #tpu.memory_space<vmem>>, vector<1x4x1x2x2xf32>
    %34 = vector.shape_cast %33 : vector<1x4x1x2x2xf32> to vector<4x2x2xf32>
    %35 = vector.shape_cast %32 : vector<4x2x2xf32> to vector<1x4x1x2x2xf32>
    tpu.vector_store %arg4[%c0_31, %c0_32, %c3, %c0_33, %c0_34], %35 {strides = array<i32>} : memref<1x4x64x2x2xf32, #tpu.memory_space<vmem>>, vector<1x4x1x2x2xf32>,
    %36 = vector.extract_strided_slice %7 {offsets = [0, 0, 14], sizes = [4, 2, 2], strides = [1, 1, 1]} : vector<4x2x16xf32> to vector<4x2x2xf32>
    %c0_35 = arith.constant 0 : index
    %c0_36 = arith.constant 0 : index
    %c19 = arith.constant 19 : index
    %c0_37 = arith.constant 0 : index
    %c0_38 = arith.constant 0 : index
    %37 = vector.load %arg4[%c0_35, %c0_36, %c19, %c0_37, %c0_38] : memref<1x4x64x2x2xf32, #tpu.memory_space<vmem>>, vector<1x4x1x2x2xf32>
    %38 = vector.shape_cast %37 : vector<1x4x1x2x2xf32> to vector<4x2x2xf32>
    %39 = vector.shape_cast %36 : vector<4x2x2xf32> to vector<1x4x1x2x2xf32>
    tpu.vector_store %arg4[%c0_35, %c0_36, %c19, %c0_37, %c0_38], %39 {strides = array<i32>} : memref<1x4x64x2x2xf32, #tpu.memory_space<vmem>>, vector<1x4x1x2x2xf32>,
    %40 = vector.extract_strided_slice %5 {offsets = [0, 0, 1, 0], sizes = [4, 2, 1, 16], strides = [1, 1, 1, 1]} : vector<4x2x8x16xf32> to vector<4x2x1x16xf32>
    %41 = vector.shape_cast %40 : vector<4x2x1x16xf32> to vector<4x2x16xf32>
    %42 = vector.extract_strided_slice %41 {offsets = [0, 0, 0], sizes = [4, 2, 2], strides = [1, 1, 1]} : vector<4x2x16xf32> to vector<4x2x2xf32>
    %c0_39 = arith.constant 0 : index
    %c0_40 = arith.constant 0 : index
    %c32 = arith.constant 32 : index
    %c0_41 = arith.constant 0 : index
    %c0_42 = arith.constant 0 : index
    %43 = vector.load %arg4[%c0_39, %c0_40, %c32, %c0_41, %c0_42] : memref<1x4x64x2x2xf32, #tpu.memory_space<vmem>>, vector<1x4x1x2x2xf32>
    %44 = vector.shape_cast %43 : vector<1x4x1x2x2xf32> to vector<4x2x2xf32>
    %45 = vector.shape_cast %42 : vector<4x2x2xf32> to vector<1x4x1x2x2xf32>
    tpu.vector_store %arg4[%c0_39, %c0_40, %c32, %c0_41, %c0_42], %45 {strides = array<i32>} : memref<1x4x64x2x2xf32, #tpu.memory_space<vmem>>, vector<1x4x1x2x2xf32>,
    %46 = vector.extract_strided_slice %41 {offsets = [0, 0, 2], sizes = [4, 2, 2], strides = [1, 1, 1]} : vector<4x2x16xf32> to vector<4x2x2xf32>
    %c0_43 = arith.constant 0 : index
    %c0_44 = arith.constant 0 : index
    %c48 = arith.constant 48 : index
    %c0_45 = arith.constant 0 : index
    %c0_46 = arith.constant 0 : index
    %47 = vector.load %arg4[%c0_43, %c0_44, %c48, %c0_45, %c0_46] : memref<1x4x64x2x2xf32, #tpu.memory_space<vmem>>, vector<1x4x1x2x2xf32>
    %48 = vector.shape_cast %47 : vector<1x4x1x2x2xf32> to vector<4x2x2xf32>
    %49 = vector.shape_cast %46 : vector<4x2x2xf32> to vector<1x4x1x2x2xf32>
    tpu.vector_store %arg4[%c0_43, %c0_44, %c48, %c0_45, %c0_46], %49 {strides = array<i32>} : memref<1x4x64x2x2xf32, #tpu.memory_space<vmem>>, vector<1x4x1x2x2xf32>,
    %50 = vector.extract_strided_slice %41 {offsets = [0, 0, 4], sizes = [4, 2, 2], strides = [1, 1, 1]} : vector<4x2x16xf32> to vector<4x2x2xf32>
    %c0_47 = arith.constant 0 : index
    %c0_48 = arith.constant 0 : index
    %c33 = arith.constant 33 : index
    %c0_49 = arith.constant 0 : index
    %c0_50 = arith.constant 0 : index
    %51 = vector.load %arg4[%c0_47, %c0_48, %c33, %c0_49, %c0_50] : memref<1x4x64x2x2xf32, #tpu.memory_space<vmem>>, vector<1x4x1x2x2xf32>
    %52 = vector.shape_cast %51 : vector<1x4x1x2x2xf32> to vector<4x2x2xf32>
    %53 = vector.shape_cast %50 : vector<4x2x2xf32> to vector<1x4x1x2x2xf32>
    tpu.vector_store %arg4[%c0_47, %c0_48, %c33, %c0_49, %c0_50], %53 {strides = array<i32>} : memref<1x4x64x2x2xf32, #tpu.memory_space<vmem>>, vector<1x4x1x2x2xf32>,
    %54 = vector.extract_strided_slice %41 {offsets = [0, 0, 6], sizes = [4, 2, 2], strides = [1, 1, 1]} : vector<4x2x16xf32> to vector<4x2x2xf32>
    %c0_51 = arith.constant 0 : index
    %c0_52 = arith.constant 0 : index
    %c49 = arith.constant 49 : index
    %c0_53 = arith.constant 0 : index
    %c0_54 = arith.constant 0 : index
    %55 = vector.load %arg4[%c0_51, %c0_52, %c49, %c0_53, %c0_54] : memref<1x4x64x2x2xf32, #tpu.memory_space<vmem>>, vector<1x4x1x2x2xf32>
    %56 = vector.shape_cast %55 : vector<1x4x1x2x2xf32> to vector<4x2x2xf32>
    %57 = vector.shape_cast %54 : vector<4x2x2xf32> to vector<1x4x1x2x2xf32>
    tpu.vector_store %arg4[%c0_51, %c0_52, %c49, %c0_53, %c0_54], %57 {strides = array<i32>} : memref<1x4x64x2x2xf32, #tpu.memory_space<vmem>>, vector<1x4x1x2x2xf32>,
    %58 = vector.extract_strided_slice %41 {offsets = [0, 0, 8], sizes = [4, 2, 2], strides = [1, 1, 1]} : vector<4x2x16xf32> to vector<4x2x2xf32>
    %c0_55 = arith.constant 0 : index
    %c0_56 = arith.constant 0 : index
    %c34 = arith.constant 34 : index
    %c0_57 = arith.constant 0 : index
    %c0_58 = arith.constant 0 : index
    %59 = vector.load %arg4[%c0_55, %c0_56, %c34, %c0_57, %c0_58] : memref<1x4x64x2x2xf32, #tpu.memory_space<vmem>>, vector<1x4x1x2x2xf32>
    %60 = vector.shape_cast %59 : vector<1x4x1x2x2xf32> to vector<4x2x2xf32>
    %61 = vector.shape_cast %58 : vector<4x2x2xf32> to vector<1x4x1x2x2xf32>
    tpu.vector_store %arg4[%c0_55, %c0_56, %c34, %c0_57, %c0_58], %61 {strides = array<i32>} : memref<1x4x64x2x2xf32, #tpu.memory_space<vmem>>, vector<1x4x1x2x2xf32>,
    %62 = vector.extract_strided_slice %41 {offsets = [0, 0, 10], sizes = [4, 2, 2], strides = [1, 1, 1]} : vector<4x2x16xf32> to vector<4x2x2xf32>
    %c0_59 = arith.constant 0 : index
    %c0_60 = arith.constant 0 : index
    %c50 = arith.constant 50 : index
    %c0_61 = arith.constant 0 : index
    %c0_62 = arith.constant 0 : index
    %63 = vector.load %arg4[%c0_59, %c0_60, %c50, %c0_61, %c0_62] : memref<1x4x64x2x2xf32, #tpu.memory_space<vmem>>, vector<1x4x1x2x2xf32>
    %64 = vector.shape_cast %63 : vector<1x4x1x2x2xf32> to vector<4x2x2xf32>
    %65 = vector.shape_cast %62 : vector<4x2x2xf32> to vector<1x4x1x2x2xf32>
    tpu.vector_store %arg4[%c0_59, %c0_60, %c50, %c0_61, %c0_62], %65 {strides = array<i32>} : memref<1x4x64x2x2xf32, #tpu.memory_space<vmem>>, vector<1x4x1x2x2xf32>,
    %66 = vector.extract_strided_slice %41 {offsets = [0, 0, 12], sizes = [4, 2, 2], strides = [1, 1, 1]} : vector<4x2x16xf32> to vector<4x2x2xf32>
    %c0_63 = arith.constant 0 : index
    %c0_64 = arith.constant 0 : index
    %c35 = arith.constant 35 : index
    %c0_65 = arith.constant 0 : index
    %c0_66 = arith.constant 0 : index
    %67 = vector.load %arg4[%c0_63, %c0_64, %c35, %c0_65, %c0_66] : memref<1x4x64x2x2xf32, #tpu.memory_space<vmem>>, vector<1x4x1x2x2xf32>
    %68 = vector.shape_cast %67 : vector<1x4x1x2x2xf32> to vector<4x2x2xf32>
    %69 = vector.shape_cast %66 : vector<4x2x2xf32> to vector<1x4x1x2x2xf32>
    tpu.vector_store %arg4[%c0_63, %c0_64, %c35, %c0_65, %c0_66], %69 {strides = array<i32>} : memref<1x4x64x2x2xf32, #tpu.memory_space<vmem>>, vector<1x4x1x2x2xf32>,
    %70 = vector.extract_strided_slice %41 {offsets = [0, 0, 14], sizes = [4, 2, 2], strides = [1, 1, 1]} : vector<4x2x16xf32> to vector<4x2x2xf32>
    %c0_67 = arith.constant 0 : index
    %c0_68 = arith.constant 0 : index
    %c51 = arith.constant 51 : index
    %c0_69 = arith.constant 0 : index
    %c0_70 = arith.constant 0 : index
    %71 = vector.load %arg4[%c0_67, %c0_68, %c51, %c0_69, %c0_70] : memref<1x4x64x2x2xf32, #tpu.memory_space<vmem>>, vector<1x4x1x2x2xf32>
    %72 = vector.shape_cast %71 : vector<1x4x1x2x2xf32> to vector<4x2x2xf32>
    %73 = vector.shape_cast %70 : vector<4x2x2xf32> to vector<1x4x1x2x2xf32>
    tpu.vector_store %arg4[%c0_67, %c0_68, %c51, %c0_69, %c0_70], %73 {strides = array<i32>} : memref<1x4x64x2x2xf32, #tpu.memory_space<vmem>>, vector<1x4x1x2x2xf32>,
    %74 = vector.extract_strided_slice %5 {offsets = [0, 0, 2, 0], sizes = [4, 2, 1, 16], strides = [1, 1, 1, 1]} : vector<4x2x8x16xf32> to vector<4x2x1x16xf32>
    %75 = vector.shape_cast %74 : vector<4x2x1x16xf32> to vector<4x2x16xf32>
    %76 = vector.extract_strided_slice %75 {offsets = [0, 0, 0], sizes = [4, 2, 2], strides = [1, 1, 1]} : vector<4x2x16xf32> to vector<4x2x2xf32>
    %c0_71 = arith.constant 0 : index
    %c0_72 = arith.constant 0 : index
    %c4 = arith.constant 4 : index
    %c0_73 = arith.constant 0 : index
    %c0_74 = arith.constant 0 : index
    %77 = vector.load %arg4[%c0_71, %c0_72, %c4, %c0_73, %c0_74] : memref<1x4x64x2x2xf32, #tpu.memory_space<vmem>>, vector<1x4x1x2x2xf32>
    %78 = vector.shape_cast %77 : vector<1x4x1x2x2xf32> to vector<4x2x2xf32>
    %79 = vector.shape_cast %76 : vector<4x2x2xf32> to vector<1x4x1x2x2xf32>
    tpu.vector_store %arg4[%c0_71, %c0_72, %c4, %c0_73, %c0_74], %79 {strides = array<i32>} : memref<1x4x64x2x2xf32, #tpu.memory_space<vmem>>, vector<1x4x1x2x2xf32>,
    %80 = vector.extract_strided_slice %75 {offsets = [0, 0, 2], sizes = [4, 2, 2], strides = [1, 1, 1]} : vector<4x2x16xf32> to vector<4x2x2xf32>
    %c0_75 = arith.constant 0 : index
    %c0_76 = arith.constant 0 : index
    %c20 = arith.constant 20 : index
    %c0_77 = arith.constant 0 : index
    %c0_78 = arith.constant 0 : index
    %81 = vector.load %arg4[%c0_75, %c0_76, %c20, %c0_77, %c0_78] : memref<1x4x64x2x2xf32, #tpu.memory_space<vmem>>, vector<1x4x1x2x2xf32>
    %82 = vector.shape_cast %81 : vector<1x4x1x2x2xf32> to vector<4x2x2xf32>
    %83 = vector.shape_cast %80 : vector<4x2x2xf32> to vector<1x4x1x2x2xf32>
    tpu.vector_store %arg4[%c0_75, %c0_76, %c20, %c0_77, %c0_78], %83 {strides = array<i32>} : memref<1x4x64x2x2xf32, #tpu.memory_space<vmem>>, vector<1x4x1x2x2xf32>,
    %84 = vector.extract_strided_slice %75 {offsets = [0, 0, 4], sizes = [4, 2, 2], strides = [1, 1, 1]} : vector<4x2x16xf32> to vector<4x2x2xf32>
    %c0_79 = arith.constant 0 : index
    %c0_80 = arith.constant 0 : index
    %c5 = arith.constant 5 : index
    %c0_81 = arith.constant 0 : index
    %c0_82 = arith.constant 0 : index
    %85 = vector.load %arg4[%c0_79, %c0_80, %c5, %c0_81, %c0_82] : memref<1x4x64x2x2xf32, #tpu.memory_space<vmem>>, vector<1x4x1x2x2xf32>
    %86 = vector.shape_cast %85 : vector<1x4x1x2x2xf32> to vector<4x2x2xf32>
    %87 = vector.shape_cast %84 : vector<4x2x2xf32> to vector<1x4x1x2x2xf32>
    tpu.vector_store %arg4[%c0_79, %c0_80, %c5, %c0_81, %c0_82], %87 {strides = array<i32>} : memref<1x4x64x2x2xf32, #tpu.memory_space<vmem>>, vector<1x4x1x2x2xf32>,
    %88 = vector.extract_strided_slice %75 {offsets = [0, 0, 6], sizes = [4, 2, 2], strides = [1, 1, 1]} : vector<4x2x16xf32> to vector<4x2x2xf32>
    %c0_83 = arith.constant 0 : index
    %c0_84 = arith.constant 0 : index
    %c21 = arith.constant 21 : index
    %c0_85 = arith.constant 0 : index
    %c0_86 = arith.constant 0 : index
    %89 = vector.load %arg4[%c0_83, %c0_84, %c21, %c0_85, %c0_86] : memref<1x4x64x2x2xf32, #tpu.memory_space<vmem>>, vector<1x4x1x2x2xf32>
    %90 = vector.shape_cast %89 : vector<1x4x1x2x2xf32> to vector<4x2x2xf32>
    %91 = vector.shape_cast %88 : vector<4x2x2xf32> to vector<1x4x1x2x2xf32>
    tpu.vector_store %arg4[%c0_83, %c0_84, %c21, %c0_85, %c0_86], %91 {strides = array<i32>} : memref<1x4x64x2x2xf32, #tpu.memory_space<vmem>>, vector<1x4x1x2x2xf32>,
    %92 = vector.extract_strided_slice %75 {offsets = [0, 0, 8], sizes = [4, 2, 2], strides = [1, 1, 1]} : vector<4x2x16xf32> to vector<4x2x2xf32>
    %c0_87 = arith.constant 0 : index
    %c0_88 = arith.constant 0 : index
    %c6 = arith.constant 6 : index
    %c0_89 = arith.constant 0 : index
    %c0_90 = arith.constant 0 : index
    %93 = vector.load %arg4[%c0_87, %c0_88, %c6, %c0_89, %c0_90] : memref<1x4x64x2x2xf32, #tpu.memory_space<vmem>>, vector<1x4x1x2x2xf32>
    %94 = vector.shape_cast %93 : vector<1x4x1x2x2xf32> to vector<4x2x2xf32>
    %95 = vector.shape_cast %92 : vector<4x2x2xf32> to vector<1x4x1x2x2xf32>
    tpu.vector_store %arg4[%c0_87, %c0_88, %c6, %c0_89, %c0_90], %95 {strides = array<i32>} : memref<1x4x64x2x2xf32, #tpu.memory_space<vmem>>, vector<1x4x1x2x2xf32>,
    %96 = vector.extract_strided_slice %75 {offsets = [0, 0, 10], sizes = [4, 2, 2], strides = [1, 1, 1]} : vector<4x2x16xf32> to vector<4x2x2xf32>
    %c0_91 = arith.constant 0 : index
    %c0_92 = arith.constant 0 : index
    %c22 = arith.constant 22 : index
    %c0_93 = arith.constant 0 : index
    %c0_94 = arith.constant 0 : index
    %97 = vector.load %arg4[%c0_91, %c0_92, %c22, %c0_93, %c0_94] : memref<1x4x64x2x2xf32, #tpu.memory_space<vmem>>, vector<1x4x1x2x2xf32>
    %98 = vector.shape_cast %97 : vector<1x4x1x2x2xf32> to vector<4x2x2xf32>
    %99 = vector.shape_cast %96 : vector<4x2x2xf32> to vector<1x4x1x2x2xf32>
    tpu.vector_store %arg4[%c0_91, %c0_92, %c22, %c0_93, %c0_94], %99 {strides = array<i32>} : memref<1x4x64x2x2xf32, #tpu.memory_space<vmem>>, vector<1x4x1x2x2xf32>,
    %100 = vector.extract_strided_slice %75 {offsets = [0, 0, 12], sizes = [4, 2, 2], strides = [1, 1, 1]} : vector<4x2x16xf32> to vector<4x2x2xf32>
    %c0_95 = arith.constant 0 : index
    %c0_96 = arith.constant 0 : index
    %c7 = arith.constant 7 : index
    %c0_97 = arith.constant 0 : index
    %c0_98 = arith.constant 0 : index
    %101 = vector.load %arg4[%c0_95, %c0_96, %c7, %c0_97, %c0_98] : memref<1x4x64x2x2xf32, #tpu.memory_space<vmem>>, vector<1x4x1x2x2xf32>
    %102 = vector.shape_cast %101 : vector<1x4x1x2x2xf32> to vector<4x2x2xf32>
    %103 = vector.shape_cast %100 : vector<4x2x2xf32> to vector<1x4x1x2x2xf32>
    tpu.vector_store %arg4[%c0_95, %c0_96, %c7, %c0_97, %c0_98], %103 {strides = array<i32>} : memref<1x4x64x2x2xf32, #tpu.memory_space<vmem>>, vector<1x4x1x2x2xf32>,
    %104 = vector.extract_strided_slice %75 {offsets = [0, 0, 14], sizes = [4, 2, 2], strides = [1, 1, 1]} : vector<4x2x16xf32> to vector<4x2x2xf32>
    %c0_99 = arith.constant 0 : index
    %c0_100 = arith.constant 0 : index
    %c23 = arith.constant 23 : index
    %c0_101 = arith.constant 0 : index
    %c0_102 = arith.constant 0 : index
    %105 = vector.load %arg4[%c0_99, %c0_100, %c23, %c0_101, %c0_102] : memref<1x4x64x2x2xf32, #tpu.memory_space<vmem>>, vector<1x4x1x2x2xf32>
    %106 = vector.shape_cast %105 : vector<1x4x1x2x2xf32> to vector<4x2x2xf32>
    %107 = vector.shape_cast %104 : vector<4x2x2xf32> to vector<1x4x1x2x2xf32>
    tpu.vector_store %arg4[%c0_99, %c0_100, %c23, %c0_101, %c0_102], %107 {strides = array<i32>} : memref<1x4x64x2x2xf32, #tpu.memory_space<vmem>>, vector<1x4x1x2x2xf32>,
    %108 = vector.extract_strided_slice %5 {offsets = [0, 0, 3, 0], sizes = [4, 2, 1, 16], strides = [1, 1, 1, 1]} : vector<4x2x8x16xf32> to vector<4x2x1x16xf32>
    %109 = vector.shape_cast %108 : vector<4x2x1x16xf32> to vector<4x2x16xf32>
    %110 = vector.extract_strided_slice %109 {offsets = [0, 0, 0], sizes = [4, 2, 2], strides = [1, 1, 1]} : vector<4x2x16xf32> to vector<4x2x2xf32>
    %c0_103 = arith.constant 0 : index
    %c0_104 = arith.constant 0 : index
    %c36 = arith.constant 36 : index
    %c0_105 = arith.constant 0 : index
    %c0_106 = arith.constant 0 : index
    %111 = vector.load %arg4[%c0_103, %c0_104, %c36, %c0_105, %c0_106] : memref<1x4x64x2x2xf32, #tpu.memory_space<vmem>>, vector<1x4x1x2x2xf32>
    %112 = vector.shape_cast %111 : vector<1x4x1x2x2xf32> to vector<4x2x2xf32>
    %113 = vector.shape_cast %110 : vector<4x2x2xf32> to vector<1x4x1x2x2xf32>
    tpu.vector_store %arg4[%c0_103, %c0_104, %c36, %c0_105, %c0_106], %113 {strides = array<i32>} : memref<1x4x64x2x2xf32, #tpu.memory_space<vmem>>, vector<1x4x1x2x2xf32>,
    %114 = vector.extract_strided_slice %109 {offsets = [0, 0, 2], sizes = [4, 2, 2], strides = [1, 1, 1]} : vector<4x2x16xf32> to vector<4x2x2xf32>
    %c0_107 = arith.constant 0 : index
    %c0_108 = arith.constant 0 : index
    %c52 = arith.constant 52 : index
    %c0_109 = arith.constant 0 : index
    %c0_110 = arith.constant 0 : index
    %115 = vector.load %arg4[%c0_107, %c0_108, %c52, %c0_109, %c0_110] : memref<1x4x64x2x2xf32, #tpu.memory_space<vmem>>, vector<1x4x1x2x2xf32>
    %116 = vector.shape_cast %115 : vector<1x4x1x2x2xf32> to vector<4x2x2xf32>
    %117 = vector.shape_cast %114 : vector<4x2x2xf32> to vector<1x4x1x2x2xf32>
    tpu.vector_store %arg4[%c0_107, %c0_108, %c52, %c0_109, %c0_110], %117 {strides = array<i32>} : memref<1x4x64x2x2xf32, #tpu.memory_space<vmem>>, vector<1x4x1x2x2xf32>,
    %118 = vector.extract_strided_slice %109 {offsets = [0, 0, 4], sizes = [4, 2, 2], strides = [1, 1, 1]} : vector<4x2x16xf32> to vector<4x2x2xf32>
    %c0_111 = arith.constant 0 : index
    %c0_112 = arith.constant 0 : index
    %c37 = arith.constant 37 : index
    %c0_113 = arith.constant 0 : index
    %c0_114 = arith.constant 0 : index
    %119 = vector.load %arg4[%c0_111, %c0_112, %c37, %c0_113, %c0_114] : memref<1x4x64x2x2xf32, #tpu.memory_space<vmem>>, vector<1x4x1x2x2xf32>
    %120 = vector.shape_cast %119 : vector<1x4x1x2x2xf32> to vector<4x2x2xf32>
    %121 = vector.shape_cast %118 : vector<4x2x2xf32> to vector<1x4x1x2x2xf32>
    tpu.vector_store %arg4[%c0_111, %c0_112, %c37, %c0_113, %c0_114], %121 {strides = array<i32>} : memref<1x4x64x2x2xf32, #tpu.memory_space<vmem>>, vector<1x4x1x2x2xf32>,
    %122 = vector.extract_strided_slice %109 {offsets = [0, 0, 6], sizes = [4, 2, 2], strides = [1, 1, 1]} : vector<4x2x16xf32> to vector<4x2x2xf32>
    %c0_115 = arith.constant 0 : index
    %c0_116 = arith.constant 0 : index
    %c53 = arith.constant 53 : index
    %c0_117 = arith.constant 0 : index
    %c0_118 = arith.constant 0 : index
    %123 = vector.load %arg4[%c0_115, %c0_116, %c53, %c0_117, %c0_118] : memref<1x4x64x2x2xf32, #tpu.memory_space<vmem>>, vector<1x4x1x2x2xf32>
    %124 = vector.shape_cast %123 : vector<1x4x1x2x2xf32> to vector<4x2x2xf32>
    %125 = vector.shape_cast %122 : vector<4x2x2xf32> to vector<1x4x1x2x2xf32>
    tpu.vector_store %arg4[%c0_115, %c0_116, %c53, %c0_117, %c0_118], %125 {strides = array<i32>} : memref<1x4x64x2x2xf32, #tpu.memory_space<vmem>>, vector<1x4x1x2x2xf32>,
    %126 = vector.extract_strided_slice %109 {offsets = [0, 0, 8], sizes = [4, 2, 2], strides = [1, 1, 1]} : vector<4x2x16xf32> to vector<4x2x2xf32>
    %c0_119 = arith.constant 0 : index
    %c0_120 = arith.constant 0 : index
    %c38 = arith.constant 38 : index
    %c0_121 = arith.constant 0 : index
    %c0_122 = arith.constant 0 : index
    %127 = vector.load %arg4[%c0_119, %c0_120, %c38, %c0_121, %c0_122] : memref<1x4x64x2x2xf32, #tpu.memory_space<vmem>>, vector<1x4x1x2x2xf32>
    %128 = vector.shape_cast %127 : vector<1x4x1x2x2xf32> to vector<4x2x2xf32>
    %129 = vector.shape_cast %126 : vector<4x2x2xf32> to vector<1x4x1x2x2xf32>
    tpu.vector_store %arg4[%c0_119, %c0_120, %c38, %c0_121, %c0_122], %129 {strides = array<i32>} : memref<1x4x64x2x2xf32, #tpu.memory_space<vmem>>, vector<1x4x1x2x2xf32>,
    %130 = vector.extract_strided_slice %109 {offsets = [0, 0, 10], sizes = [4, 2, 2], strides = [1, 1, 1]} : vector<4x2x16xf32> to vector<4x2x2xf32>
    %c0_123 = arith.constant 0 : index
    %c0_124 = arith.constant 0 : index
    %c54 = arith.constant 54 : index
    %c0_125 = arith.constant 0 : index
    %c0_126 = arith.constant 0 : index
    %131 = vector.load %arg4[%c0_123, %c0_124, %c54, %c0_125, %c0_126] : memref<1x4x64x2x2xf32, #tpu.memory_space<vmem>>, vector<1x4x1x2x2xf32>
    %132 = vector.shape_cast %131 : vector<1x4x1x2x2xf32> to vector<4x2x2xf32>
    %133 = vector.shape_cast %130 : vector<4x2x2xf32> to vector<1x4x1x2x2xf32>
    tpu.vector_store %arg4[%c0_123, %c0_124, %c54, %c0_125, %c0_126], %133 {strides = array<i32>} : memref<1x4x64x2x2xf32, #tpu.memory_space<vmem>>, vector<1x4x1x2x2xf32>,
    %134 = vector.extract_strided_slice %109 {offsets = [0, 0, 12], sizes = [4, 2, 2], strides = [1, 1, 1]} : vector<4x2x16xf32> to vector<4x2x2xf32>
    %c0_127 = arith.constant 0 : index
    %c0_128 = arith.constant 0 : index
    %c39 = arith.constant 39 : index
    %c0_129 = arith.constant 0 : index
    %c0_130 = arith.constant 0 : index
    %135 = vector.load %arg4[%c0_127, %c0_128, %c39, %c0_129, %c0_130] : memref<1x4x64x2x2xf32, #tpu.memory_space<vmem>>, vector<1x4x1x2x2xf32>
    %136 = vector.shape_cast %135 : vector<1x4x1x2x2xf32> to vector<4x2x2xf32>
    %137 = vector.shape_cast %134 : vector<4x2x2xf32> to vector<1x4x1x2x2xf32>
    tpu.vector_store %arg4[%c0_127, %c0_128, %c39, %c0_129, %c0_130], %137 {strides = array<i32>} : memref<1x4x64x2x2xf32, #tpu.memory_space<vmem>>, vector<1x4x1x2x2xf32>,
    %138 = vector.extract_strided_slice %109 {offsets = [0, 0, 14], sizes = [4, 2, 2], strides = [1, 1, 1]} : vector<4x2x16xf32> to vector<4x2x2xf32>
    %c0_131 = arith.constant 0 : index
    %c0_132 = arith.constant 0 : index
    %c55 = arith.constant 55 : index
    %c0_133 = arith.constant 0 : index
    %c0_134 = arith.constant 0 : index
    %139 = vector.load %arg4[%c0_131, %c0_132, %c55, %c0_133, %c0_134] : memref<1x4x64x2x2xf32, #tpu.memory_space<vmem>>, vector<1x4x1x2x2xf32>
    %140 = vector.shape_cast %139 : vector<1x4x1x2x2xf32> to vector<4x2x2xf32>
    %141 = vector.shape_cast %138 : vector<4x2x2xf32> to vector<1x4x1x2x2xf32>
    tpu.vector_store %arg4[%c0_131, %c0_132, %c55, %c0_133, %c0_134], %141 {strides = array<i32>} : memref<1x4x64x2x2xf32, #tpu.memory_space<vmem>>, vector<1x4x1x2x2xf32>,
    %142 = vector.extract_strided_slice %5 {offsets = [0, 0, 4, 0], sizes = [4, 2, 1, 16], strides = [1, 1, 1, 1]} : vector<4x2x8x16xf32> to vector<4x2x1x16xf32>
    %143 = vector.shape_cast %142 : vector<4x2x1x16xf32> to vector<4x2x16xf32>
    %144 = vector.extract_strided_slice %143 {offsets = [0, 0, 0], sizes = [4, 2, 2], strides = [1, 1, 1]} : vector<4x2x16xf32> to vector<4x2x2xf32>
    %c0_135 = arith.constant 0 : index
    %c0_136 = arith.constant 0 : index
    %c8 = arith.constant 8 : index
    %c0_137 = arith.constant 0 : index
    %c0_138 = arith.constant 0 : index
    %145 = vector.load %arg4[%c0_135, %c0_136, %c8, %c0_137, %c0_138] : memref<1x4x64x2x2xf32, #tpu.memory_space<vmem>>, vector<1x4x1x2x2xf32>
    %146 = vector.shape_cast %145 : vector<1x4x1x2x2xf32> to vector<4x2x2xf32>
    %147 = vector.shape_cast %144 : vector<4x2x2xf32> to vector<1x4x1x2x2xf32>
    tpu.vector_store %arg4[%c0_135, %c0_136, %c8, %c0_137, %c0_138], %147 {strides = array<i32>} : memref<1x4x64x2x2xf32, #tpu.memory_space<vmem>>, vector<1x4x1x2x2xf32>,
    %148 = vector.extract_strided_slice %143 {offsets = [0, 0, 2], sizes = [4, 2, 2], strides = [1, 1, 1]} : vector<4x2x16xf32> to vector<4x2x2xf32>
    %c0_139 = arith.constant 0 : index
    %c0_140 = arith.constant 0 : index
    %c24 = arith.constant 24 : index
    %c0_141 = arith.constant 0 : index
    %c0_142 = arith.constant 0 : index
    %149 = vector.load %arg4[%c0_139, %c0_140, %c24, %c0_141, %c0_142] : memref<1x4x64x2x2xf32, #tpu.memory_space<vmem>>, vector<1x4x1x2x2xf32>
    %150 = vector.shape_cast %149 : vector<1x4x1x2x2xf32> to vector<4x2x2xf32>
    %151 = vector.shape_cast %148 : vector<4x2x2xf32> to vector<1x4x1x2x2xf32>
    tpu.vector_store %arg4[%c0_139, %c0_140, %c24, %c0_141, %c0_142], %151 {strides = array<i32>} : memref<1x4x64x2x2xf32, #tpu.memory_space<vmem>>, vector<1x4x1x2x2xf32>,
    %152 = vector.extract_strided_slice %143 {offsets = [0, 0, 4], sizes = [4, 2, 2], strides = [1, 1, 1]} : vector<4x2x16xf32> to vector<4x2x2xf32>
    %c0_143 = arith.constant 0 : index
    %c0_144 = arith.constant 0 : index
    %c9 = arith.constant 9 : index
    %c0_145 = arith.constant 0 : index
    %c0_146 = arith.constant 0 : index
    %153 = vector.load %arg4[%c0_143, %c0_144, %c9, %c0_145, %c0_146] : memref<1x4x64x2x2xf32, #tpu.memory_space<vmem>>, vector<1x4x1x2x2xf32>
    %154 = vector.shape_cast %153 : vector<1x4x1x2x2xf32> to vector<4x2x2xf32>
    %155 = vector.shape_cast %152 : vector<4x2x2xf32> to vector<1x4x1x2x2xf32>
    tpu.vector_store %arg4[%c0_143, %c0_144, %c9, %c0_145, %c0_146], %155 {strides = array<i32>} : memref<1x4x64x2x2xf32, #tpu.memory_space<vmem>>, vector<1x4x1x2x2xf32>,
    %156 = vector.extract_strided_slice %143 {offsets = [0, 0, 6], sizes = [4, 2, 2], strides = [1, 1, 1]} : vector<4x2x16xf32> to vector<4x2x2xf32>
    %c0_147 = arith.constant 0 : index
    %c0_148 = arith.constant 0 : index
    %c25 = arith.constant 25 : index
    %c0_149 = arith.constant 0 : index
    %c0_150 = arith.constant 0 : index
    %157 = vector.load %arg4[%c0_147, %c0_148, %c25, %c0_149, %c0_150] : memref<1x4x64x2x2xf32, #tpu.memory_space<vmem>>, vector<1x4x1x2x2xf32>
    %158 = vector.shape_cast %157 : vector<1x4x1x2x2xf32> to vector<4x2x2xf32>
    %159 = vector.shape_cast %156 : vector<4x2x2xf32> to vector<1x4x1x2x2xf32>
    tpu.vector_store %arg4[%c0_147, %c0_148, %c25, %c0_149, %c0_150], %159 {strides = array<i32>} : memref<1x4x64x2x2xf32, #tpu.memory_space<vmem>>, vector<1x4x1x2x2xf32>,
    %160 = vector.extract_strided_slice %143 {offsets = [0, 0, 8], sizes = [4, 2, 2], strides = [1, 1, 1]} : vector<4x2x16xf32> to vector<4x2x2xf32>
    %c0_151 = arith.constant 0 : index
    %c0_152 = arith.constant 0 : index
    %c10 = arith.constant 10 : index
    %c0_153 = arith.constant 0 : index
    %c0_154 = arith.constant 0 : index
    %161 = vector.load %arg4[%c0_151, %c0_152, %c10, %c0_153, %c0_154] : memref<1x4x64x2x2xf32, #tpu.memory_space<vmem>>, vector<1x4x1x2x2xf32>
    %162 = vector.shape_cast %161 : vector<1x4x1x2x2xf32> to vector<4x2x2xf32>
    %163 = vector.shape_cast %160 : vector<4x2x2xf32> to vector<1x4x1x2x2xf32>
    tpu.vector_store %arg4[%c0_151, %c0_152, %c10, %c0_153, %c0_154], %163 {strides = array<i32>} : memref<1x4x64x2x2xf32, #tpu.memory_space<vmem>>, vector<1x4x1x2x2xf32>,
    %164 = vector.extract_strided_slice %143 {offsets = [0, 0, 10], sizes = [4, 2, 2], strides = [1, 1, 1]} : vector<4x2x16xf32> to vector<4x2x2xf32>
    %c0_155 = arith.constant 0 : index
    %c0_156 = arith.constant 0 : index
    %c26 = arith.constant 26 : index
    %c0_157 = arith.constant 0 : index
    %c0_158 = arith.constant 0 : index
    %165 = vector.load %arg4[%c0_155, %c0_156, %c26, %c0_157, %c0_158] : memref<1x4x64x2x2xf32, #tpu.memory_space<vmem>>, vector<1x4x1x2x2xf32>
    %166 = vector.shape_cast %165 : vector<1x4x1x2x2xf32> to vector<4x2x2xf32>
    %167 = vector.shape_cast %164 : vector<4x2x2xf32> to vector<1x4x1x2x2xf32>
    tpu.vector_store %arg4[%c0_155, %c0_156, %c26, %c0_157, %c0_158], %167 {strides = array<i32>} : memref<1x4x64x2x2xf32, #tpu.memory_space<vmem>>, vector<1x4x1x2x2xf32>,
    %168 = vector.extract_strided_slice %143 {offsets = [0, 0, 12], sizes = [4, 2, 2], strides = [1, 1, 1]} : vector<4x2x16xf32> to vector<4x2x2xf32>
    %c0_159 = arith.constant 0 : index
    %c0_160 = arith.constant 0 : index
    %c11 = arith.constant 11 : index
    %c0_161 = arith.constant 0 : index
    %c0_162 = arith.constant 0 : index
    %169 = vector.load %arg4[%c0_159, %c0_160, %c11, %c0_161, %c0_162] : memref<1x4x64x2x2xf32, #tpu.memory_space<vmem>>, vector<1x4x1x2x2xf32>
    %170 = vector.shape_cast %169 : vector<1x4x1x2x2xf32> to vector<4x2x2xf32>
    %171 = vector.shape_cast %168 : vector<4x2x2xf32> to vector<1x4x1x2x2xf32>
    tpu.vector_store %arg4[%c0_159, %c0_160, %c11, %c0_161, %c0_162], %171 {strides = array<i32>} : memref<1x4x64x2x2xf32, #tpu.memory_space<vmem>>, vector<1x4x1x2x2xf32>,
    %172 = vector.extract_strided_slice %143 {offsets = [0, 0, 14], sizes = [4, 2, 2], strides = [1, 1, 1]} : vector<4x2x16xf32> to vector<4x2x2xf32>
    %c0_163 = arith.constant 0 : index
    %c0_164 = arith.constant 0 : index
    %c27 = arith.constant 27 : index
    %c0_165 = arith.constant 0 : index
    %c0_166 = arith.constant 0 : index
    %173 = vector.load %arg4[%c0_163, %c0_164, %c27, %c0_165, %c0_166] : memref<1x4x64x2x2xf32, #tpu.memory_space<vmem>>, vector<1x4x1x2x2xf32>
    %174 = vector.shape_cast %173 : vector<1x4x1x2x2xf32> to vector<4x2x2xf32>
    %175 = vector.shape_cast %172 : vector<4x2x2xf32> to vector<1x4x1x2x2xf32>
    tpu.vector_store %arg4[%c0_163, %c0_164, %c27, %c0_165, %c0_166], %175 {strides = array<i32>} : memref<1x4x64x2x2xf32, #tpu.memory_space<vmem>>, vector<1x4x1x2x2xf32>,
    %176 = vector.extract_strided_slice %5 {offsets = [0, 0, 5, 0], sizes = [4, 2, 1, 16], strides = [1, 1, 1, 1]} : vector<4x2x8x16xf32> to vector<4x2x1x16xf32>
    %177 = vector.shape_cast %176 : vector<4x2x1x16xf32> to vector<4x2x16xf32>
    %178 = vector.extract_strided_slice %177 {offsets = [0, 0, 0], sizes = [4, 2, 2], strides = [1, 1, 1]} : vector<4x2x16xf32> to vector<4x2x2xf32>
    %c0_167 = arith.constant 0 : index
    %c0_168 = arith.constant 0 : index
    %c40 = arith.constant 40 : index
    %c0_169 = arith.constant 0 : index
    %c0_170 = arith.constant 0 : index
    %179 = vector.load %arg4[%c0_167, %c0_168, %c40, %c0_169, %c0_170] : memref<1x4x64x2x2xf32, #tpu.memory_space<vmem>>, vector<1x4x1x2x2xf32>
    %180 = vector.shape_cast %179 : vector<1x4x1x2x2xf32> to vector<4x2x2xf32>
    %181 = vector.shape_cast %178 : vector<4x2x2xf32> to vector<1x4x1x2x2xf32>
    tpu.vector_store %arg4[%c0_167, %c0_168, %c40, %c0_169, %c0_170], %181 {strides = array<i32>} : memref<1x4x64x2x2xf32, #tpu.memory_space<vmem>>, vector<1x4x1x2x2xf32>,
    %182 = vector.extract_strided_slice %177 {offsets = [0, 0, 2], sizes = [4, 2, 2], strides = [1, 1, 1]} : vector<4x2x16xf32> to vector<4x2x2xf32>
    %c0_171 = arith.constant 0 : index
    %c0_172 = arith.constant 0 : index
    %c56 = arith.constant 56 : index
    %c0_173 = arith.constant 0 : index
    %c0_174 = arith.constant 0 : index
    %183 = vector.load %arg4[%c0_171, %c0_172, %c56, %c0_173, %c0_174] : memref<1x4x64x2x2xf32, #tpu.memory_space<vmem>>, vector<1x4x1x2x2xf32>
    %184 = vector.shape_cast %183 : vector<1x4x1x2x2xf32> to vector<4x2x2xf32>
    %185 = vector.shape_cast %182 : vector<4x2x2xf32> to vector<1x4x1x2x2xf32>
    tpu.vector_store %arg4[%c0_171, %c0_172, %c56, %c0_173, %c0_174], %185 {strides = array<i32>} : memref<1x4x64x2x2xf32, #tpu.memory_space<vmem>>, vector<1x4x1x2x2xf32>,
    %186 = vector.extract_strided_slice %177 {offsets = [0, 0, 4], sizes = [4, 2, 2], strides = [1, 1, 1]} : vector<4x2x16xf32> to vector<4x2x2xf32>
    %c0_175 = arith.constant 0 : index
    %c0_176 = arith.constant 0 : index
    %c41 = arith.constant 41 : index
    %c0_177 = arith.constant 0 : index
    %c0_178 = arith.constant 0 : index
    %187 = vector.load %arg4[%c0_175, %c0_176, %c41, %c0_177, %c0_178] : memref<1x4x64x2x2xf32, #tpu.memory_space<vmem>>, vector<1x4x1x2x2xf32>
    %188 = vector.shape_cast %187 : vector<1x4x1x2x2xf32> to vector<4x2x2xf32>
    %189 = vector.shape_cast %186 : vector<4x2x2xf32> to vector<1x4x1x2x2xf32>
    tpu.vector_store %arg4[%c0_175, %c0_176, %c41, %c0_177, %c0_178], %189 {strides = array<i32>} : memref<1x4x64x2x2xf32, #tpu.memory_space<vmem>>, vector<1x4x1x2x2xf32>,
    %190 = vector.extract_strided_slice %177 {offsets = [0, 0, 6], sizes = [4, 2, 2], strides = [1, 1, 1]} : vector<4x2x16xf32> to vector<4x2x2xf32>
    %c0_179 = arith.constant 0 : index
    %c0_180 = arith.constant 0 : index
    %c57 = arith.constant 57 : index
    %c0_181 = arith.constant 0 : index
    %c0_182 = arith.constant 0 : index
    %191 = vector.load %arg4[%c0_179, %c0_180, %c57, %c0_181, %c0_182] : memref<1x4x64x2x2xf32, #tpu.memory_space<vmem>>, vector<1x4x1x2x2xf32>
    %192 = vector.shape_cast %191 : vector<1x4x1x2x2xf32> to vector<4x2x2xf32>
    %193 = vector.shape_cast %190 : vector<4x2x2xf32> to vector<1x4x1x2x2xf32>
    tpu.vector_store %arg4[%c0_179, %c0_180, %c57, %c0_181, %c0_182], %193 {strides = array<i32>} : memref<1x4x64x2x2xf32, #tpu.memory_space<vmem>>, vector<1x4x1x2x2xf32>,
    %194 = vector.extract_strided_slice %177 {offsets = [0, 0, 8], sizes = [4, 2, 2], strides = [1, 1, 1]} : vector<4x2x16xf32> to vector<4x2x2xf32>
    %c0_183 = arith.constant 0 : index
    %c0_184 = arith.constant 0 : index
    %c42 = arith.constant 42 : index
    %c0_185 = arith.constant 0 : index
    %c0_186 = arith.constant 0 : index
    %195 = vector.load %arg4[%c0_183, %c0_184, %c42, %c0_185, %c0_186] : memref<1x4x64x2x2xf32, #tpu.memory_space<vmem>>, vector<1x4x1x2x2xf32>
    %196 = vector.shape_cast %195 : vector<1x4x1x2x2xf32> to vector<4x2x2xf32>
    %197 = vector.shape_cast %194 : vector<4x2x2xf32> to vector<1x4x1x2x2xf32>
    tpu.vector_store %arg4[%c0_183, %c0_184, %c42, %c0_185, %c0_186], %197 {strides = array<i32>} : memref<1x4x64x2x2xf32, #tpu.memory_space<vmem>>, vector<1x4x1x2x2xf32>,
    %198 = vector.extract_strided_slice %177 {offsets = [0, 0, 10], sizes = [4, 2, 2], strides = [1, 1, 1]} : vector<4x2x16xf32> to vector<4x2x2xf32>
    %c0_187 = arith.constant 0 : index
    %c0_188 = arith.constant 0 : index
    %c58 = arith.constant 58 : index
    %c0_189 = arith.constant 0 : index
    %c0_190 = arith.constant 0 : index
    %199 = vector.load %arg4[%c0_187, %c0_188, %c58, %c0_189, %c0_190] : memref<1x4x64x2x2xf32, #tpu.memory_space<vmem>>, vector<1x4x1x2x2xf32>
    %200 = vector.shape_cast %199 : vector<1x4x1x2x2xf32> to vector<4x2x2xf32>
    %201 = vector.shape_cast %198 : vector<4x2x2xf32> to vector<1x4x1x2x2xf32>
    tpu.vector_store %arg4[%c0_187, %c0_188, %c58, %c0_189, %c0_190], %201 {strides = array<i32>} : memref<1x4x64x2x2xf32, #tpu.memory_space<vmem>>, vector<1x4x1x2x2xf32>,
    %202 = vector.extract_strided_slice %177 {offsets = [0, 0, 12], sizes = [4, 2, 2], strides = [1, 1, 1]} : vector<4x2x16xf32> to vector<4x2x2xf32>
    %c0_191 = arith.constant 0 : index
    %c0_192 = arith.constant 0 : index
    %c43 = arith.constant 43 : index
    %c0_193 = arith.constant 0 : index
    %c0_194 = arith.constant 0 : index
    %203 = vector.load %arg4[%c0_191, %c0_192, %c43, %c0_193, %c0_194] : memref<1x4x64x2x2xf32, #tpu.memory_space<vmem>>, vector<1x4x1x2x2xf32>
    %204 = vector.shape_cast %203 : vector<1x4x1x2x2xf32> to vector<4x2x2xf32>
    %205 = vector.shape_cast %202 : vector<4x2x2xf32> to vector<1x4x1x2x2xf32>
    tpu.vector_store %arg4[%c0_191, %c0_192, %c43, %c0_193, %c0_194], %205 {strides = array<i32>} : memref<1x4x64x2x2xf32, #tpu.memory_space<vmem>>, vector<1x4x1x2x2xf32>,
    %206 = vector.extract_strided_slice %177 {offsets = [0, 0, 14], sizes = [4, 2, 2], strides = [1, 1, 1]} : vector<4x2x16xf32> to vector<4x2x2xf32>
    %c0_195 = arith.constant 0 : index
    %c0_196 = arith.constant 0 : index
    %c59 = arith.constant 59 : index
    %c0_197 = arith.constant 0 : index
    %c0_198 = arith.constant 0 : index
    %207 = vector.load %arg4[%c0_195, %c0_196, %c59, %c0_197, %c0_198] : memref<1x4x64x2x2xf32, #tpu.memory_space<vmem>>, vector<1x4x1x2x2xf32>
    %208 = vector.shape_cast %207 : vector<1x4x1x2x2xf32> to vector<4x2x2xf32>
    %209 = vector.shape_cast %206 : vector<4x2x2xf32> to vector<1x4x1x2x2xf32>
    tpu.vector_store %arg4[%c0_195, %c0_196, %c59, %c0_197, %c0_198], %209 {strides = array<i32>} : memref<1x4x64x2x2xf32, #tpu.memory_space<vmem>>, vector<1x4x1x2x2xf32>,
    %210 = vector.extract_strided_slice %5 {offsets = [0, 0, 6, 0], sizes = [4, 2, 1, 16], strides = [1, 1, 1, 1]} : vector<4x2x8x16xf32> to vector<4x2x1x16xf32>
    %211 = vector.shape_cast %210 : vector<4x2x1x16xf32> to vector<4x2x16xf32>
    %212 = vector.extract_strided_slice %211 {offsets = [0, 0, 0], sizes = [4, 2, 2], strides = [1, 1, 1]} : vector<4x2x16xf32> to vector<4x2x2xf32>
    %c0_199 = arith.constant 0 : index
    %c0_200 = arith.constant 0 : index
    %c12 = arith.constant 12 : index
    %c0_201 = arith.constant 0 : index
    %c0_202 = arith.constant 0 : index
    %213 = vector.load %arg4[%c0_199, %c0_200, %c12, %c0_201, %c0_202] : memref<1x4x64x2x2xf32, #tpu.memory_space<vmem>>, vector<1x4x1x2x2xf32>
    %214 = vector.shape_cast %213 : vector<1x4x1x2x2xf32> to vector<4x2x2xf32>
    %215 = vector.shape_cast %212 : vector<4x2x2xf32> to vector<1x4x1x2x2xf32>
    tpu.vector_store %arg4[%c0_199, %c0_200, %c12, %c0_201, %c0_202], %215 {strides = array<i32>} : memref<1x4x64x2x2xf32, #tpu.memory_space<vmem>>, vector<1x4x1x2x2xf32>,
    %216 = vector.extract_strided_slice %211 {offsets = [0, 0, 2], sizes = [4, 2, 2], strides = [1, 1, 1]} : vector<4x2x16xf32> to vector<4x2x2xf32>
    %c0_203 = arith.constant 0 : index
    %c0_204 = arith.constant 0 : index
    %c28 = arith.constant 28 : index
    %c0_205 = arith.constant 0 : index
    %c0_206 = arith.constant 0 : index
    %217 = vector.load %arg4[%c0_203, %c0_204, %c28, %c0_205, %c0_206] : memref<1x4x64x2x2xf32, #tpu.memory_space<vmem>>, vector<1x4x1x2x2xf32>
    %218 = vector.shape_cast %217 : vector<1x4x1x2x2xf32> to vector<4x2x2xf32>
    %219 = vector.shape_cast %216 : vector<4x2x2xf32> to vector<1x4x1x2x2xf32>
    tpu.vector_store %arg4[%c0_203, %c0_204, %c28, %c0_205, %c0_206], %219 {strides = array<i32>} : memref<1x4x64x2x2xf32, #tpu.memory_space<vmem>>, vector<1x4x1x2x2xf32>,
    %220 = vector.extract_strided_slice %211 {offsets = [0, 0, 4], sizes = [4, 2, 2], strides = [1, 1, 1]} : vector<4x2x16xf32> to vector<4x2x2xf32>
    %c0_207 = arith.constant 0 : index
    %c0_208 = arith.constant 0 : index
    %c13 = arith.constant 13 : index
    %c0_209 = arith.constant 0 : index
    %c0_210 = arith.constant 0 : index
    %221 = vector.load %arg4[%c0_207, %c0_208, %c13, %c0_209, %c0_210] : memref<1x4x64x2x2xf32, #tpu.memory_space<vmem>>, vector<1x4x1x2x2xf32>
    %222 = vector.shape_cast %221 : vector<1x4x1x2x2xf32> to vector<4x2x2xf32>
    %223 = vector.shape_cast %220 : vector<4x2x2xf32> to vector<1x4x1x2x2xf32>
    tpu.vector_store %arg4[%c0_207, %c0_208, %c13, %c0_209, %c0_210], %223 {strides = array<i32>} : memref<1x4x64x2x2xf32, #tpu.memory_space<vmem>>, vector<1x4x1x2x2xf32>,
    %224 = vector.extract_strided_slice %211 {offsets = [0, 0, 6], sizes = [4, 2, 2], strides = [1, 1, 1]} : vector<4x2x16xf32> to vector<4x2x2xf32>
    %c0_211 = arith.constant 0 : index
    %c0_212 = arith.constant 0 : index
    %c29 = arith.constant 29 : index
    %c0_213 = arith.constant 0 : index
    %c0_214 = arith.constant 0 : index
    %225 = vector.load %arg4[%c0_211, %c0_212, %c29, %c0_213, %c0_214] : memref<1x4x64x2x2xf32, #tpu.memory_space<vmem>>, vector<1x4x1x2x2xf32>
    %226 = vector.shape_cast %225 : vector<1x4x1x2x2xf32> to vector<4x2x2xf32>
    %227 = vector.shape_cast %224 : vector<4x2x2xf32> to vector<1x4x1x2x2xf32>
    tpu.vector_store %arg4[%c0_211, %c0_212, %c29, %c0_213, %c0_214], %227 {strides = array<i32>} : memref<1x4x64x2x2xf32, #tpu.memory_space<vmem>>, vector<1x4x1x2x2xf32>,
    %228 = vector.extract_strided_slice %211 {offsets = [0, 0, 8], sizes = [4, 2, 2], strides = [1, 1, 1]} : vector<4x2x16xf32> to vector<4x2x2xf32>
    %c0_215 = arith.constant 0 : index
    %c0_216 = arith.constant 0 : index
    %c14 = arith.constant 14 : index
    %c0_217 = arith.constant 0 : index
    %c0_218 = arith.constant 0 : index
    %229 = vector.load %arg4[%c0_215, %c0_216, %c14, %c0_217, %c0_218] : memref<1x4x64x2x2xf32, #tpu.memory_space<vmem>>, vector<1x4x1x2x2xf32>
    %230 = vector.shape_cast %229 : vector<1x4x1x2x2xf32> to vector<4x2x2xf32>
    %231 = vector.shape_cast %228 : vector<4x2x2xf32> to vector<1x4x1x2x2xf32>
    tpu.vector_store %arg4[%c0_215, %c0_216, %c14, %c0_217, %c0_218], %231 {strides = array<i32>} : memref<1x4x64x2x2xf32, #tpu.memory_space<vmem>>, vector<1x4x1x2x2xf32>,
    %232 = vector.extract_strided_slice %211 {offsets = [0, 0, 10], sizes = [4, 2, 2], strides = [1, 1, 1]} : vector<4x2x16xf32> to vector<4x2x2xf32>
    %c0_219 = arith.constant 0 : index
    %c0_220 = arith.constant 0 : index
    %c30 = arith.constant 30 : index
    %c0_221 = arith.constant 0 : index
    %c0_222 = arith.constant 0 : index
    %233 = vector.load %arg4[%c0_219, %c0_220, %c30, %c0_221, %c0_222] : memref<1x4x64x2x2xf32, #tpu.memory_space<vmem>>, vector<1x4x1x2x2xf32>
    %234 = vector.shape_cast %233 : vector<1x4x1x2x2xf32> to vector<4x2x2xf32>
    %235 = vector.shape_cast %232 : vector<4x2x2xf32> to vector<1x4x1x2x2xf32>
    tpu.vector_store %arg4[%c0_219, %c0_220, %c30, %c0_221, %c0_222], %235 {strides = array<i32>} : memref<1x4x64x2x2xf32, #tpu.memory_space<vmem>>, vector<1x4x1x2x2xf32>,
    %236 = vector.extract_strided_slice %211 {offsets = [0, 0, 12], sizes = [4, 2, 2], strides = [1, 1, 1]} : vector<4x2x16xf32> to vector<4x2x2xf32>
    %c0_223 = arith.constant 0 : index
    %c0_224 = arith.constant 0 : index
    %c15 = arith.constant 15 : index
    %c0_225 = arith.constant 0 : index
    %c0_226 = arith.constant 0 : index
    %237 = vector.load %arg4[%c0_223, %c0_224, %c15, %c0_225, %c0_226] : memref<1x4x64x2x2xf32, #tpu.memory_space<vmem>>, vector<1x4x1x2x2xf32>
    %238 = vector.shape_cast %237 : vector<1x4x1x2x2xf32> to vector<4x2x2xf32>
    %239 = vector.shape_cast %236 : vector<4x2x2xf32> to vector<1x4x1x2x2xf32>
    tpu.vector_store %arg4[%c0_223, %c0_224, %c15, %c0_225, %c0_226], %239 {strides = array<i32>} : memref<1x4x64x2x2xf32, #tpu.memory_space<vmem>>, vector<1x4x1x2x2xf32>,
    %240 = vector.extract_strided_slice %211 {offsets = [0, 0, 14], sizes = [4, 2, 2], strides = [1, 1, 1]} : vector<4x2x16xf32> to vector<4x2x2xf32>
    %c0_227 = arith.constant 0 : index
    %c0_228 = arith.constant 0 : index
    %c31 = arith.constant 31 : index
    %c0_229 = arith.constant 0 : index
    %c0_230 = arith.constant 0 : index
    %241 = vector.load %arg4[%c0_227, %c0_228, %c31, %c0_229, %c0_230] : memref<1x4x64x2x2xf32, #tpu.memory_space<vmem>>, vector<1x4x1x2x2xf32>
    %242 = vector.shape_cast %241 : vector<1x4x1x2x2xf32> to vector<4x2x2xf32>
    %243 = vector.shape_cast %240 : vector<4x2x2xf32> to vector<1x4x1x2x2xf32>
    tpu.vector_store %arg4[%c0_227, %c0_228, %c31, %c0_229, %c0_230], %243 {strides = array<i32>} : memref<1x4x64x2x2xf32, #tpu.memory_space<vmem>>, vector<1x4x1x2x2xf32>,
    %244 = vector.extract_strided_slice %5 {offsets = [0, 0, 7, 0], sizes = [4, 2, 1, 16], strides = [1, 1, 1, 1]} : vector<4x2x8x16xf32> to vector<4x2x1x16xf32>
    %245 = vector.shape_cast %244 : vector<4x2x1x16xf32> to vector<4x2x16xf32>
    %246 = vector.extract_strided_slice %245 {offsets = [0, 0, 0], sizes = [4, 2, 2], strides = [1, 1, 1]} : vector<4x2x16xf32> to vector<4x2x2xf32>
    %c0_231 = arith.constant 0 : index
    %c0_232 = arith.constant 0 : index
    %c44 = arith.constant 44 : index
    %c0_233 = arith.constant 0 : index
    %c0_234 = arith.constant 0 : index
    %247 = vector.load %arg4[%c0_231, %c0_232, %c44, %c0_233, %c0_234] : memref<1x4x64x2x2xf32, #tpu.memory_space<vmem>>, vector<1x4x1x2x2xf32>
    %248 = vector.shape_cast %247 : vector<1x4x1x2x2xf32> to vector<4x2x2xf32>
    %249 = vector.shape_cast %246 : vector<4x2x2xf32> to vector<1x4x1x2x2xf32>
    tpu.vector_store %arg4[%c0_231, %c0_232, %c44, %c0_233, %c0_234], %249 {strides = array<i32>} : memref<1x4x64x2x2xf32, #tpu.memory_space<vmem>>, vector<1x4x1x2x2xf32>,
    %250 = vector.extract_strided_slice %245 {offsets = [0, 0, 2], sizes = [4, 2, 2], strides = [1, 1, 1]} : vector<4x2x16xf32> to vector<4x2x2xf32>
    %c0_235 = arith.constant 0 : index
    %c0_236 = arith.constant 0 : index
    %c60 = arith.constant 60 : index
    %c0_237 = arith.constant 0 : index
    %c0_238 = arith.constant 0 : index
    %251 = vector.load %arg4[%c0_235, %c0_236, %c60, %c0_237, %c0_238] : memref<1x4x64x2x2xf32, #tpu.memory_space<vmem>>, vector<1x4x1x2x2xf32>
    %252 = vector.shape_cast %251 : vector<1x4x1x2x2xf32> to vector<4x2x2xf32>
    %253 = vector.shape_cast %250 : vector<4x2x2xf32> to vector<1x4x1x2x2xf32>
    tpu.vector_store %arg4[%c0_235, %c0_236, %c60, %c0_237, %c0_238], %253 {strides = array<i32>} : memref<1x4x64x2x2xf32, #tpu.memory_space<vmem>>, vector<1x4x1x2x2xf32>,
    %254 = vector.extract_strided_slice %245 {offsets = [0, 0, 4], sizes = [4, 2, 2], strides = [1, 1, 1]} : vector<4x2x16xf32> to vector<4x2x2xf32>
    %c0_239 = arith.constant 0 : index
    %c0_240 = arith.constant 0 : index
    %c45 = arith.constant 45 : index
    %c0_241 = arith.constant 0 : index
    %c0_242 = arith.constant 0 : index
    %255 = vector.load %arg4[%c0_239, %c0_240, %c45, %c0_241, %c0_242] : memref<1x4x64x2x2xf32, #tpu.memory_space<vmem>>, vector<1x4x1x2x2xf32>
    %256 = vector.shape_cast %255 : vector<1x4x1x2x2xf32> to vector<4x2x2xf32>
    %257 = vector.shape_cast %254 : vector<4x2x2xf32> to vector<1x4x1x2x2xf32>
    tpu.vector_store %arg4[%c0_239, %c0_240, %c45, %c0_241, %c0_242], %257 {strides = array<i32>} : memref<1x4x64x2x2xf32, #tpu.memory_space<vmem>>, vector<1x4x1x2x2xf32>,
    %258 = vector.extract_strided_slice %245 {offsets = [0, 0, 6], sizes = [4, 2, 2], strides = [1, 1, 1]} : vector<4x2x16xf32> to vector<4x2x2xf32>
    %c0_243 = arith.constant 0 : index
    %c0_244 = arith.constant 0 : index
    %c61 = arith.constant 61 : index
    %c0_245 = arith.constant 0 : index
    %c0_246 = arith.constant 0 : index
    %259 = vector.load %arg4[%c0_243, %c0_244, %c61, %c0_245, %c0_246] : memref<1x4x64x2x2xf32, #tpu.memory_space<vmem>>, vector<1x4x1x2x2xf32>
    %260 = vector.shape_cast %259 : vector<1x4x1x2x2xf32> to vector<4x2x2xf32>
    %261 = vector.shape_cast %258 : vector<4x2x2xf32> to vector<1x4x1x2x2xf32>
    tpu.vector_store %arg4[%c0_243, %c0_244, %c61, %c0_245, %c0_246], %261 {strides = array<i32>} : memref<1x4x64x2x2xf32, #tpu.memory_space<vmem>>, vector<1x4x1x2x2xf32>,
    %262 = vector.extract_strided_slice %245 {offsets = [0, 0, 8], sizes = [4, 2, 2], strides = [1, 1, 1]} : vector<4x2x16xf32> to vector<4x2x2xf32>
    %c0_247 = arith.constant 0 : index
    %c0_248 = arith.constant 0 : index
    %c46 = arith.constant 46 : index
    %c0_249 = arith.constant 0 : index
    %c0_250 = arith.constant 0 : index
    %263 = vector.load %arg4[%c0_247, %c0_248, %c46, %c0_249, %c0_250] : memref<1x4x64x2x2xf32, #tpu.memory_space<vmem>>, vector<1x4x1x2x2xf32>
    %264 = vector.shape_cast %263 : vector<1x4x1x2x2xf32> to vector<4x2x2xf32>
    %265 = vector.shape_cast %262 : vector<4x2x2xf32> to vector<1x4x1x2x2xf32>
    tpu.vector_store %arg4[%c0_247, %c0_248, %c46, %c0_249, %c0_250], %265 {strides = array<i32>} : memref<1x4x64x2x2xf32, #tpu.memory_space<vmem>>, vector<1x4x1x2x2xf32>,
    %266 = vector.extract_strided_slice %245 {offsets = [0, 0, 10], sizes = [4, 2, 2], strides = [1, 1, 1]} : vector<4x2x16xf32> to vector<4x2x2xf32>
    %c0_251 = arith.constant 0 : index
    %c0_252 = arith.constant 0 : index
    %c62 = arith.constant 62 : index
    %c0_253 = arith.constant 0 : index
    %c0_254 = arith.constant 0 : index
    %267 = vector.load %arg4[%c0_251, %c0_252, %c62, %c0_253, %c0_254] : memref<1x4x64x2x2xf32, #tpu.memory_space<vmem>>, vector<1x4x1x2x2xf32>
    %268 = vector.shape_cast %267 : vector<1x4x1x2x2xf32> to vector<4x2x2xf32>
    %269 = vector.shape_cast %266 : vector<4x2x2xf32> to vector<1x4x1x2x2xf32>
    tpu.vector_store %arg4[%c0_251, %c0_252, %c62, %c0_253, %c0_254], %269 {strides = array<i32>} : memref<1x4x64x2x2xf32, #tpu.memory_space<vmem>>, vector<1x4x1x2x2xf32>,
    %270 = vector.extract_strided_slice %245 {offsets = [0, 0, 12], sizes = [4, 2, 2], strides = [1, 1, 1]} : vector<4x2x16xf32> to vector<4x2x2xf32>
    %c0_255 = arith.constant 0 : index
    %c0_256 = arith.constant 0 : index
    %c47 = arith.constant 47 : index
    %c0_257 = arith.constant 0 : index
    %c0_258 = arith.constant 0 : index
    %271 = vector.load %arg4[%c0_255, %c0_256, %c47, %c0_257, %c0_258] : memref<1x4x64x2x2xf32, #tpu.memory_space<vmem>>, vector<1x4x1x2x2xf32>
    %272 = vector.shape_cast %271 : vector<1x4x1x2x2xf32> to vector<4x2x2xf32>
    %273 = vector.shape_cast %270 : vector<4x2x2xf32> to vector<1x4x1x2x2xf32>
    tpu.vector_store %arg4[%c0_255, %c0_256, %c47, %c0_257, %c0_258], %273 {strides = array<i32>} : memref<1x4x64x2x2xf32, #tpu.memory_space<vmem>>, vector<1x4x1x2x2xf32>,
    %274 = vector.extract_strided_slice %245 {offsets = [0, 0, 14], sizes = [4, 2, 2], strides = [1, 1, 1]} : vector<4x2x16xf32> to vector<4x2x2xf32>
    %c0_259 = arith.constant 0 : index
    %c0_260 = arith.constant 0 : index
    %c63 = arith.constant 63 : index
    %c0_261 = arith.constant 0 : index
    %c0_262 = arith.constant 0 : index
    %275 = vector.load %arg4[%c0_259, %c0_260, %c63, %c0_261, %c0_262] : memref<1x4x64x2x2xf32, #tpu.memory_space<vmem>>, vector<1x4x1x2x2xf32>
    %276 = vector.shape_cast %275 : vector<1x4x1x2x2xf32> to vector<4x2x2xf32>
    %277 = vector.shape_cast %274 : vector<4x2x2xf32> to vector<1x4x1x2x2xf32>
    tpu.vector_store %arg4[%c0_259, %c0_260, %c63, %c0_261, %c0_262], %277 {strides = array<i32>} : memref<1x4x64x2x2xf32, #tpu.memory_space<vmem>>, vector<1x4x1x2x2xf32>,
    return
  }
  func.func @transform_0(%arg0: i32, %arg1: i32) -> (i32, i32, i32, i32, i32) {
    %c0_i32 = arith.constant 0 : i32
    %c0_i32_0 = arith.constant 0 : i32
    %c0_i32_1 = arith.constant 0 : i32
    %c0_i32_2 = arith.constant 0 : i32
    return %arg0, %c0_i32, %arg1, %c0_i32_0, %c0_i32_1 : i32, i32, i32, i32, i32
  }
  func.func @transform_1(%arg0: i32, %arg1: i32) -> (i32, i32) {
    %c0_i32 = arith.constant 0 : i32
    %c0_i32_0 = arith.constant 0 : i32
    %c0_i32_1 = arith.constant 0 : i32
    return %c0_i32, %c0_i32_0 : i32, i32
  }
  func.func @transform_2(%arg0: i32, %arg1: i32) -> (i32, i32, i32, i32, i32) {
    %c0_i32 = arith.constant 0 : i32
    %c0_i32_0 = arith.constant 0 : i32
    %c0_i32_1 = arith.constant 0 : i32
    %c0_i32_2 = arith.constant 0 : i32
    return %arg0, %c0_i32, %c0_i32_0, %arg1, %c0_i32_1 : i32, i32, i32, i32, i32
  }
}

</mosaic_0001>

<bundles_post_ra>
// kernel: tpu_custom_call.1
= control target key start
LH: loop header
LB: loop body
LE: loop exit
PB: predicated region body
PF: predicated region fallthrough
CT: control target
= control target key end

     0   :  { %7 = vsyncpa [#allocation3], 0  ;;  %s4566_s0 = inlined_call_operand.hbm [shape: f32[2,4,2,8,16], index: 0, kind: input, shape index: {}]   ;;  %s4567_s1 = inlined_call_operand.hbm [shape: f32[16,16], index: 1, kind: input, shape index: {}]   ;;  %s4568_s2 = inlined_call_operand.vmem [shape: f32[2,4,64,2,2], index: 2, kind: output, shape index: {}]  }
   0x1   :  { %9 = vsyncpa [#allocation3 + $0x1], 0 }
   0x2   :  { %10 = vsyncpa [#allocation5], 0  ;;  %s3036_s9 = smov 0   ;;  %s3038_s10 = smov 0  }
   0x3   :  { %s3040_s11 = smov 0   ;;  %s3042_s12 = smov 0  }
   0x4   :  { %s3044_s13 = smov 0   ;;  %s3046_s14 = smov 0  }
   0x5 LB: > { %s2300_s15 = sadd.s32 4294967295, %s3008_s14   ;;  %p50_p0 = scmp.ne.s32.totalorder %s2992_s10, %s2988_s9  ;;  %s3008_s14 = sphi %s3046_s14, %s16_s14   ;;  %s3004_s13 = sphi %s3044_s13, %s4585_s13   ;;  %s3000_s12 = sphi %s3042_s12, %s4584_s12   ;;  %s2996_s11 = sphi %s3040_s11, %s4583_s11   ;;  %s2992_s10 = sphi %s3038_s10, %s4582_s10   ;;  %s2988_s9 = sphi %s3036_s9, %s4581_s9  }
   0x6   : > { %p3066_p1 = scmp.eq.s32.totalorder %s2300_s15, 0  ;;  %p2302_p2 = scmp.ge.s32.totalorder %s3008_s14, 1 }
   0x7   : > { %p110_p3 = scmp.lt.s32.totalorder %s3008_s14, 3  ;;  %s3010_s19 = smov [#allocation4]  }
   0x8   : > { %s4573_s16 = scalar_select %p3066_p1, 1, 0 }
   0x9   : > { %p3074_p4 = por %p3066_p1, %p50_p0  ;;  %p3078_p5 = pnand %p2302_p2, %p110_p3 }
   0xa   : > { %s122_s20 = sshll.u32 %s3010_s19, 4  ;;  %s28_s22 = sadd.s32 1, %s3004_s13  ;;  %s123_s20 = int_to_ptr.vmem [resolvable:$true] %s122_s20 }
   0xb   : > { %s4574_s17 = scalar_select %p3074_p4, 1, 0 }
   0xc   : > { %s4575_s18 = scalar_select %p3078_p5, 1, 0 }
   0xd   : > { %p2827_p6 = pneg %p3078_p5  ;;  %s2896_s25 = scalar_lea.hbm %s4567_s1, 256 }
   0xe   : > { %p2897_p8 = scmp.ne.s32.totalorder %s4567_s1, %s2896_s25  ;;  %p2903_p12 = scmp.lt.u32.totalorder %s2896_s25, %s4567_s1 }
   0xf   : > { %p3086_p7 = pnand %p2827_p6, %p3066_p1 }
  0x11   : > { %p2898_p9 = pneg %p3086_p7 }
  0x13   : > { %p2899_p10 = pnand %p2898_p9, %p2897_p8 }
  0x15   : > { %p2900_p11 = pneg %p2899_p10 }
  0x17   : > { %p2905_p13 = pnand %p2903_p12, %p2900_p11 }
  0x19   : > { %2908 = shalt.err (!%p2905_p13)
}
  0x1a   : > { %s2909_s30 = scalar_lea.vmem %s123_s20, 256  ;;  %p2917_p6 = scmp.lt.s32.totalorder %s123_s20, %s123_s20 }
  0x1b   : > { %p2910_p0 = scmp.ne.s32.totalorder %s123_s20, %s2909_s30  ;;  %p2918_p1 = scmp.lt.s32.totalorder %s2909_s30, %s2909_s30 }
  0x1d   : > { %p2912_p2 = pnand %p2910_p0, %p2898_p9  ;;  %p2919_p4 = por %p2918_p1, %p2917_p6 }
  0x1f   : > { %p2913_p3 = pneg %p2912_p2 }
  0x21   : > { %p2920_p5 = pnand %p2919_p4, %p2913_p3 }
  0x23   : > { %2923 = shalt.err (!%p2920_p5)
}
  0x24   : > { %s3011_s3 = smov 128   ;;  %s3012_s4 = smov 8  }
  0x25   : > { %2830 = dma.hbm_to_vmem [thread:$0]  (!%p3086_p7), %s4567_s1, 256, %s123_s20, [#allocation5], %s3011_s3, %s3011_s3, %s3012_s4  }
  0x26   : > { %p30_p1 = scmp.ge.s32.totalorder %s28_s22, 2  ;;  %s37_s7 = sadd.s32 1, %s2996_s11 }
  0x27   : > { %p44_p4 = scmp.ne.s32.totalorder %s2996_s11, %s2992_s10  ;;  %p45_p5 = scmp.eq.s32.totalorder %s3008_s14, 0 }
  0x28   : > { %s4587_s22 = smov (%p30_p1, %s28_s22), 0  ;;  %p2836_p9 = scmp.lt.s32.totalorder %s3008_s14, 2 }
  0x29   : > { %p46_p8 = por %p45_p5, %p44_p4  ;;  %s32_s8 = ssub.s32 %s3004_s13, %s4587_s22 }
  0x2a   : > { %s136_s9 = sand.u32 1, %s2996_s11   ;;  %p35_p10 = scmp.eq.s32.totalorder %s32_s8, 0 }
  0x2b   : > { %s2305_s15 = sshll.u32 %s136_s9, 6  ;;  %s2599_s19 = sshll.u32 %s3004_s13, 10 }
  0x2c   : > { %s3122_s21 = scalar_select %p35_p10, %s2996_s11, %s37_s7  }
  0x2d   : > { %s3127_s20 = scalar_lea.hbm %s4566_s0, %s2599_s19  ;;  %s140_s25 = scalar_lea.vmem [#allocation2], %s2305_s15 }
  0x2e   : > { %s149_s26 = sshll.u32 %s140_s25, 4  ;;  %p3129_p7 = pnand %p2836_p9, %p46_p8  ;;  %s3133_s26 = int_to_ptr.vmem [resolvable:$true] %s149_s26 }
  0x2f   : > { %s3135_s28 = scalar_lea.sflag [#allocation3], %s136_s9  ;;  %s2924_s29 = scalar_lea.hbm %s3127_s20, 1024 }
  0x30   : > { %p2925_p11 = scmp.ne.s32.totalorder %s3127_s20, %s2924_s29  ;;  %p2926_p12 = pneg %p3129_p7 }
  0x31   : > { %s2929_s6 = scalar_lea.hbm %s4566_s0, 2048  ;;  %p2930_p2 = scmp.lt.u32.totalorder %s3127_s20, %s4566_s0 }
  0x32   : > { %p2927_p13 = pnand %p2926_p12, %p2925_p11  ;;  %p2931_p3 = scmp.lt.u32.totalorder %s2929_s6, %s2924_s29 }
  0x33   : > { %p2933_p1 = scmp.lt.u32.totalorder %s2924_s29, %s3127_s20 }
  0x34   : > { %p2928_p0 = pneg %p2927_p13  ;;  %p2932_p6 = por %p2931_p3, %p2930_p2 }
  0x36   : > { %p2934_p4 = por %p2933_p1, %p2932_p6 }
  0x38   : > { %p2935_p5 = pnand %p2934_p4, %p2928_p0 }
  0x3a   : > { %2938 = shalt.err (!%p2935_p5)
}
  0x3b   : > { %s2939_s9 = scalar_lea.vmem %s3133_s26, 1024  ;;  %s3013_s15 = smov [#allocation2]  }
  0x3c   : > { %p2940_p8 = scmp.ne.s32.totalorder %s3133_s26, %s2939_s9  ;;  %s2944_s19 = sshll.u32 %s3013_s15, 4  ;;  %s2945_s19 = int_to_ptr.vmem [resolvable:$false] %s2944_s19 }
  0x3d   : > { %s2946_s23 = scalar_lea.vmem %s2945_s19, 2048  ;;  %p2947_p11 = scmp.lt.s32.totalorder %s3133_s26, %s2945_s19 }
  0x3e   : > { %p2942_p9 = pnand %p2940_p8, %p2926_p12  ;;  %p2948_p13 = scmp.lt.s32.totalorder %s2946_s23, %s2939_s9 }
  0x40   : > { %p2943_p10 = pneg %p2942_p9  ;;  %p2949_p2 = por %p2948_p13, %p2947_p11 }
  0x42   : > { %p2950_p3 = pnand %p2949_p2, %p2943_p10 }
  0x44   : > { %2953 = shalt.err (!%p2950_p3)
}
  0x45   : > { %2834 = dma.hbm_to_vmem [thread:$0]  (!%p3129_p7), %s3127_s20, 1024, %s3133_s26, %s3135_s28, %s3011_s3, %s3011_s3, %s3012_s4  }
  0x46   : > { %p4578_p12 = scmp.ne.s32.totalorder %s4575_s18, 0 }
  0x47   : > { %s163_s24 = sand.u32 (!%p4578_p12), 1, %s2992_s10   ;;  %p4579_p0 = scmp.ne.s32.totalorder (!%p4578_p12), %s4574_s17, 0 }
  0x48   : > { %161 = sbr.rel (%p4578_p12) target bundleno = 966 (0x3c6), region = 28  ;;  %s2309_s25 = sshll.u32 (!%p4578_p12), %s163_s24, 6 }
  0x49   : > { %s164_s29 = scalar_lea.sflag (!%p4578_p12), [#allocation3], %s163_s24  ;;  %s3169_s30 = scalar_lea.vmem (!%p4578_p12), [#allocation2], %s2309_s25 }
  0x4f   : > { %2979 = dma.done.wait (%p4579_p0), %s164_s29, 1024  }
  0x50   : > { %2981 = vsyncadd (%p4579_p0), %s164_s29, 4294966272  ;;  %p4580_p6 = scmp.ne.s32.totalorder %s4573_s16, 0 }
  0x52   : > { %2983 = dma.done.wait (%p4580_p6), [#allocation5], 256  }
  0x53   : > { %2985 = vsyncadd (%p4580_p6), [#allocation5], 4294967040  ;;  %vm214_vm0 = vcmask 130048   ;;  %v212_v0 = vld [vmem:[#allocation4] sm:$0xff]  ;;  %v213_v1 = vld [vmem:[#allocation4 + $0x8] sm:$0xff]  ;;  %p196_p7 = scmp.lt.s32.totalorder %s3000_s12, 1 }
  0x54   : > { %v204_v2 = vld [vmem:[%s3169_s30] sm:$0xff]  ;;  %v240_v3 = vand.u32 4294901760, %v212_v0  ;;  %v243_v4 = vand.u32 4294901760, %v213_v1  ;;  %v205_v6 = vld [vmem:[%s3169_s30 + $0x8] sm:$0xff]  ;;  %v206_v7 = vld [vmem:[%s3169_s30 + $0x10] sm:$0xff]  ;;  %vm1959_vm1 = vcmask 8192  }
  0x55   : > { %v216_v5 = vsel %vm214_vm0, %v204_v2, 0  ;;  %v207_v8 = vld [vmem:[%s3169_s30 + $0x18] sm:$0xff]  ;;  %v219_v10 = vsel %vm214_vm0, %v205_v6, 0  ;;  %v222_v11 = vsel %vm214_vm0, %v206_v7, 0  ;;  %v208_v13 = vld [vmem:[%s3169_s30 + $0x20] sm:$0xff]  ;;  %v209_v18 = vld [vmem:[%s3169_s30 + $0x28] sm:$0xff] }
  0x56   : > { %v3184_v9 = vand.u32 4294901760, %v216_v5  ;;  %v225_v12 = vsel %vm214_vm0, %v207_v8, 0  ;;  %v3190_v14 = vpack.c.bf16 %v243_v4, %v240_v3  ;;  %v3192_v15 = vand.u32 4294901760, %v219_v10  ;;  %v210_v39 = vld [vmem:[%s3169_s30 + $0x30] sm:$0xff]  ;;  %v211_v48 = vld [vmem:[%s3169_s30 + $0x38] sm:$0xff]  ;;  %s4589_s12 = smov (!%p196_p7, %s3000_s12), 1 }
  0x57   : > { %v3194_v16 = vand.u32 4294901760, %v222_v11  ;;  %v388_v17 = vsub.f32 %v212_v0, %v240_v3  ;;  %v395_v20 = vsub.f32 %v213_v1, %v243_v4  ;;  %v3200_v21 = vand.u32 4294901760, %v225_v12  ;;  %s2600_s16 = sshll.u32 %s4589_s12, 9  ;;  %s3014_s12 = smov 126  }
  0x58   : > { %v3198_v19 = vsub.f32 %v216_v5, %v3184_v9  ;;  %v228_v22 = vsel %vm214_vm0, %v208_v13, 0  ;;  %2770 = vmatprep.subr.bf16.mxu0 %v3190_v14  ;;  %2758 = vmatprep.subr.bf16.mxu1 %v3190_v14  ;;  %v3206_v23 = vsub.f32 %v219_v10, %v3192_v15  ;;  %v231_v30 = vsel %vm214_vm0, %v209_v18, 0  ;;  %s3274_s3 = scalar_lea.vmem %s4568_s2, %s2600_s16  ;;  %s3015_s4 = smov 124  }
  0x59   : > { %v3209_v24 = vsub.f32 %v222_v11, %v3194_v16  ;;  %v389_v25 = vand.u32 4294901760, %v388_v17  ;;  %v3211_v26 = vand.u32 4294901760, %v228_v22  ;;  %2772 = vmatpush3.bf16.msra.mxu0 %v3190_v14  ;;  %2760 = vmatpush3.bf16.msra.mxu1 %v3190_v14  ;;  %v396_v28 = vand.u32 4294901760, %v395_v20  ;;  %s3016_s20 = smov 122   ;;  %s3017_s26 = smov 120  }
  0x5a   : > { %v308_v27 = vand.u32 4294901760, %v3198_v19  ;;  %v3217_v29 = vsub.f32 %v225_v12, %v3200_v21  ;;  %v318_v31 = vand.u32 4294901760, %v3206_v23  ;;  %v3232_v47 = vand.u32 4294901760, %v231_v30  ;;  %s3018_s27 = smov 118   ;;  %s3019_s28 = smov 116  }
  0x5b   : > { %v328_v32 = vand.u32 4294901760, %v3209_v24  ;;  %v390_v33 = vsub.f32 %v388_v17, %v389_v25  ;;  %v3223_v34 = vsub.f32 %v228_v22, %v3211_v26  ;;  %v397_v36 = vsub.f32 %v395_v20, %v396_v28  ;;  %s3020_s5 = smov 114  }
  0x5c   : > { %2713 = vmatprep.mubr.f32.mxu0 %v308_v27  ;;  %v309_v35 = vsub.f32 %v3198_v19, %v308_v27  ;;  %v338_v37 = vand.u32 4294901760, %v3217_v29  ;;  %v2773_v38 = vpack.c.bf16 %v396_v28, %v389_v25  ;;  %v319_v40 = vsub.f32 %v3206_v23, %v318_v31 }
  0x5d   : > { %2714 = vmatmul.mubr.f32.vlgmr.msra.gmra.mrb[0].mxu0 %v318_v31  ;;  %v391_v41 = vand.u32 4294901760, %v390_v33  ;;  %v329_v42 = vsub.f32 %v3209_v24, %v328_v32  ;;  %v348_v43 = vand.u32 4294901760, %v3223_v34  ;;  %v398_v45 = vand.u32 4294901760, %v397_v36 }
  0x5e   : > { %v310_v44 = vand.u32 4294901760, %v309_v35  ;;  %2716 = vmatprep.mubr.f32.mxu0 %v328_v32  ;;  %2774 = vmatprep.subr.bf16.mxu0 %v2773_v38  ;;  %v339_v46 = vsub.f32 %v3217_v29, %v338_v37  ;;  %v320_v49 = vand.u32 4294901760, %v319_v40  ;;  %v234_v52 = vsel %vm214_vm0, %v210_v39, 0 }
  0x5f   : > { %2776 = vmatpush3.bf16.msra.mxu0 %v2773_v38  ;;  %v330_v50 = vand.u32 4294901760, %v329_v42  ;;  %v349_v51 = vsub.f32 %v3223_v34, %v348_v43  ;;  %v2761_v53 = vpack.c.bf16 %v398_v45, %v391_v41  ;;  %v3238_v54 = vsub.f32 %v231_v30, %v3232_v47 }
  0x60   : > { %2665 = vmatprep.mubr.f32.mxu1 %v310_v44  ;;  %v366_v55 = vand.u32 4294901760, %v234_v52  ;;  %2778 = vmatprep.subr.bf16.mxu0 %v3190_v14  ;;  %v340_v56 = vand.u32 4294901760, %v339_v46  ;;  %v237_v57 = vsel %vm214_vm0, %v211_v48, 0  ;;  %v2765_v58 = vpack.c.bf16 %v395_v20, %v388_v17 }
  0x61   : > { %2666 = vmatmul.mubr.f32.vlgmr.msra.gmra.mrb[0].mxu1 %v320_v49  ;;  %2717 = vmatmul.mubr.f32.gmra.mrb[2].mxu0 %v338_v37  ;;  %v358_v59 = vand.u32 4294901760, %v3238_v54  ;;  %v350_v60 = vand.u32 4294901760, %v349_v51  ;;  %v376_v62 = vand.u32 4294901760, %v237_v57  ;;  %vm1957_vm2 = vcmask 15367  }
  0x62   : > { %2762 = vmatprep.subr.bf16.mxu1 %v2761_v53  ;;  %2668 = vmatprep.mubr.f32.mxu1 %v330_v50  ;;  %v367_v61 = vsub.f32 %v234_v52, %v366_v55  ;;  %vm1008_vm3 = vcmask 1041409   ;;  %vm1144_vm4 = vcmask 1042434   ;;  %vm1278_vm5 = vcmask 1043459  }
  0x63   : > { %2764 = vmatpush3.bf16.msra.mxu1 %v2761_v53  ;;  %2719 = vmatprep.mubr.f32.mxu0 %v348_v43  ;;  %v359_v0 = vsub.f32 %v3238_v54, %v358_v59  ;;  %v377_v1 = vsub.f32 %v237_v57, %v376_v62  ;;  %vm1412_vm6 = vcmask 1044484   ;;  %vm1020_vm7 = vcmask 9216  }
  0x64   : > { %v368_v63 = vand.u32 4294901760, %v367_v61  ;;  %2766 = vmatprep.subr.bf16.mxu1 %v2765_v58  ;;  %vm1154_vm8 = vcmask 10241   ;;  %vm1288_vm9 = vcmask 11266   ;;  %vm1422_vm10 = vcmask 12291  }
  0x65   : > { %2669 = vmatmul.mubr.f32.gmra.mrb[2].mxu1 %v340_v56  ;;  %2720 = vmatmul.mubr.f32.gmra.mrb[4].mxu0 %v358_v59  ;;  %v360_v2 = vand.u32 4294901760, %v359_v0  ;;  %v378_v3 = vand.u32 4294901760, %v377_v1  ;;  %vm1546_vm11 = vcmask 1045509   ;;  %vm1680_vm12 = vcmask 1046534  }
  0x66   : > { %2671 = vmatprep.mubr.f32.mxu1 %v350_v60  ;;  %2722 = vmatprep.mubr.f32.mxu0 %v368_v63  ;;  %v369_v4 = vsub.f32 %v367_v61, %v368_v63  ;;  %vm1556_vm13 = vcmask 13316   ;;  %vm1690_vm14 = vcmask 14341   ;;  %vm1814_vm15 = vcmask 1047559  }
  0x67   : > { %v379_v6 = vsub.f32 %v377_v1, %v378_v3  ;;  %vm1824_vm0 = vcmask 15366  }
  0x68   : > { %v370_v5 = vand.u32 4294901760, %v369_v4 }
  0x69   : > { %2672 = vmatmul.mubr.f32.gmra.mrb[4].mxu1 %v360_v2  ;;  %2723 = vmatmul.mubr.f32.gmra.mrb[6].mxu0 %v378_v3  ;;  %v380_v7 = vand.u32 4294901760, %v379_v6 }
  0x6a   : > { %2674 = vmatprep.mubr.f32.mxu1 %v370_v5  ;;  %2729 = vmatprep.mubr.f32.mxu0 %v3184_v9 }
  0x6d   : > { %2675 = vmatmul.mubr.f32.gmra.mrb[6].mxu1 %v380_v7  ;;  %2730 = vmatmul.mubr.f32.vlgmr.msra.gmra.mrb[0].mxu0 %v3192_v15 }
  0x6e   : > { %2681 = vmatprep.mubr.f32.mxu1 %v3184_v9  ;;  %2732 = vmatprep.mubr.f32.mxu0 %v3194_v16 }
  0x6f   : > { %2780 = vmatpush3.bf16.msra.mxu0 %v3190_v14 }
  0x71   : > { %2682 = vmatmul.mubr.f32.vlgmr.msra.gmra.mrb[0].mxu1 %v3192_v15  ;;  %2733 = vmatmul.mubr.f32.gmra.mrb[2].mxu0 %v3200_v21 }
  0x72   : > { %2768 = vmatpush3.bf16.msra.mxu1 %v2765_v58  ;;  %2684 = vmatprep.mubr.f32.mxu1 %v3194_v16 }
  0x73   : > { %2735 = vmatprep.mubr.f32.mxu0 %v3211_v26 }
  0x75   : > { %2685 = vmatmul.mubr.f32.gmra.mrb[2].mxu1 %v3200_v21  ;;  %2736 = vmatmul.mubr.f32.gmra.mrb[4].mxu0 %v3232_v47 }
  0x76   : > { %2687 = vmatprep.mubr.f32.mxu1 %v3211_v26  ;;  %2738 = vmatprep.mubr.f32.mxu0 %v366_v55 }
  0x79   : > { %2688 = vmatmul.mubr.f32.gmra.mrb[4].mxu1 %v3232_v47  ;;  %2739 = vmatmul.mubr.f32.gmra.mrb[6].mxu0 %v376_v62 }
  0x7a   : > { %2690 = vmatprep.mubr.f32.mxu1 %v366_v55  ;;  %2745 = vmatprep.mubr.f32.mxu0 %v3184_v9 }
  0x7d   : > { %2691 = vmatmul.mubr.f32.gmra.mrb[6].mxu1 %v376_v62  ;;  %2746 = vmatmul.mubr.f32.vlgmr.msra.gmra.mrb[0].mxu0 %v3192_v15 }
  0x7e   : > { %2697 = vmatprep.mubr.f32.mxu1 %v3198_v19  ;;  %2748 = vmatprep.mubr.f32.mxu0 %v3194_v16 }
  0x81   : > { %2698 = vmatmul.mubr.f32.vlgmr.msra.gmra.mrb[0].mxu1 %v3206_v23  ;;  %2749 = vmatmul.mubr.f32.gmra.mrb[2].mxu0 %v3200_v21 }
  0x82   : > { %2700 = vmatprep.mubr.f32.mxu1 %v3209_v24  ;;  %2751 = vmatprep.mubr.f32.mxu0 %v3211_v26 }
  0x85   : > { %2701 = vmatmul.mubr.f32.gmra.mrb[2].mxu1 %v3217_v29  ;;  %2752 = vmatmul.mubr.f32.gmra.mrb[4].mxu0 %v3232_v47 }
  0x86   : > { %2703 = vmatprep.mubr.f32.mxu1 %v3223_v34  ;;  %2754 = vmatprep.mubr.f32.mxu0 %v366_v55 }
  0x89   : > { %2704 = vmatmul.mubr.f32.gmra.mrb[4].mxu1 %v3238_v54  ;;  %2755 = vmatmul.mubr.f32.gmra.mrb[6].mxu0 %v376_v62 }
  0x8a   : > { %2706 = vmatprep.mubr.f32.mxu1 %v367_v61 }
  0x8d   : > { %2707 = vmatmul.mubr.f32.gmra.mrb[6].mxu1 %v377_v1 }
 0x150   : > { %v2747_v8 = vpop.f32.mrb[0].mxu0 }
 0x151   : > { %v953_v9 = vpop.f32.mrb[1].mxu0 }
 0x154   : > { %v2699_v10 = vpop.f32.mrb[0].mxu1  ;;  %v2750_v11 = vpop.f32.mrb[2].mxu0 }
 0x155   : > { %v2781_v12 = vadd.f32 %v2747_v8, %v2699_v10  ;;  %v581_v13 = vpop.f32.mrb[1].mxu1  ;;  %v965_v14 = vpop.f32.mrb[3].mxu0 }
 0x156   : > { %v3276_v15 = vadd.f32 %v953_v9, %v581_v13 }
 0x157   : > { %v3278_v16 = vrot.slane %v2781_v12, 7 }
 0x158   : > { %2533 = vst.msk [vmem:[%s3274_s3 + $0x51] sm:$0x80] %vm1957_vm2, %v3276_v15  ;;  %v2702_v17 = vpop.f32.mrb[2].mxu1  ;;  %v2753_v18 = vpop.f32.mrb[4].mxu0 }
 0x159   : > { %2534 = vst.msk [vmem:[%s3274_s3 + $0x59] sm:$0x1] %vm1959_vm1, %v3278_v16  ;;  %v2783_v19 = vadd.f32 %v2750_v11, %v2702_v17  ;;  %v595_v20 = vpop.f32.mrb[3].mxu1  ;;  %v977_v21 = vpop.f32.mrb[5].mxu0  ;;  %v3289_v22 = vsel %vm1008_vm3, %v3278_v16, %v3276_v15  ;;  %v3294_v23 = vsel %vm1144_vm4, %v3278_v16, %v3276_v15  ;;  %v3299_v24 = vsel %vm1278_vm5, %v3278_v16, %v3276_v15 }
 0x15a   : > { %v3301_v25 = vadd.f32 %v965_v14, %v595_v20  ;;  %1025 = vrot.lane.b32.xlu0 %v3289_v22, %s3014_s12  ;;  %1021 = vst.msk [vmem:[%s3274_s3] sm:$0x3] %vm1020_vm7, %v3289_v22  ;;  %v3317_v26 = vsel %vm1412_vm6, %v3278_v16, %v3276_v15  ;;  %v3322_v27 = vsel %vm1546_vm11, %v3278_v16, %v3276_v15 }
 0x15b   : > { %2341 = vst.msk [vmem:[%s3274_s3 + $0x3f] sm:$0x6] %vm1154_vm8, %v3294_v23  ;;  %v3327_v28 = vsel %vm1680_vm12, %v3278_v16, %v3276_v15  ;;  %v3329_v29 = vrot.slane %v2783_v19, 7  ;;  %v3343_v30 = vsel %vm1814_vm15, %v3278_v16, %v3276_v15 }
 0x15c   : > { %2373 = vst.msk [vmem:[%s3274_s3 + $0x6] sm:$0xc] %vm1288_vm9, %v3299_v24  ;;  %v2705_v31 = vpop.f32.mrb[4].mxu1  ;;  %v2756_v32 = vpop.f32.mrb[6].mxu0 }
 0x15d   : > { %2405 = vst.msk [vmem:[%s3274_s3 + $0x45] sm:$0x18] %vm1422_vm10, %v3317_v26  ;;  %v2785_v33 = vadd.f32 %v2753_v18, %v2705_v31  ;;  %v609_v34 = vpop.f32.mrb[5].mxu1  ;;  %v989_v35 = vpop.f32.mrb[7].mxu0  ;;  %v3357_v36 = vsel %vm1008_vm3, %v3329_v29, %v3301_v25  ;;  %v3362_v37 = vsel %vm1144_vm4, %v3329_v29, %v3301_v25  ;;  %v3367_v38 = vsel %vm1278_vm5, %v3329_v29, %v3301_v25 }
 0x15e   : > { %2437 = vst.msk [vmem:[%s3274_s3 + $0xc] sm:$0x30] %vm1556_vm13, %v3322_v27  ;;  %v3369_v39 = vadd.f32 %v977_v21, %v609_v34  ;;  %1042 = vrot.lane.b32.xlu0 %v3289_v22, %s3015_s4  ;;  %1044 = vrot.lane.b32.xlu1 %v3357_v36, %s3015_s4  ;;  %v3387_v40 = vsel %vm1412_vm6, %v3329_v29, %v3301_v25 }
 0x15f   : > { %2469 = vst.msk [vmem:[%s3274_s3 + $0x4b] sm:$0x60] %vm1690_vm14, %v3327_v28  ;;  %v3392_v41 = vsel %vm1546_vm11, %v3329_v29, %v3301_v25  ;;  %v3394_v42 = vrot.slane %v2785_v33, 7  ;;  %v3405_v43 = vsel %vm1680_vm12, %v3329_v29, %v3301_v25  ;;  %v3410_v44 = vsel %vm1814_vm15, %v3329_v29, %v3301_v25 }
 0x160   : > { %2535 = vst.msk [vmem:[%s3274_s3 + $0xd1] sm:$0x80] %vm1957_vm2, %v3301_v25  ;;  %2537 = vst.msk [vmem:[%s3274_s3 + $0x151] sm:$0x80] %vm1957_vm2, %v3369_v39  ;;  %v2708_v45 = vpop.f32.mrb[6].mxu1 }
 0x161   : > { %2501 = vst.msk [vmem:[%s3274_s3 + $0x12] sm:$0xc0] %vm1824_vm0, %v3343_v30  ;;  %2502 = vst.msk [vmem:[%s3274_s3 + $0x92] sm:$0xc0] %vm1824_vm0, %v3410_v44  ;;  %v2787_v46 = vadd.f32 %v2756_v32, %v2708_v45  ;;  %v623_v47 = vpop.f32.mrb[7].mxu1  ;;  %v3427_v48 = vsel %vm1008_vm3, %v3394_v42, %v3369_v39  ;;  %v3432_v49 = vsel %vm1144_vm4, %v3394_v42, %v3369_v39 }
 0x162   : > { %2536 = vst.msk [vmem:[%s3274_s3 + $0xd9] sm:$0x1] %vm1959_vm1, %v3329_v29  ;;  %2538 = vst.msk [vmem:[%s3274_s3 + $0x159] sm:$0x1] %vm1959_vm1, %v3394_v42  ;;  %v3437_v50 = vsel %vm1278_vm5, %v3394_v42, %v3369_v39  ;;  %v3439_v51 = vadd.f32 %v989_v35, %v623_v47  ;;  %1059 = vrot.lane.b32.xlu0 %v3289_v22, %s3016_s20  ;;  %1061 = vrot.lane.b32.xlu1 %v3357_v36, %s3016_s20 }
 0x163   : > { %1022 = vst.msk [vmem:[%s3274_s3 + $0x80] sm:$0x3] %vm1020_vm7, %v3357_v36  ;;  %1023 = vst.msk [vmem:[%s3274_s3 + $0x100] sm:$0x3] %vm1020_vm7, %v3427_v48  ;;  %v3457_v52 = vsel %vm1412_vm6, %v3394_v42, %v3369_v39  ;;  %v3462_v53 = vsel %vm1546_vm11, %v3394_v42, %v3369_v39  ;;  %v3464_v54 = vrot.slane %v2787_v46, 7  ;;  %v3475_v55 = vsel %vm1680_vm12, %v3394_v42, %v3369_v39 }
 0x164   : > { %2342 = vst.msk [vmem:[%s3274_s3 + $0xbf] sm:$0x6] %vm1154_vm8, %v3362_v37  ;;  %2343 = vst.msk [vmem:[%s3274_s3 + $0x13f] sm:$0x6] %vm1154_vm8, %v3432_v49  ;;  %v3480_v56 = vsel %vm1814_vm15, %v3394_v42, %v3369_v39 }
 0x165   : > { %2374 = vst.msk [vmem:[%s3274_s3 + $0x86] sm:$0xc] %vm1288_vm9, %v3367_v38  ;;  %2375 = vst.msk [vmem:[%s3274_s3 + $0x106] sm:$0xc] %vm1288_vm9, %v3437_v50  ;;  %v3497_v57 = vsel %vm1008_vm3, %v3464_v54, %v3439_v51  ;;  %v3502_v58 = vsel %vm1144_vm4, %v3464_v54, %v3439_v51  ;;  %v3507_v59 = vsel %vm1278_vm5, %v3464_v54, %v3439_v51 }
 0x166   : > { %2406 = vst.msk [vmem:[%s3274_s3 + $0xc5] sm:$0x18] %vm1422_vm10, %v3387_v40  ;;  %2407 = vst.msk [vmem:[%s3274_s3 + $0x145] sm:$0x18] %vm1422_vm10, %v3457_v52  ;;  %v3512_v60 = vsel %vm1412_vm6, %v3464_v54, %v3439_v51  ;;  %1076 = vrot.lane.b32.xlu0 %v3289_v22, %s3017_s26  ;;  %1078 = vrot.lane.b32.xlu1 %v3357_v36, %s3017_s26  ;;  %v3533_v61 = vsel %vm1546_vm11, %v3464_v54, %v3439_v51 }
 0x167   : > { %2438 = vst.msk [vmem:[%s3274_s3 + $0x8c] sm:$0x30] %vm1556_vm13, %v3392_v41  ;;  %2439 = vst.msk [vmem:[%s3274_s3 + $0x10c] sm:$0x30] %vm1556_vm13, %v3462_v53  ;;  %v3538_v62 = vsel %vm1680_vm12, %v3464_v54, %v3439_v51  ;;  %v3543_v63 = vsel %vm1814_vm15, %v3464_v54, %v3439_v51 }
 0x168   : > { %2470 = vst.msk [vmem:[%s3274_s3 + $0xcb] sm:$0x60] %vm1690_vm14, %v3405_v43  ;;  %2471 = vst.msk [vmem:[%s3274_s3 + $0x14b] sm:$0x60] %vm1690_vm14, %v3475_v55 }
 0x169   : > { %2539 = vst.msk [vmem:[%s3274_s3 + $0x1d1] sm:$0x80] %vm1957_vm2, %v3439_v51 }
 0x16a   : > { %2503 = vst.msk [vmem:[%s3274_s3 + $0x112] sm:$0xc0] %vm1824_vm0, %v3480_v56  ;;  %2504 = vst.msk [vmem:[%s3274_s3 + $0x192] sm:$0xc0] %vm1824_vm0, %v3543_v63  ;;  %1093 = vrot.lane.b32.xlu0 %v3289_v22, %s3018_s27  ;;  %1095 = vrot.lane.b32.xlu1 %v3357_v36, %s3018_s27 }
 0x16b   : > { %2540 = vst.msk [vmem:[%s3274_s3 + $0x1d9] sm:$0x1] %vm1959_vm1, %v3464_v54 }
 0x16c   : > { %1024 = vst.msk [vmem:[%s3274_s3 + $0x180] sm:$0x3] %vm1020_vm7, %v3497_v57 }
 0x16d   : > { %2344 = vst.msk [vmem:[%s3274_s3 + $0x1bf] sm:$0x6] %vm1154_vm8, %v3502_v58 }
 0x16e   : > { %2376 = vst.msk [vmem:[%s3274_s3 + $0x186] sm:$0xc] %vm1288_vm9, %v3507_v59  ;;  %1110 = vrot.lane.b32.xlu0 %v3289_v22, %s3019_s28  ;;  %1112 = vrot.lane.b32.xlu1 %v3357_v36, %s3019_s28 }
 0x16f   : > { %2408 = vst.msk [vmem:[%s3274_s3 + $0x1c5] sm:$0x18] %vm1422_vm10, %v3512_v60 }
 0x170   : > { %2440 = vst.msk [vmem:[%s3274_s3 + $0x18c] sm:$0x30] %vm1556_vm13, %v3533_v61 }
 0x171   : > { %2472 = vst.msk [vmem:[%s3274_s3 + $0x1cb] sm:$0x60] %vm1690_vm14, %v3538_v62 }
 0x172   : > { %1127 = vrot.lane.b32.xlu0 %v3289_v22, %s3020_s5  ;;  %1129 = vrot.lane.b32.xlu1 %v3357_v36, %s3020_s5 }
 0x176   : > { %1159 = vrot.lane.b32.xlu0 %v3294_v23, %s3014_s12  ;;  %1161 = vrot.lane.b32.xlu1 %v3362_v37, %s3014_s12 }
 0x17a   : > { %1176 = vrot.lane.b32.xlu0 %v3294_v23, %s3015_s4  ;;  %1178 = vrot.lane.b32.xlu1 %v3362_v37, %s3015_s4 }
 0x17e   : > { %1193 = vrot.lane.b32.xlu0 %v3294_v23, %s3016_s20  ;;  %1195 = vrot.lane.b32.xlu1 %v3362_v37, %s3016_s20 }
 0x182   : > { %1210 = vrot.lane.b32.xlu0 %v3294_v23, %s3017_s26  ;;  %1212 = vrot.lane.b32.xlu1 %v3362_v37, %s3017_s26 }
 0x186   : > { %1227 = vrot.lane.b32.xlu0 %v3294_v23, %s3018_s27  ;;  %1229 = vrot.lane.b32.xlu1 %v3362_v37, %s3018_s27 }
 0x18a   : > { %1244 = vrot.lane.b32.xlu0 %v3294_v23, %s3019_s28  ;;  %1246 = vrot.lane.b32.xlu1 %v3362_v37, %s3019_s28 }
 0x18e   : > { %1261 = vrot.lane.b32.xlu0 %v3294_v23, %s3020_s5  ;;  %1263 = vrot.lane.b32.xlu1 %v3362_v37, %s3020_s5 }
 0x192   : > { %1293 = vrot.lane.b32.xlu0 %v3299_v24, %s3014_s12  ;;  %1295 = vrot.lane.b32.xlu1 %v3367_v38, %s3014_s12 }
 0x196   : > { %1310 = vrot.lane.b32.xlu0 %v3299_v24, %s3015_s4  ;;  %1312 = vrot.lane.b32.xlu1 %v3367_v38, %s3015_s4 }
 0x19a   : > { %1327 = vrot.lane.b32.xlu0 %v3299_v24, %s3016_s20  ;;  %1329 = vrot.lane.b32.xlu1 %v3367_v38, %s3016_s20 }
 0x19e   : > { %1344 = vrot.lane.b32.xlu0 %v3299_v24, %s3017_s26  ;;  %1346 = vrot.lane.b32.xlu1 %v3367_v38, %s3017_s26 }
 0x1a2   : > { %1361 = vrot.lane.b32.xlu0 %v3299_v24, %s3018_s27  ;;  %1363 = vrot.lane.b32.xlu1 %v3367_v38, %s3018_s27 }
 0x1a6   : > { %1378 = vrot.lane.b32.xlu0 %v3299_v24, %s3019_s28  ;;  %1380 = vrot.lane.b32.xlu1 %v3367_v38, %s3019_s28 }
 0x1aa   : > { %1395 = vrot.lane.b32.xlu0 %v3299_v24, %s3020_s5  ;;  %1397 = vrot.lane.b32.xlu1 %v3367_v38, %s3020_s5 }
 0x1ae   : > { %1427 = vrot.lane.b32.xlu0 %v3317_v26, %s3014_s12  ;;  %1429 = vrot.lane.b32.xlu1 %v3387_v40, %s3014_s12 }
 0x1b2   : > { %1444 = vrot.lane.b32.xlu0 %v3317_v26, %s3015_s4  ;;  %1446 = vrot.lane.b32.xlu1 %v3387_v40, %s3015_s4 }
 0x1b6   : > { %1461 = vrot.lane.b32.xlu0 %v3317_v26, %s3016_s20  ;;  %1463 = vrot.lane.b32.xlu1 %v3387_v40, %s3016_s20 }
 0x1ba   : > { %1478 = vrot.lane.b32.xlu0 %v3317_v26, %s3017_s26  ;;  %1480 = vrot.lane.b32.xlu1 %v3387_v40, %s3017_s26 }
 0x1be   : > { %1495 = vrot.lane.b32.xlu0 %v3317_v26, %s3018_s27  ;;  %1497 = vrot.lane.b32.xlu1 %v3387_v40, %s3018_s27 }
 0x1c2   : > { %1512 = vrot.lane.b32.xlu0 %v3317_v26, %s3019_s28  ;;  %1514 = vrot.lane.b32.xlu1 %v3387_v40, %s3019_s28 }
 0x1c6   : > { %1529 = vrot.lane.b32.xlu0 %v3317_v26, %s3020_s5  ;;  %1531 = vrot.lane.b32.xlu1 %v3387_v40, %s3020_s5 }
 0x1ca   : > { %1561 = vrot.lane.b32.xlu0 %v3322_v27, %s3014_s12  ;;  %1563 = vrot.lane.b32.xlu1 %v3392_v41, %s3014_s12 }
 0x1cc   : > { %v1026_v0 = vpop.permute.xlu0 %1025 }
 0x1cd   : > { %2313 = vst.msk [vmem:[%s3274_s3 + $0x20] sm:$0x3] %vm1020_vm7, %v1026_v0 }
 0x1ce   : > { %1578 = vrot.lane.b32.xlu0 %v3322_v27, %s3015_s4  ;;  %1580 = vrot.lane.b32.xlu1 %v3392_v41, %s3015_s4 }
 0x1d0   : > { %v1043_v1 = vpop.permute.xlu0 %1042  ;;  %v1045_v2 = vpop.permute.xlu1 %1044 }
 0x1d1   : > { %2317 = vst.msk [vmem:[%s3274_s3 + $0x2] sm:$0x3] %vm1020_vm7, %v1043_v1  ;;  %2318 = vst.msk [vmem:[%s3274_s3 + $0x82] sm:$0x3] %vm1020_vm7, %v1045_v2 }
 0x1d2   : > { %1595 = vrot.lane.b32.xlu0 %v3322_v27, %s3016_s20  ;;  %1597 = vrot.lane.b32.xlu1 %v3392_v41, %s3016_s20 }
 0x1d4   : > { %v1060_v3 = vpop.permute.xlu0 %1059  ;;  %v1062_v4 = vpop.permute.xlu1 %1061 }
 0x1d5   : > { %2321 = vst.msk [vmem:[%s3274_s3 + $0x22] sm:$0x3] %vm1020_vm7, %v1060_v3  ;;  %2322 = vst.msk [vmem:[%s3274_s3 + $0xa2] sm:$0x3] %vm1020_vm7, %v1062_v4 }
 0x1d6   : > { %1612 = vrot.lane.b32.xlu0 %v3322_v27, %s3017_s26  ;;  %1614 = vrot.lane.b32.xlu1 %v3392_v41, %s3017_s26 }
 0x1d8   : > { %v1077_v5 = vpop.permute.xlu0 %1076  ;;  %v1079_v6 = vpop.permute.xlu1 %1078 }
 0x1d9   : > { %2325 = vst.msk [vmem:[%s3274_s3 + $0x4] sm:$0x3] %vm1020_vm7, %v1077_v5  ;;  %2326 = vst.msk [vmem:[%s3274_s3 + $0x84] sm:$0x3] %vm1020_vm7, %v1079_v6 }
 0x1da   : > { %1629 = vrot.lane.b32.xlu0 %v3322_v27, %s3018_s27  ;;  %1631 = vrot.lane.b32.xlu1 %v3392_v41, %s3018_s27 }
 0x1dc   : > { %v1094_v7 = vpop.permute.xlu0 %1093  ;;  %v1096_v8 = vpop.permute.xlu1 %1095 }
 0x1dd   : > { %2329 = vst.msk [vmem:[%s3274_s3 + $0x24] sm:$0x3] %vm1020_vm7, %v1094_v7  ;;  %2330 = vst.msk [vmem:[%s3274_s3 + $0xa4] sm:$0x3] %vm1020_vm7, %v1096_v8 }
 0x1de   : > { %1646 = vrot.lane.b32.xlu0 %v3322_v27, %s3019_s28  ;;  %1648 = vrot.lane.b32.xlu1 %v3392_v41, %s3019_s28 }
 0x1e0   : > { %v1111_v9 = vpop.permute.xlu0 %1110  ;;  %v1113_v10 = vpop.permute.xlu1 %1112 }
 0x1e1   : > { %2333 = vst.msk [vmem:[%s3274_s3 + $0x6] sm:$0x3] %vm1020_vm7, %v1111_v9  ;;  %2334 = vst.msk [vmem:[%s3274_s3 + $0x86] sm:$0x3] %vm1020_vm7, %v1113_v10 }
 0x1e2   : > { %1663 = vrot.lane.b32.xlu0 %v3322_v27, %s3020_s5  ;;  %1665 = vrot.lane.b32.xlu1 %v3392_v41, %s3020_s5 }
 0x1e4   : > { %v1128_v11 = vpop.permute.xlu0 %1127  ;;  %v1130_v12 = vpop.permute.xlu1 %1129 }
 0x1e5   : > { %2337 = vst.msk [vmem:[%s3274_s3 + $0x26] sm:$0x3] %vm1020_vm7, %v1128_v11  ;;  %2338 = vst.msk [vmem:[%s3274_s3 + $0xa6] sm:$0x3] %vm1020_vm7, %v1130_v12 }
 0x1e6   : > { %1027 = vrot.lane.b32.xlu0 %v3357_v36, %s3014_s12  ;;  %1029 = vrot.lane.b32.xlu1 %v3427_v48, %s3014_s12 }
 0x1e8   : > { %v1160_v13 = vpop.permute.xlu0 %1159  ;;  %v1162_v14 = vpop.permute.xlu1 %1161 }
 0x1e9   : > { %2345 = vst.msk [vmem:[%s3274_s3 + $0x5f] sm:$0x6] %vm1154_vm8, %v1160_v13  ;;  %2346 = vst.msk [vmem:[%s3274_s3 + $0xdf] sm:$0x6] %vm1154_vm8, %v1162_v14 }
 0x1ea   : > { %1046 = vrot.lane.b32.xlu0 %v3427_v48, %s3015_s4  ;;  %1697 = vrot.lane.b32.xlu1 %v3405_v43, %s3014_s12 }
 0x1ec   : > { %v1177_v17 = vpop.permute.xlu0 %1176  ;;  %v1179_v18 = vpop.permute.xlu1 %1178 }
 0x1ed   : > { %2349 = vst.msk [vmem:[%s3274_s3 + $0x41] sm:$0x6] %vm1154_vm8, %v1177_v17  ;;  %2350 = vst.msk [vmem:[%s3274_s3 + $0xc1] sm:$0x6] %vm1154_vm8, %v1179_v18 }
 0x1ee   : > { %1063 = vrot.lane.b32.xlu0 %v3427_v48, %s3016_s20  ;;  %1031 = vrot.lane.b32.xlu1 %v3497_v57, %s3014_s12 }
 0x1f0   : > { %v1194_v19 = vpop.permute.xlu0 %1193  ;;  %v1196_v20 = vpop.permute.xlu1 %1195 }
 0x1f1   : > { %2353 = vst.msk [vmem:[%s3274_s3 + $0x61] sm:$0x6] %vm1154_vm8, %v1194_v19  ;;  %2354 = vst.msk [vmem:[%s3274_s3 + $0xe1] sm:$0x6] %vm1154_vm8, %v1196_v20 }
 0x1f2   : > { %1080 = vrot.lane.b32.xlu0 %v3427_v48, %s3017_s26  ;;  %1048 = vrot.lane.b32.xlu1 %v3497_v57, %s3015_s4 }
 0x1f4   : > { %v1211_v21 = vpop.permute.xlu0 %1210  ;;  %v1213_v22 = vpop.permute.xlu1 %1212 }
 0x1f5   : > { %2357 = vst.msk [vmem:[%s3274_s3 + $0x43] sm:$0x6] %vm1154_vm8, %v1211_v21  ;;  %2358 = vst.msk [vmem:[%s3274_s3 + $0xc3] sm:$0x6] %vm1154_vm8, %v1213_v22 }
 0x1f6   : > { %1097 = vrot.lane.b32.xlu0 %v3427_v48, %s3018_s27  ;;  %1065 = vrot.lane.b32.xlu1 %v3497_v57, %s3016_s20 }
 0x1f8   : > { %v1228_v23 = vpop.permute.xlu0 %1227  ;;  %v1230_v24 = vpop.permute.xlu1 %1229 }
 0x1f9   : > { %2361 = vst.msk [vmem:[%s3274_s3 + $0x63] sm:$0x6] %vm1154_vm8, %v1228_v23  ;;  %2362 = vst.msk [vmem:[%s3274_s3 + $0xe3] sm:$0x6] %vm1154_vm8, %v1230_v24 }
 0x1fa   : > { %1114 = vrot.lane.b32.xlu0 %v3427_v48, %s3019_s28  ;;  %1082 = vrot.lane.b32.xlu1 %v3497_v57, %s3017_s26 }
 0x1fc   : > { %v1245_v26 = vpop.permute.xlu0 %1244  ;;  %v1247_v27 = vpop.permute.xlu1 %1246 }
 0x1fd   : > { %2365 = vst.msk [vmem:[%s3274_s3 + $0x45] sm:$0x6] %vm1154_vm8, %v1245_v26  ;;  %2366 = vst.msk [vmem:[%s3274_s3 + $0xc5] sm:$0x6] %vm1154_vm8, %v1247_v27 }
 0x1fe   : > { %1131 = vrot.lane.b32.xlu0 %v3427_v48, %s3020_s5  ;;  %1099 = vrot.lane.b32.xlu1 %v3497_v57, %s3018_s27 }
 0x200   : > { %v1262_v31 = vpop.permute.xlu0 %1261  ;;  %v1264_v32 = vpop.permute.xlu1 %1263 }
 0x201   : > { %2369 = vst.msk [vmem:[%s3274_s3 + $0x65] sm:$0x6] %vm1154_vm8, %v1262_v31  ;;  %2370 = vst.msk [vmem:[%s3274_s3 + $0xe5] sm:$0x6] %vm1154_vm8, %v1264_v32 }
 0x202   : > { %1163 = vrot.lane.b32.xlu0 %v3432_v49, %s3014_s12  ;;  %1116 = vrot.lane.b32.xlu1 %v3497_v57, %s3019_s28 }
 0x204   : > { %v1294_v33 = vpop.permute.xlu0 %1293  ;;  %v1296_v34 = vpop.permute.xlu1 %1295 }
 0x205   : > { %2377 = vst.msk [vmem:[%s3274_s3 + $0x26] sm:$0xc] %vm1288_vm9, %v1294_v33  ;;  %2378 = vst.msk [vmem:[%s3274_s3 + $0xa6] sm:$0xc] %vm1288_vm9, %v1296_v34 }
 0x206   : > { %1180 = vrot.lane.b32.xlu0 %v3432_v49, %s3015_s4  ;;  %1133 = vrot.lane.b32.xlu1 %v3497_v57, %s3020_s5 }
 0x208   : > { %v1311_v35 = vpop.permute.xlu0 %1310  ;;  %v1313_v36 = vpop.permute.xlu1 %1312 }
 0x209   : > { %2381 = vst.msk [vmem:[%s3274_s3 + $0x8] sm:$0xc] %vm1288_vm9, %v1311_v35  ;;  %2382 = vst.msk [vmem:[%s3274_s3 + $0x88] sm:$0xc] %vm1288_vm9, %v1313_v36 }
 0x20a   : > { %1197 = vrot.lane.b32.xlu0 %v3432_v49, %s3016_s20  ;;  %1165 = vrot.lane.b32.xlu1 %v3502_v58, %s3014_s12 }
 0x20c   : > { %v1328_v37 = vpop.permute.xlu0 %1327  ;;  %v1330_v38 = vpop.permute.xlu1 %1329 }
 0x20d   : > { %2385 = vst.msk [vmem:[%s3274_s3 + $0x28] sm:$0xc] %vm1288_vm9, %v1328_v37  ;;  %2386 = vst.msk [vmem:[%s3274_s3 + $0xa8] sm:$0xc] %vm1288_vm9, %v1330_v38 }
 0x20e   : > { %1214 = vrot.lane.b32.xlu0 %v3432_v49, %s3017_s26  ;;  %1182 = vrot.lane.b32.xlu1 %v3502_v58, %s3015_s4 }
 0x210   : > { %v1345_v40 = vpop.permute.xlu0 %1344  ;;  %v1347_v41 = vpop.permute.xlu1 %1346 }
 0x211   : > { %2389 = vst.msk [vmem:[%s3274_s3 + $0xa] sm:$0xc] %vm1288_vm9, %v1345_v40  ;;  %2390 = vst.msk [vmem:[%s3274_s3 + $0x8a] sm:$0xc] %vm1288_vm9, %v1347_v41 }
 0x212   : > { %1231 = vrot.lane.b32.xlu0 %v3432_v49, %s3018_s27  ;;  %1199 = vrot.lane.b32.xlu1 %v3502_v58, %s3016_s20 }
 0x214   : > { %v1362_v45 = vpop.permute.xlu0 %1361  ;;  %v1364_v46 = vpop.permute.xlu1 %1363 }
 0x215   : > { %2393 = vst.msk [vmem:[%s3274_s3 + $0x2a] sm:$0xc] %vm1288_vm9, %v1362_v45  ;;  %2394 = vst.msk [vmem:[%s3274_s3 + $0xaa] sm:$0xc] %vm1288_vm9, %v1364_v46 }
 0x216   : > { %1248 = vrot.lane.b32.xlu0 %v3432_v49, %s3019_s28  ;;  %1216 = vrot.lane.b32.xlu1 %v3502_v58, %s3017_s26 }
 0x218   : > { %v1379_v47 = vpop.permute.xlu0 %1378  ;;  %v1381_v48 = vpop.permute.xlu1 %1380 }
 0x219   : > { %2397 = vst.msk [vmem:[%s3274_s3 + $0xc] sm:$0xc] %vm1288_vm9, %v1379_v47  ;;  %2398 = vst.msk [vmem:[%s3274_s3 + $0x8c] sm:$0xc] %vm1288_vm9, %v1381_v48 }
 0x21a   : > { %1265 = vrot.lane.b32.xlu0 %v3432_v49, %s3020_s5  ;;  %1233 = vrot.lane.b32.xlu1 %v3502_v58, %s3018_s27 }
 0x21c   : > { %v1396_v57 = vpop.permute.xlu0 %1395  ;;  %v1398_v0 = vpop.permute.xlu1 %1397 }
 0x21d   : > { %2401 = vst.msk [vmem:[%s3274_s3 + $0x2c] sm:$0xc] %vm1288_vm9, %v1396_v57  ;;  %2402 = vst.msk [vmem:[%s3274_s3 + $0xac] sm:$0xc] %vm1288_vm9, %v1398_v0 }
 0x21e   : > { %1297 = vrot.lane.b32.xlu0 %v3437_v50, %s3014_s12  ;;  %1250 = vrot.lane.b32.xlu1 %v3502_v58, %s3019_s28 }
 0x220   : > { %v1428_v49 = vpop.permute.xlu0 %1427  ;;  %v1430_v1 = vpop.permute.xlu1 %1429 }
 0x221   : > { %2409 = vst.msk [vmem:[%s3274_s3 + $0x65] sm:$0x18] %vm1422_vm10, %v1428_v49  ;;  %2410 = vst.msk [vmem:[%s3274_s3 + $0xe5] sm:$0x18] %vm1422_vm10, %v1430_v1 }
 0x222   : > { %1314 = vrot.lane.b32.xlu0 %v3437_v50, %s3015_s4  ;;  %1267 = vrot.lane.b32.xlu1 %v3502_v58, %s3020_s5 }
 0x224   : > { %v1445_v2 = vpop.permute.xlu0 %1444  ;;  %v1447_v3 = vpop.permute.xlu1 %1446 }
 0x225   : > { %2413 = vst.msk [vmem:[%s3274_s3 + $0x47] sm:$0x18] %vm1422_vm10, %v1445_v2  ;;  %2414 = vst.msk [vmem:[%s3274_s3 + $0xc7] sm:$0x18] %vm1422_vm10, %v1447_v3 }
 0x226   : > { %1331 = vrot.lane.b32.xlu0 %v3437_v50, %s3016_s20  ;;  %1299 = vrot.lane.b32.xlu1 %v3507_v59, %s3014_s12 }
 0x228   : > { %v1462_v4 = vpop.permute.xlu0 %1461  ;;  %v1464_v5 = vpop.permute.xlu1 %1463 }
 0x229   : > { %2417 = vst.msk [vmem:[%s3274_s3 + $0x67] sm:$0x18] %vm1422_vm10, %v1462_v4  ;;  %2418 = vst.msk [vmem:[%s3274_s3 + $0xe7] sm:$0x18] %vm1422_vm10, %v1464_v5 }
 0x22a   : > { %1348 = vrot.lane.b32.xlu0 %v3437_v50, %s3017_s26  ;;  %1316 = vrot.lane.b32.xlu1 %v3507_v59, %s3015_s4 }
 0x22c   : > { %v1479_v58 = vpop.permute.xlu0 %1478  ;;  %v1481_v6 = vpop.permute.xlu1 %1480 }
 0x22d   : > { %2421 = vst.msk [vmem:[%s3274_s3 + $0x49] sm:$0x18] %vm1422_vm10, %v1479_v58  ;;  %2422 = vst.msk [vmem:[%s3274_s3 + $0xc9] sm:$0x18] %vm1422_vm10, %v1481_v6 }
 0x22e   : > { %1365 = vrot.lane.b32.xlu0 %v3437_v50, %s3018_s27  ;;  %1333 = vrot.lane.b32.xlu1 %v3507_v59, %s3016_s20 }
 0x230   : > { %v1496_v7 = vpop.permute.xlu0 %1495  ;;  %v1498_v8 = vpop.permute.xlu1 %1497 }
 0x231   : > { %2425 = vst.msk [vmem:[%s3274_s3 + $0x69] sm:$0x18] %vm1422_vm10, %v1496_v7  ;;  %2426 = vst.msk [vmem:[%s3274_s3 + $0xe9] sm:$0x18] %vm1422_vm10, %v1498_v8 }
 0x232   : > { %1382 = vrot.lane.b32.xlu0 %v3437_v50, %s3019_s28  ;;  %1350 = vrot.lane.b32.xlu1 %v3507_v59, %s3017_s26 }
 0x234   : > { %v1513_v9 = vpop.permute.xlu0 %1512  ;;  %v1515_v10 = vpop.permute.xlu1 %1514 }
 0x235   : > { %2429 = vst.msk [vmem:[%s3274_s3 + $0x4b] sm:$0x18] %vm1422_vm10, %v1513_v9  ;;  %2430 = vst.msk [vmem:[%s3274_s3 + $0xcb] sm:$0x18] %vm1422_vm10, %v1515_v10 }
 0x236   : > { %1399 = vrot.lane.b32.xlu0 %v3437_v50, %s3020_s5  ;;  %1367 = vrot.lane.b32.xlu1 %v3507_v59, %s3018_s27 }
 0x238   : > { %v1530_v11 = vpop.permute.xlu0 %1529  ;;  %v1532_v12 = vpop.permute.xlu1 %1531 }
 0x239   : > { %2433 = vst.msk [vmem:[%s3274_s3 + $0x6b] sm:$0x18] %vm1422_vm10, %v1530_v11  ;;  %2434 = vst.msk [vmem:[%s3274_s3 + $0xeb] sm:$0x18] %vm1422_vm10, %v1532_v12 }
 0x23a   : > { %1431 = vrot.lane.b32.xlu0 %v3457_v52, %s3014_s12  ;;  %1384 = vrot.lane.b32.xlu1 %v3507_v59, %s3019_s28 }
 0x23c   : > { %v1562_v50 = vpop.permute.xlu0 %1561  ;;  %v1564_v13 = vpop.permute.xlu1 %1563 }
 0x23d   : > { %2441 = vst.msk [vmem:[%s3274_s3 + $0x2c] sm:$0x30] %vm1556_vm13, %v1562_v50  ;;  %2442 = vst.msk [vmem:[%s3274_s3 + $0xac] sm:$0x30] %vm1556_vm13, %v1564_v13 }
 0x23e   : > { %1448 = vrot.lane.b32.xlu0 %v3457_v52, %s3015_s4  ;;  %1401 = vrot.lane.b32.xlu1 %v3507_v59, %s3020_s5 }
 0x240   : > { %v1579_v14 = vpop.permute.xlu0 %1578  ;;  %v1581_v17 = vpop.permute.xlu1 %1580 }
 0x241   : > { %2445 = vst.msk [vmem:[%s3274_s3 + $0xe] sm:$0x30] %vm1556_vm13, %v1579_v14  ;;  %2446 = vst.msk [vmem:[%s3274_s3 + $0x8e] sm:$0x30] %vm1556_vm13, %v1581_v17 }
 0x242   : > { %1465 = vrot.lane.b32.xlu0 %v3457_v52, %s3016_s20  ;;  %1433 = vrot.lane.b32.xlu1 %v3512_v60, %s3014_s12 }
 0x244   : > { %v1596_v18 = vpop.permute.xlu0 %1595  ;;  %v1598_v19 = vpop.permute.xlu1 %1597 }
 0x245   : > { %2449 = vst.msk [vmem:[%s3274_s3 + $0x2e] sm:$0x30] %vm1556_vm13, %v1596_v18  ;;  %2450 = vst.msk [vmem:[%s3274_s3 + $0xae] sm:$0x30] %vm1556_vm13, %v1598_v19 }
 0x246   : > { %1482 = vrot.lane.b32.xlu0 %v3457_v52, %s3017_s26  ;;  %1450 = vrot.lane.b32.xlu1 %v3512_v60, %s3015_s4 }
 0x248   : > { %v1613_v59 = vpop.permute.xlu0 %1612  ;;  %v1615_v20 = vpop.permute.xlu1 %1614 }
 0x249   : > { %2453 = vst.msk [vmem:[%s3274_s3 + $0x10] sm:$0x30] %vm1556_vm13, %v1613_v59  ;;  %2454 = vst.msk [vmem:[%s3274_s3 + $0x90] sm:$0x30] %vm1556_vm13, %v1615_v20 }
 0x24a   : > { %1499 = vrot.lane.b32.xlu0 %v3457_v52, %s3018_s27  ;;  %1467 = vrot.lane.b32.xlu1 %v3512_v60, %s3016_s20 }
 0x24c   : > { %v1630_v21 = vpop.permute.xlu0 %1629  ;;  %v1632_v22 = vpop.permute.xlu1 %1631 }
 0x24d   : > { %2457 = vst.msk [vmem:[%s3274_s3 + $0x30] sm:$0x30] %vm1556_vm13, %v1630_v21  ;;  %2458 = vst.msk [vmem:[%s3274_s3 + $0xb0] sm:$0x30] %vm1556_vm13, %v1632_v22 }
 0x24e   : > { %1516 = vrot.lane.b32.xlu0 %v3457_v52, %s3019_s28  ;;  %1484 = vrot.lane.b32.xlu1 %v3512_v60, %s3017_s26 }
 0x250   : > { %v1647_v23 = vpop.permute.xlu0 %1646  ;;  %v1649_v24 = vpop.permute.xlu1 %1648 }
 0x251   : > { %2461 = vst.msk [vmem:[%s3274_s3 + $0x12] sm:$0x30] %vm1556_vm13, %v1647_v23  ;;  %2462 = vst.msk [vmem:[%s3274_s3 + $0x92] sm:$0x30] %vm1556_vm13, %v1649_v24 }
 0x252   : > { %1533 = vrot.lane.b32.xlu0 %v3457_v52, %s3020_s5  ;;  %1501 = vrot.lane.b32.xlu1 %v3512_v60, %s3018_s27 }
 0x254   : > { %v1664_v26 = vpop.permute.xlu0 %1663  ;;  %v1666_v27 = vpop.permute.xlu1 %1665 }
 0x255   : > { %2465 = vst.msk [vmem:[%s3274_s3 + $0x32] sm:$0x30] %vm1556_vm13, %v1664_v26  ;;  %2466 = vst.msk [vmem:[%s3274_s3 + $0xb2] sm:$0x30] %vm1556_vm13, %v1666_v27 }
 0x256   : > { %1565 = vrot.lane.b32.xlu0 %v3462_v53, %s3014_s12  ;;  %1518 = vrot.lane.b32.xlu1 %v3512_v60, %s3019_s28 }
 0x258   : > { %v1028_v52 = vpop.permute.xlu0 %1027  ;;  %v1030_v31 = vpop.permute.xlu1 %1029 }
 0x259   : > { %2314 = vst.msk [vmem:[%s3274_s3 + $0xa0] sm:$0x3] %vm1020_vm7, %v1028_v52  ;;  %2315 = vst.msk [vmem:[%s3274_s3 + $0x120] sm:$0x3] %vm1020_vm7, %v1030_v31 }
 0x25a   : > { %1582 = vrot.lane.b32.xlu0 %v3462_v53, %s3015_s4  ;;  %1535 = vrot.lane.b32.xlu1 %v3512_v60, %s3020_s5 }
 0x25c   : > { %v1047_v32 = vpop.permute.xlu0 %1046  ;;  %v1698_v33 = vpop.permute.xlu1 %1697 }
 0x25d   : > { %2319 = vst.msk [vmem:[%s3274_s3 + $0x102] sm:$0x3] %vm1020_vm7, %v1047_v32 }
 0x25e   : > { %2474 = vst.msk [vmem:[%s3274_s3 + $0xeb] sm:$0x60] %vm1690_vm14, %v1698_v33  ;;  %1599 = vrot.lane.b32.xlu0 %v3462_v53, %s3016_s20  ;;  %1567 = vrot.lane.b32.xlu1 %v3533_v61, %s3014_s12 }
 0x260   : > { %v1064_v34 = vpop.permute.xlu0 %1063  ;;  %v1032_v35 = vpop.permute.xlu1 %1031 }
 0x261   : > { %2323 = vst.msk [vmem:[%s3274_s3 + $0x122] sm:$0x3] %vm1020_vm7, %v1064_v34  ;;  %2316 = vst.msk [vmem:[%s3274_s3 + $0x1a0] sm:$0x3] %vm1020_vm7, %v1032_v35 }
 0x262   : > { %1616 = vrot.lane.b32.xlu0 %v3462_v53, %s3017_s26  ;;  %1584 = vrot.lane.b32.xlu1 %v3533_v61, %s3015_s4 }
 0x264   : > { %v1081_v60 = vpop.permute.xlu0 %1080  ;;  %v1049_v36 = vpop.permute.xlu1 %1048 }
 0x265   : > { %2327 = vst.msk [vmem:[%s3274_s3 + $0x104] sm:$0x3] %vm1020_vm7, %v1081_v60  ;;  %2320 = vst.msk [vmem:[%s3274_s3 + $0x182] sm:$0x3] %vm1020_vm7, %v1049_v36 }
 0x266   : > { %1633 = vrot.lane.b32.xlu0 %v3462_v53, %s3018_s27  ;;  %1601 = vrot.lane.b32.xlu1 %v3533_v61, %s3016_s20 }
 0x268   : > { %v1098_v37 = vpop.permute.xlu0 %1097  ;;  %v1066_v38 = vpop.permute.xlu1 %1065 }
 0x269   : > { %2331 = vst.msk [vmem:[%s3274_s3 + $0x124] sm:$0x3] %vm1020_vm7, %v1098_v37  ;;  %2324 = vst.msk [vmem:[%s3274_s3 + $0x1a2] sm:$0x3] %vm1020_vm7, %v1066_v38 }
 0x26a   : > { %1650 = vrot.lane.b32.xlu0 %v3462_v53, %s3019_s28  ;;  %1618 = vrot.lane.b32.xlu1 %v3533_v61, %s3017_s26 }
 0x26c   : > { %v1115_v40 = vpop.permute.xlu0 %1114  ;;  %v1083_v41 = vpop.permute.xlu1 %1082 }
 0x26d   : > { %2335 = vst.msk [vmem:[%s3274_s3 + $0x106] sm:$0x3] %vm1020_vm7, %v1115_v40  ;;  %2328 = vst.msk [vmem:[%s3274_s3 + $0x184] sm:$0x3] %vm1020_vm7, %v1083_v41 }
 0x26e   : > { %1667 = vrot.lane.b32.xlu0 %v3462_v53, %s3020_s5  ;;  %1635 = vrot.lane.b32.xlu1 %v3533_v61, %s3018_s27 }
 0x270   : > { %v1132_v45 = vpop.permute.xlu0 %1131  ;;  %v1100_v46 = vpop.permute.xlu1 %1099 }
 0x271   : > { %2339 = vst.msk [vmem:[%s3274_s3 + $0x126] sm:$0x3] %vm1020_vm7, %v1132_v45  ;;  %2332 = vst.msk [vmem:[%s3274_s3 + $0x1a4] sm:$0x3] %vm1020_vm7, %v1100_v46 }
 0x272   : > { %1695 = vrot.lane.b32.xlu0 %v3327_v28, %s3014_s12  ;;  %1652 = vrot.lane.b32.xlu1 %v3533_v61, %s3019_s28 }
 0x274   : > { %v1164_v53 = vpop.permute.xlu0 %1163  ;;  %v1117_v47 = vpop.permute.xlu1 %1116 }
 0x275   : > { %2347 = vst.msk [vmem:[%s3274_s3 + $0x15f] sm:$0x6] %vm1154_vm8, %v1164_v53 }
 0x276   : > { %2336 = vst.msk [vmem:[%s3274_s3 + $0x186] sm:$0x3] %vm1020_vm7, %v1117_v47  ;;  %1699 = vrot.lane.b32.xlu0 %v3475_v55, %s3014_s12  ;;  %1669 = vrot.lane.b32.xlu1 %v3533_v61, %s3020_s5 }
 0x278   : > { %v1181_v48 = vpop.permute.xlu0 %1180  ;;  %v1134_v57 = vpop.permute.xlu1 %1133 }
 0x279   : > { %2351 = vst.msk [vmem:[%s3274_s3 + $0x141] sm:$0x6] %vm1154_vm8, %v1181_v48 }
 0x27a   : > { %2340 = vst.msk [vmem:[%s3274_s3 + $0x1a6] sm:$0x3] %vm1020_vm7, %v1134_v57  ;;  %1712 = vrot.lane.b32.xlu0 %v3327_v28, %s3015_s4  ;;  %1701 = vrot.lane.b32.xlu1 %v3538_v62, %s3014_s12 }
 0x27c   : > { %v1198_v0 = vpop.permute.xlu0 %1197  ;;  %v1166_v49 = vpop.permute.xlu1 %1165 }
 0x27d   : > { %2355 = vst.msk [vmem:[%s3274_s3 + $0x161] sm:$0x6] %vm1154_vm8, %v1198_v0  ;;  %2348 = vst.msk [vmem:[%s3274_s3 + $0x1df] sm:$0x6] %vm1154_vm8, %v1166_v49 }
 0x27e   : > { %1716 = vrot.lane.b32.xlu0 %v3475_v55, %s3015_s4  ;;  %1714 = vrot.lane.b32.xlu1 %v3405_v43, %s3015_s4 }
 0x280   : > { %v1215_v61 = vpop.permute.xlu0 %1214  ;;  %v1183_v1 = vpop.permute.xlu1 %1182 }
 0x281   : > { %2359 = vst.msk [vmem:[%s3274_s3 + $0x143] sm:$0x6] %vm1154_vm8, %v1215_v61  ;;  %2352 = vst.msk [vmem:[%s3274_s3 + $0x1c1] sm:$0x6] %vm1154_vm8, %v1183_v1 }
 0x282   : > { %1729 = vrot.lane.b32.xlu0 %v3327_v28, %s3016_s20  ;;  %1718 = vrot.lane.b32.xlu1 %v3538_v62, %s3015_s4 }
 0x284   : > { %v1232_v2 = vpop.permute.xlu0 %1231  ;;  %v1200_v3 = vpop.permute.xlu1 %1199 }
 0x285   : > { %2363 = vst.msk [vmem:[%s3274_s3 + $0x163] sm:$0x6] %vm1154_vm8, %v1232_v2  ;;  %2356 = vst.msk [vmem:[%s3274_s3 + $0x1e1] sm:$0x6] %vm1154_vm8, %v1200_v3 }
 0x286   : > { %1733 = vrot.lane.b32.xlu0 %v3475_v55, %s3016_s20  ;;  %1731 = vrot.lane.b32.xlu1 %v3405_v43, %s3016_s20 }
 0x288   : > { %v1249_v4 = vpop.permute.xlu0 %1248  ;;  %v1217_v5 = vpop.permute.xlu1 %1216 }
 0x289   : > { %2367 = vst.msk [vmem:[%s3274_s3 + $0x145] sm:$0x6] %vm1154_vm8, %v1249_v4  ;;  %2360 = vst.msk [vmem:[%s3274_s3 + $0x1c3] sm:$0x6] %vm1154_vm8, %v1217_v5 }
 0x28a   : > { %1746 = vrot.lane.b32.xlu0 %v3327_v28, %s3017_s26  ;;  %1735 = vrot.lane.b32.xlu1 %v3538_v62, %s3016_s20 }
 0x28c   : > { %v1266_v58 = vpop.permute.xlu0 %1265  ;;  %v1234_v6 = vpop.permute.xlu1 %1233 }
 0x28d   : > { %2371 = vst.msk [vmem:[%s3274_s3 + $0x165] sm:$0x6] %vm1154_vm8, %v1266_v58  ;;  %2364 = vst.msk [vmem:[%s3274_s3 + $0x1e3] sm:$0x6] %vm1154_vm8, %v1234_v6 }
 0x28e   : > { %1750 = vrot.lane.b32.xlu0 %v3475_v55, %s3017_s26  ;;  %1748 = vrot.lane.b32.xlu1 %v3405_v43, %s3017_s26 }
 0x290   : > { %v1298_v7 = vpop.permute.xlu0 %1297  ;;  %v1251_v8 = vpop.permute.xlu1 %1250 }
 0x291   : > { %2379 = vst.msk [vmem:[%s3274_s3 + $0x126] sm:$0xc] %vm1288_vm9, %v1298_v7 }
 0x292   : > { %2368 = vst.msk [vmem:[%s3274_s3 + $0x1c5] sm:$0x6] %vm1154_vm8, %v1251_v8  ;;  %1763 = vrot.lane.b32.xlu0 %v3327_v28, %s3018_s27  ;;  %1752 = vrot.lane.b32.xlu1 %v3538_v62, %s3017_s26 }
 0x294   : > { %v1315_v9 = vpop.permute.xlu0 %1314  ;;  %v1268_v10 = vpop.permute.xlu1 %1267 }
 0x295   : > { %2383 = vst.msk [vmem:[%s3274_s3 + $0x108] sm:$0xc] %vm1288_vm9, %v1315_v9 }
 0x296   : > { %2372 = vst.msk [vmem:[%s3274_s3 + $0x1e5] sm:$0x6] %vm1154_vm8, %v1268_v10  ;;  %1767 = vrot.lane.b32.xlu0 %v3475_v55, %s3018_s27  ;;  %1765 = vrot.lane.b32.xlu1 %v3405_v43, %s3018_s27 }
 0x298   : > { %v1332_v11 = vpop.permute.xlu0 %1331  ;;  %v1300_v12 = vpop.permute.xlu1 %1299 }
 0x299   : > { %2387 = vst.msk [vmem:[%s3274_s3 + $0x128] sm:$0xc] %vm1288_vm9, %v1332_v11  ;;  %2380 = vst.msk [vmem:[%s3274_s3 + $0x1a6] sm:$0xc] %vm1288_vm9, %v1300_v12 }
 0x29a   : > { %1780 = vrot.lane.b32.xlu0 %v3327_v28, %s3019_s28  ;;  %1769 = vrot.lane.b32.xlu1 %v3538_v62, %s3018_s27 }
 0x29c   : > { %v1349_v50 = vpop.permute.xlu0 %1348  ;;  %v1317_v13 = vpop.permute.xlu1 %1316 }
 0x29d   : > { %2391 = vst.msk [vmem:[%s3274_s3 + $0x10a] sm:$0xc] %vm1288_vm9, %v1349_v50  ;;  %2384 = vst.msk [vmem:[%s3274_s3 + $0x188] sm:$0xc] %vm1288_vm9, %v1317_v13 }
 0x29e   : > { %1784 = vrot.lane.b32.xlu0 %v3475_v55, %s3019_s28  ;;  %1782 = vrot.lane.b32.xlu1 %v3405_v43, %s3019_s28 }
 0x2a0   : > { %v1366_v14 = vpop.permute.xlu0 %1365  ;;  %v1334_v17 = vpop.permute.xlu1 %1333 }
 0x2a1   : > { %2395 = vst.msk [vmem:[%s3274_s3 + $0x12a] sm:$0xc] %vm1288_vm9, %v1366_v14  ;;  %2388 = vst.msk [vmem:[%s3274_s3 + $0x1a8] sm:$0xc] %vm1288_vm9, %v1334_v17 }
 0x2a2   : > { %1797 = vrot.lane.b32.xlu0 %v3327_v28, %s3020_s5  ;;  %1786 = vrot.lane.b32.xlu1 %v3538_v62, %s3019_s28 }
 0x2a4   : > { %v1383_v18 = vpop.permute.xlu0 %1382  ;;  %v1351_v19 = vpop.permute.xlu1 %1350 }
 0x2a5   : > { %2399 = vst.msk [vmem:[%s3274_s3 + $0x10c] sm:$0xc] %vm1288_vm9, %v1383_v18  ;;  %2392 = vst.msk [vmem:[%s3274_s3 + $0x18a] sm:$0xc] %vm1288_vm9, %v1351_v19 }
 0x2a6   : > { %1801 = vrot.lane.b32.xlu0 %v3475_v55, %s3020_s5  ;;  %1799 = vrot.lane.b32.xlu1 %v3405_v43, %s3020_s5 }
 0x2a8   : > { %v1400_v28 = vpop.permute.xlu0 %1399  ;;  %v1368_v59 = vpop.permute.xlu1 %1367 }
 0x2a9   : > { %2403 = vst.msk [vmem:[%s3274_s3 + $0x12c] sm:$0xc] %vm1288_vm9, %v1400_v28  ;;  %2396 = vst.msk [vmem:[%s3274_s3 + $0x1aa] sm:$0xc] %vm1288_vm9, %v1368_v59 }
 0x2aa   : > { %1829 = vrot.lane.b32.xlu0 %v3343_v30, %s3014_s12  ;;  %1803 = vrot.lane.b32.xlu1 %v3538_v62, %s3020_s5 }
 0x2ac   : > { %v1432_v55 = vpop.permute.xlu0 %1431  ;;  %v1385_v20 = vpop.permute.xlu1 %1384 }
 0x2ad   : > { %2411 = vst.msk [vmem:[%s3274_s3 + $0x165] sm:$0x18] %vm1422_vm10, %v1432_v55 }
 0x2ae   : > { %2400 = vst.msk [vmem:[%s3274_s3 + $0x18c] sm:$0xc] %vm1288_vm9, %v1385_v20  ;;  %1833 = vrot.lane.b32.xlu0 %v3480_v56, %s3014_s12  ;;  %1831 = vrot.lane.b32.xlu1 %v3410_v44, %s3014_s12 }
 0x2b0   : > { %v1449_v43 = vpop.permute.xlu0 %1448  ;;  %v1402_v21 = vpop.permute.xlu1 %1401 }
 0x2b1   : > { %2415 = vst.msk [vmem:[%s3274_s3 + $0x147] sm:$0x18] %vm1422_vm10, %v1449_v43 }
 0x2b2   : > { %2404 = vst.msk [vmem:[%s3274_s3 + $0x1ac] sm:$0xc] %vm1288_vm9, %v1402_v21  ;;  %1846 = vrot.lane.b32.xlu0 %v3343_v30, %s3015_s4  ;;  %1835 = vrot.lane.b32.xlu1 %v3543_v63, %s3014_s12 }
 0x2b4   : > { %v1466_v62 = vpop.permute.xlu0 %1465  ;;  %v1434_v22 = vpop.permute.xlu1 %1433 }
 0x2b5   : > { %2419 = vst.msk [vmem:[%s3274_s3 + $0x167] sm:$0x18] %vm1422_vm10, %v1466_v62  ;;  %2412 = vst.msk [vmem:[%s3274_s3 + $0x1e5] sm:$0x18] %vm1422_vm10, %v1434_v22 }
 0x2b6   : > { %1850 = vrot.lane.b32.xlu0 %v3480_v56, %s3015_s4  ;;  %1848 = vrot.lane.b32.xlu1 %v3410_v44, %s3015_s4 }
 0x2b8   : > { %v1483_v23 = vpop.permute.xlu0 %1482  ;;  %v1451_v24 = vpop.permute.xlu1 %1450 }
 0x2b9   : > { %2423 = vst.msk [vmem:[%s3274_s3 + $0x149] sm:$0x18] %vm1422_vm10, %v1483_v23  ;;  %2416 = vst.msk [vmem:[%s3274_s3 + $0x1c7] sm:$0x18] %vm1422_vm10, %v1451_v24 }
 0x2ba   : > { %1863 = vrot.lane.b32.xlu0 %v3343_v30, %s3016_s20  ;;  %1852 = vrot.lane.b32.xlu1 %v3543_v63, %s3015_s4 }
 0x2bc   : > { %v1500_v26 = vpop.permute.xlu0 %1499  ;;  %v1468_v27 = vpop.permute.xlu1 %1467 }
 0x2bd   : > { %2427 = vst.msk [vmem:[%s3274_s3 + $0x169] sm:$0x18] %vm1422_vm10, %v1500_v26  ;;  %2420 = vst.msk [vmem:[%s3274_s3 + $0x1e7] sm:$0x18] %vm1422_vm10, %v1468_v27 }
 0x2be   : > { %1867 = vrot.lane.b32.xlu0 %v3480_v56, %s3016_s20  ;;  %1865 = vrot.lane.b32.xlu1 %v3410_v44, %s3016_s20 }
 0x2c0   : > { %v1517_v52 = vpop.permute.xlu0 %1516  ;;  %v1485_v31 = vpop.permute.xlu1 %1484 }
 0x2c1   : > { %2431 = vst.msk [vmem:[%s3274_s3 + $0x14b] sm:$0x18] %vm1422_vm10, %v1517_v52  ;;  %2424 = vst.msk [vmem:[%s3274_s3 + $0x1c9] sm:$0x18] %vm1422_vm10, %v1485_v31 }
 0x2c2   : > { %1880 = vrot.lane.b32.xlu0 %v3343_v30, %s3017_s26  ;;  %1869 = vrot.lane.b32.xlu1 %v3543_v63, %s3016_s20 }
 0x2c4   : > { %v1534_v32 = vpop.permute.xlu0 %1533  ;;  %v1502_v33 = vpop.permute.xlu1 %1501 }
 0x2c5   : > { %2435 = vst.msk [vmem:[%s3274_s3 + $0x16b] sm:$0x18] %vm1422_vm10, %v1534_v32  ;;  %2428 = vst.msk [vmem:[%s3274_s3 + $0x1e9] sm:$0x18] %vm1422_vm10, %v1502_v33 }
 0x2c6   : > { %1884 = vrot.lane.b32.xlu0 %v3480_v56, %s3017_s26  ;;  %1882 = vrot.lane.b32.xlu1 %v3410_v44, %s3017_s26 }
 0x2c8   : > { %v1566_v34 = vpop.permute.xlu0 %1565  ;;  %v1519_v35 = vpop.permute.xlu1 %1518 }
 0x2c9   : > { %2443 = vst.msk [vmem:[%s3274_s3 + $0x12c] sm:$0x30] %vm1556_vm13, %v1566_v34 }
 0x2ca   : > { %2432 = vst.msk [vmem:[%s3274_s3 + $0x1cb] sm:$0x18] %vm1422_vm10, %v1519_v35  ;;  %1897 = vrot.lane.b32.xlu0 %v3343_v30, %s3018_s27  ;;  %1886 = vrot.lane.b32.xlu1 %v3543_v63, %s3017_s26 }
 0x2cc   : > { %v1583_v60 = vpop.permute.xlu0 %1582  ;;  %v1536_v36 = vpop.permute.xlu1 %1535 }
 0x2cd   : > { %2447 = vst.msk [vmem:[%s3274_s3 + $0x10e] sm:$0x30] %vm1556_vm13, %v1583_v60 }
 0x2ce   : > { %2436 = vst.msk [vmem:[%s3274_s3 + $0x1eb] sm:$0x18] %vm1422_vm10, %v1536_v36  ;;  %1901 = vrot.lane.b32.xlu0 %v3480_v56, %s3018_s27  ;;  %1899 = vrot.lane.b32.xlu1 %v3410_v44, %s3018_s27 }
 0x2d0   : > { %v1600_v37 = vpop.permute.xlu0 %1599  ;;  %v1568_v38 = vpop.permute.xlu1 %1567 }
 0x2d1   : > { %2451 = vst.msk [vmem:[%s3274_s3 + $0x12e] sm:$0x30] %vm1556_vm13, %v1600_v37  ;;  %2444 = vst.msk [vmem:[%s3274_s3 + $0x1ac] sm:$0x30] %vm1556_vm13, %v1568_v38 }
 0x2d2   : > { %1914 = vrot.lane.b32.xlu0 %v3343_v30, %s3019_s28  ;;  %1903 = vrot.lane.b32.xlu1 %v3543_v63, %s3018_s27 }
 0x2d4   : > { %v1617_v40 = vpop.permute.xlu0 %1616  ;;  %v1585_v41 = vpop.permute.xlu1 %1584 }
 0x2d5   : > { %2455 = vst.msk [vmem:[%s3274_s3 + $0x110] sm:$0x30] %vm1556_vm13, %v1617_v40  ;;  %2448 = vst.msk [vmem:[%s3274_s3 + $0x18e] sm:$0x30] %vm1556_vm13, %v1585_v41 }
 0x2d6   : > { %1918 = vrot.lane.b32.xlu0 %v3480_v56, %s3019_s28  ;;  %1916 = vrot.lane.b32.xlu1 %v3410_v44, %s3019_s28 }
 0x2d8   : > { %v1634_v45 = vpop.permute.xlu0 %1633  ;;  %v1602_v46 = vpop.permute.xlu1 %1601 }
 0x2d9   : > { %2459 = vst.msk [vmem:[%s3274_s3 + $0x130] sm:$0x30] %vm1556_vm13, %v1634_v45  ;;  %2452 = vst.msk [vmem:[%s3274_s3 + $0x1ae] sm:$0x30] %vm1556_vm13, %v1602_v46 }
 0x2da   : > { %1931 = vrot.lane.b32.xlu0 %v3343_v30, %s3020_s5  ;;  %1920 = vrot.lane.b32.xlu1 %v3543_v63, %s3019_s28 }
 0x2dc   : > { %v1651_v53 = vpop.permute.xlu0 %1650  ;;  %v1619_v47 = vpop.permute.xlu1 %1618 }
 0x2dd   : > { %2463 = vst.msk [vmem:[%s3274_s3 + $0x112] sm:$0x30] %vm1556_vm13, %v1651_v53  ;;  %2456 = vst.msk [vmem:[%s3274_s3 + $0x190] sm:$0x30] %vm1556_vm13, %v1619_v47 }
 0x2de   : > { %1935 = vrot.lane.b32.xlu0 %v3480_v56, %s3020_s5  ;;  %1933 = vrot.lane.b32.xlu1 %v3410_v44, %s3020_s5 }
 0x2e0   : > { %v1668_v30 = vpop.permute.xlu0 %1667  ;;  %v1636_v48 = vpop.permute.xlu1 %1635 }
 0x2e1   : > { %2467 = vst.msk [vmem:[%s3274_s3 + $0x132] sm:$0x30] %vm1556_vm13, %v1668_v30  ;;  %2460 = vst.msk [vmem:[%s3274_s3 + $0x1b0] sm:$0x30] %vm1556_vm13, %v1636_v48 }
 0x2e2   : > { %1967 = vrot.lane.b32.xlu0 %v3276_v15, %s3014_s12  ;;  %1937 = vrot.lane.b32.xlu1 %v3543_v63, %s3020_s5 }
 0x2e4   : > { %v1696_v56 = vpop.permute.xlu0 %1695  ;;  %v1653_v57 = vpop.permute.xlu1 %1652 }
 0x2e5   : > { %2473 = vst.msk [vmem:[%s3274_s3 + $0x6b] sm:$0x60] %vm1690_vm14, %v1696_v56 }
 0x2e6   : > { %2464 = vst.msk [vmem:[%s3274_s3 + $0x192] sm:$0x30] %vm1556_vm13, %v1653_v57  ;;  %1971 = vrot.lane.b32.xlu0 %v3301_v25, %s3014_s12  ;;  %1969 = vrot.lane.b32.xlu1 %v3278_v16, %s3014_s12 }
 0x2e8   : > { %v1700_v44 = vpop.permute.xlu0 %1699  ;;  %v1670_v0 = vpop.permute.xlu1 %1669 }
 0x2e9   : > { %2475 = vst.msk [vmem:[%s3274_s3 + $0x16b] sm:$0x60] %vm1690_vm14, %v1700_v44 }
 0x2ea   : > { %2468 = vst.msk [vmem:[%s3274_s3 + $0x1b2] sm:$0x30] %vm1556_vm13, %v1670_v0  ;;  %1975 = vrot.lane.b32.xlu0 %v3369_v39, %s3014_s12  ;;  %1973 = vrot.lane.b32.xlu1 %v3329_v29, %s3014_s12 }
 0x2ec   : > { %v1713_v63 = vpop.permute.xlu0 %1712  ;;  %v1702_v49 = vpop.permute.xlu1 %1701 }
 0x2ed   : > { %2477 = vst.msk [vmem:[%s3274_s3 + $0x4d] sm:$0x60] %vm1690_vm14, %v1713_v63  ;;  %2476 = vst.msk [vmem:[%s3274_s3 + $0x1eb] sm:$0x60] %vm1690_vm14, %v1702_v49 }
 0x2ee   : > { %1979 = vrot.lane.b32.xlu0 %v3439_v51, %s3014_s12  ;;  %1977 = vrot.lane.b32.xlu1 %v3394_v42, %s3014_s12 }
 0x2f0   : > { %v1717_v61 = vpop.permute.xlu0 %1716  ;;  %v1715_v1 = vpop.permute.xlu1 %1714 }
 0x2f1   : > { %2479 = vst.msk [vmem:[%s3274_s3 + $0x14d] sm:$0x60] %vm1690_vm14, %v1717_v61  ;;  %2478 = vst.msk [vmem:[%s3274_s3 + $0xcd] sm:$0x60] %vm1690_vm14, %v1715_v1 }
 0x2f2   : > { %2000 = vrot.lane.b32.xlu0 %v3276_v15, %s3015_s4  ;;  %1981 = vrot.lane.b32.xlu1 %v3464_v54, %s3014_s12 }
 0x2f4   : > { %v1730_v2 = vpop.permute.xlu0 %1729  ;;  %v1719_v3 = vpop.permute.xlu1 %1718 }
 0x2f5   : > { %2481 = vst.msk [vmem:[%s3274_s3 + $0x6d] sm:$0x60] %vm1690_vm14, %v1730_v2  ;;  %2480 = vst.msk [vmem:[%s3274_s3 + $0x1cd] sm:$0x60] %vm1690_vm14, %v1719_v3 }
 0x2f6   : > { %2004 = vrot.lane.b32.xlu0 %v3301_v25, %s3015_s4  ;;  %2002 = vrot.lane.b32.xlu1 %v3278_v16, %s3015_s4 }
 0x2f8   : > { %v1734_v4 = vpop.permute.xlu0 %1733  ;;  %v1732_v5 = vpop.permute.xlu1 %1731 }
 0x2f9   : > { %2483 = vst.msk [vmem:[%s3274_s3 + $0x16d] sm:$0x60] %vm1690_vm14, %v1734_v4  ;;  %2482 = vst.msk [vmem:[%s3274_s3 + $0xed] sm:$0x60] %vm1690_vm14, %v1732_v5 }
 0x2fa   : > { %2008 = vrot.lane.b32.xlu0 %v3369_v39, %s3015_s4  ;;  %2006 = vrot.lane.b32.xlu1 %v3329_v29, %s3015_s4 }
 0x2fc   : > { %v1747_v58 = vpop.permute.xlu0 %1746  ;;  %v1736_v6 = vpop.permute.xlu1 %1735 }
 0x2fd   : > { %2485 = vst.msk [vmem:[%s3274_s3 + $0x4f] sm:$0x60] %vm1690_vm14, %v1747_v58  ;;  %2484 = vst.msk [vmem:[%s3274_s3 + $0x1ed] sm:$0x60] %vm1690_vm14, %v1736_v6 }
 0x2fe   : > { %2012 = vrot.lane.b32.xlu0 %v3439_v51, %s3015_s4  ;;  %2010 = vrot.lane.b32.xlu1 %v3394_v42, %s3015_s4 }
 0x300   : > { %v1751_v7 = vpop.permute.xlu0 %1750  ;;  %v1749_v8 = vpop.permute.xlu1 %1748 }
 0x301   : > { %2487 = vst.msk [vmem:[%s3274_s3 + $0x14f] sm:$0x60] %vm1690_vm14, %v1751_v7  ;;  %2486 = vst.msk [vmem:[%s3274_s3 + $0xcf] sm:$0x60] %vm1690_vm14, %v1749_v8 }
 0x302   : > { %2033 = vrot.lane.b32.xlu0 %v3276_v15, %s3016_s20  ;;  %2014 = vrot.lane.b32.xlu1 %v3464_v54, %s3015_s4 }
 0x304   : > { %v1764_v9 = vpop.permute.xlu0 %1763  ;;  %v1753_v10 = vpop.permute.xlu1 %1752 }
 0x305   : > { %2489 = vst.msk [vmem:[%s3274_s3 + $0x6f] sm:$0x60] %vm1690_vm14, %v1764_v9  ;;  %2488 = vst.msk [vmem:[%s3274_s3 + $0x1cf] sm:$0x60] %vm1690_vm14, %v1753_v10 }
 0x306   : > { %2037 = vrot.lane.b32.xlu0 %v3301_v25, %s3016_s20  ;;  %2035 = vrot.lane.b32.xlu1 %v3278_v16, %s3016_s20 }
 0x308   : > { %v1768_v11 = vpop.permute.xlu0 %1767  ;;  %v1766_v12 = vpop.permute.xlu1 %1765 }
 0x309   : > { %2491 = vst.msk [vmem:[%s3274_s3 + $0x16f] sm:$0x60] %vm1690_vm14, %v1768_v11  ;;  %2490 = vst.msk [vmem:[%s3274_s3 + $0xef] sm:$0x60] %vm1690_vm14, %v1766_v12 }
 0x30a   : > { %2041 = vrot.lane.b32.xlu0 %v3369_v39, %s3016_s20  ;;  %2039 = vrot.lane.b32.xlu1 %v3329_v29, %s3016_s20 }
 0x30c   : > { %v1781_v50 = vpop.permute.xlu0 %1780  ;;  %v1770_v13 = vpop.permute.xlu1 %1769 }
 0x30d   : > { %2493 = vst.msk [vmem:[%s3274_s3 + $0x51] sm:$0x60] %vm1690_vm14, %v1781_v50  ;;  %2492 = vst.msk [vmem:[%s3274_s3 + $0x1ef] sm:$0x60] %vm1690_vm14, %v1770_v13 }
 0x30e   : > { %2045 = vrot.lane.b32.xlu0 %v3439_v51, %s3016_s20  ;;  %2043 = vrot.lane.b32.xlu1 %v3394_v42, %s3016_s20 }
 0x310   : > { %v1785_v14 = vpop.permute.xlu0 %1784  ;;  %v1783_v17 = vpop.permute.xlu1 %1782 }
 0x311   : > { %2495 = vst.msk [vmem:[%s3274_s3 + $0x151] sm:$0x60] %vm1690_vm14, %v1785_v14  ;;  %2494 = vst.msk [vmem:[%s3274_s3 + $0xd1] sm:$0x60] %vm1690_vm14, %v1783_v17 }
 0x312   : > { %2066 = vrot.lane.b32.xlu0 %v3276_v15, %s3017_s26  ;;  %2047 = vrot.lane.b32.xlu1 %v3464_v54, %s3016_s20 }
 0x314   : > { %v1798_v18 = vpop.permute.xlu0 %1797  ;;  %v1787_v19 = vpop.permute.xlu1 %1786 }
 0x315   : > { %2497 = vst.msk [vmem:[%s3274_s3 + $0x71] sm:$0x60] %vm1690_vm14, %v1798_v18  ;;  %2496 = vst.msk [vmem:[%s3274_s3 + $0x1d1] sm:$0x60] %vm1690_vm14, %v1787_v19 }
 0x316   : > { %2070 = vrot.lane.b32.xlu0 %v3301_v25, %s3017_s26  ;;  %2068 = vrot.lane.b32.xlu1 %v3278_v16, %s3017_s26 }
 0x318   : > { %v1802_v28 = vpop.permute.xlu0 %1801  ;;  %v1800_v59 = vpop.permute.xlu1 %1799 }
 0x319   : > { %2499 = vst.msk [vmem:[%s3274_s3 + $0x171] sm:$0x60] %vm1690_vm14, %v1802_v28  ;;  %2498 = vst.msk [vmem:[%s3274_s3 + $0xf1] sm:$0x60] %vm1690_vm14, %v1800_v59 }
 0x31a   : > { %2074 = vrot.lane.b32.xlu0 %v3369_v39, %s3017_s26  ;;  %2072 = vrot.lane.b32.xlu1 %v3329_v29, %s3017_s26 }
 0x31c   : > { %v1830_v55 = vpop.permute.xlu0 %1829  ;;  %v1804_v20 = vpop.permute.xlu1 %1803 }
 0x31d   : > { %2505 = vst.msk [vmem:[%s3274_s3 + $0x32] sm:$0xc0] %vm1824_vm0, %v1830_v55 }
 0x31e   : > { %2500 = vst.msk [vmem:[%s3274_s3 + $0x1f1] sm:$0x60] %vm1690_vm14, %v1804_v20  ;;  %2078 = vrot.lane.b32.xlu0 %v3439_v51, %s3017_s26  ;;  %2076 = vrot.lane.b32.xlu1 %v3394_v42, %s3017_s26 }
 0x320   : > { %v1834_v43 = vpop.permute.xlu0 %1833  ;;  %v1832_v21 = vpop.permute.xlu1 %1831 }
 0x321   : > { %2507 = vst.msk [vmem:[%s3274_s3 + $0x132] sm:$0xc0] %vm1824_vm0, %v1834_v43  ;;  %2506 = vst.msk [vmem:[%s3274_s3 + $0xb2] sm:$0xc0] %vm1824_vm0, %v1832_v21 }
 0x322   : > { %2099 = vrot.lane.b32.xlu0 %v3276_v15, %s3018_s27  ;;  %2080 = vrot.lane.b32.xlu1 %v3464_v54, %s3017_s26 }
 0x324   : > { %v1847_v62 = vpop.permute.xlu0 %1846  ;;  %v1836_v22 = vpop.permute.xlu1 %1835 }
 0x325   : > { %2509 = vst.msk [vmem:[%s3274_s3 + $0x14] sm:$0xc0] %vm1824_vm0, %v1847_v62  ;;  %2508 = vst.msk [vmem:[%s3274_s3 + $0x1b2] sm:$0xc0] %vm1824_vm0, %v1836_v22 }
 0x326   : > { %2103 = vrot.lane.b32.xlu0 %v3301_v25, %s3018_s27  ;;  %2101 = vrot.lane.b32.xlu1 %v3278_v16, %s3018_s27 }
 0x328   : > { %v1851_v23 = vpop.permute.xlu0 %1850  ;;  %v1849_v24 = vpop.permute.xlu1 %1848 }
 0x329   : > { %2511 = vst.msk [vmem:[%s3274_s3 + $0x114] sm:$0xc0] %vm1824_vm0, %v1851_v23  ;;  %2510 = vst.msk [vmem:[%s3274_s3 + $0x94] sm:$0xc0] %vm1824_vm0, %v1849_v24 }
 0x32a   : > { %2107 = vrot.lane.b32.xlu0 %v3369_v39, %s3018_s27  ;;  %2105 = vrot.lane.b32.xlu1 %v3329_v29, %s3018_s27 }
 0x32c   : > { %v1864_v26 = vpop.permute.xlu0 %1863  ;;  %v1853_v27 = vpop.permute.xlu1 %1852 }
 0x32d   : > { %2513 = vst.msk [vmem:[%s3274_s3 + $0x34] sm:$0xc0] %vm1824_vm0, %v1864_v26  ;;  %2512 = vst.msk [vmem:[%s3274_s3 + $0x194] sm:$0xc0] %vm1824_vm0, %v1853_v27 }
 0x32e   : > { %2111 = vrot.lane.b32.xlu0 %v3439_v51, %s3018_s27  ;;  %2109 = vrot.lane.b32.xlu1 %v3394_v42, %s3018_s27 }
 0x330   : > { %v1868_v52 = vpop.permute.xlu0 %1867  ;;  %v1866_v31 = vpop.permute.xlu1 %1865 }
 0x331   : > { %2515 = vst.msk [vmem:[%s3274_s3 + $0x134] sm:$0xc0] %vm1824_vm0, %v1868_v52  ;;  %2514 = vst.msk [vmem:[%s3274_s3 + $0xb4] sm:$0xc0] %vm1824_vm0, %v1866_v31 }
 0x332   : > { %2132 = vrot.lane.b32.xlu0 %v3276_v15, %s3019_s28  ;;  %2113 = vrot.lane.b32.xlu1 %v3464_v54, %s3018_s27 }
 0x334   : > { %v1881_v32 = vpop.permute.xlu0 %1880  ;;  %v1870_v33 = vpop.permute.xlu1 %1869 }
 0x335   : > { %2517 = vst.msk [vmem:[%s3274_s3 + $0x16] sm:$0xc0] %vm1824_vm0, %v1881_v32  ;;  %2516 = vst.msk [vmem:[%s3274_s3 + $0x1b4] sm:$0xc0] %vm1824_vm0, %v1870_v33 }
 0x336   : > { %2136 = vrot.lane.b32.xlu0 %v3301_v25, %s3019_s28  ;;  %2134 = vrot.lane.b32.xlu1 %v3278_v16, %s3019_s28 }
 0x338   : > { %v1885_v34 = vpop.permute.xlu0 %1884  ;;  %v1883_v35 = vpop.permute.xlu1 %1882 }
 0x339   : > { %2519 = vst.msk [vmem:[%s3274_s3 + $0x116] sm:$0xc0] %vm1824_vm0, %v1885_v34  ;;  %2518 = vst.msk [vmem:[%s3274_s3 + $0x96] sm:$0xc0] %vm1824_vm0, %v1883_v35 }
 0x33a   : > { %2140 = vrot.lane.b32.xlu0 %v3369_v39, %s3019_s28  ;;  %2138 = vrot.lane.b32.xlu1 %v3329_v29, %s3019_s28 }
 0x33c   : > { %v1898_v60 = vpop.permute.xlu0 %1897  ;;  %v1887_v36 = vpop.permute.xlu1 %1886 }
 0x33d   : > { %2521 = vst.msk [vmem:[%s3274_s3 + $0x36] sm:$0xc0] %vm1824_vm0, %v1898_v60  ;;  %2520 = vst.msk [vmem:[%s3274_s3 + $0x196] sm:$0xc0] %vm1824_vm0, %v1887_v36 }
 0x33e   : > { %2144 = vrot.lane.b32.xlu0 %v3439_v51, %s3019_s28  ;;  %2142 = vrot.lane.b32.xlu1 %v3394_v42, %s3019_s28 }
 0x340   : > { %v1902_v37 = vpop.permute.xlu0 %1901  ;;  %v1900_v38 = vpop.permute.xlu1 %1899 }
 0x341   : > { %2523 = vst.msk [vmem:[%s3274_s3 + $0x136] sm:$0xc0] %vm1824_vm0, %v1902_v37  ;;  %2522 = vst.msk [vmem:[%s3274_s3 + $0xb6] sm:$0xc0] %vm1824_vm0, %v1900_v38 }
 0x342   : > { %2165 = vrot.lane.b32.xlu0 %v3276_v15, %s3020_s5  ;;  %2146 = vrot.lane.b32.xlu1 %v3464_v54, %s3019_s28 }
 0x344   : > { %v1915_v40 = vpop.permute.xlu0 %1914  ;;  %v1904_v41 = vpop.permute.xlu1 %1903 }
 0x345   : > { %2525 = vst.msk [vmem:[%s3274_s3 + $0x18] sm:$0xc0] %vm1824_vm0, %v1915_v40  ;;  %2524 = vst.msk [vmem:[%s3274_s3 + $0x1b6] sm:$0xc0] %vm1824_vm0, %v1904_v41 }
 0x346   : > { %2169 = vrot.lane.b32.xlu0 %v3301_v25, %s3020_s5  ;;  %2167 = vrot.lane.b32.xlu1 %v3278_v16, %s3020_s5 }
 0x348   : > { %v1919_v15 = vpop.permute.xlu0 %1918  ;;  %v1917_v45 = vpop.permute.xlu1 %1916 }
 0x349   : > { %2527 = vst.msk [vmem:[%s3274_s3 + $0x118] sm:$0xc0] %vm1824_vm0, %v1919_v15  ;;  %2526 = vst.msk [vmem:[%s3274_s3 + $0x98] sm:$0xc0] %vm1824_vm0, %v1917_v45 }
 0x34a   : > { %2173 = vrot.lane.b32.xlu0 %v3369_v39, %s3020_s5  ;;  %2171 = vrot.lane.b32.xlu1 %v3329_v29, %s3020_s5 }
 0x34c   : > { %v1932_v25 = vpop.permute.xlu0 %1931  ;;  %v1921_v46 = vpop.permute.xlu1 %1920 }
 0x34d   : > { %2529 = vst.msk [vmem:[%s3274_s3 + $0x38] sm:$0xc0] %vm1824_vm0, %v1932_v25  ;;  %2528 = vst.msk [vmem:[%s3274_s3 + $0x198] sm:$0xc0] %vm1824_vm0, %v1921_v46 }
 0x34e   : > { %2177 = vrot.lane.b32.xlu0 %v3439_v51, %s3020_s5  ;;  %2175 = vrot.lane.b32.xlu1 %v3394_v42, %s3020_s5 }
 0x350   : > { %v1936_v16 = vpop.permute.xlu0 %1935  ;;  %v1934_v39 = vpop.permute.xlu1 %1933 }
 0x351   : > { %2531 = vst.msk [vmem:[%s3274_s3 + $0x138] sm:$0xc0] %vm1824_vm0, %v1936_v16  ;;  %2530 = vst.msk [vmem:[%s3274_s3 + $0xb8] sm:$0xc0] %vm1824_vm0, %v1934_v39 }
 0x352   : > { %2179 = vrot.lane.b32.xlu1 %v3464_v54, %s3020_s5 }
 0x354   : > { %v1968_v29 = vpop.permute.xlu0 %1967  ;;  %v1938_v53 = vpop.permute.xlu1 %1937 }
 0x355   : > { %2541 = vst.msk [vmem:[%s3274_s3 + $0x71] sm:$0x80] %vm1957_vm2, %v1968_v29 }
 0x356   : > { %2532 = vst.msk [vmem:[%s3274_s3 + $0x1b8] sm:$0xc0] %vm1824_vm0, %v1938_v53 }
 0x358   : > { %v1972_v42 = vpop.permute.xlu0 %1971  ;;  %v1970_v51 = vpop.permute.xlu1 %1969 }
 0x359   : > { %2543 = vst.msk [vmem:[%s3274_s3 + $0xf1] sm:$0x80] %vm1957_vm2, %v1972_v42 }
 0x35a   : > { %2542 = vst.msk [vmem:[%s3274_s3 + $0x79] sm:$0x1] %vm1959_vm1, %v1970_v51 }
 0x35c   : > { %v1976_v47 = vpop.permute.xlu0 %1975  ;;  %v1974_v30 = vpop.permute.xlu1 %1973 }
 0x35d   : > { %2545 = vst.msk [vmem:[%s3274_s3 + $0x171] sm:$0x80] %vm1957_vm2, %v1976_v47 }
 0x35e   : > { %2544 = vst.msk [vmem:[%s3274_s3 + $0xf9] sm:$0x1] %vm1959_vm1, %v1974_v30 }
 0x360   : > { %v1980_v54 = vpop.permute.xlu0 %1979  ;;  %v1978_v48 = vpop.permute.xlu1 %1977 }
 0x361   : > { %2547 = vst.msk [vmem:[%s3274_s3 + $0x1f1] sm:$0x80] %vm1957_vm2, %v1980_v54 }
 0x362   : > { %2546 = vst.msk [vmem:[%s3274_s3 + $0x179] sm:$0x1] %vm1959_vm1, %v1978_v48 }
 0x364   : > { %v2001_v56 = vpop.permute.xlu0 %2000  ;;  %v1982_v57 = vpop.permute.xlu1 %1981 }
 0x365   : > { %2549 = vst.msk [vmem:[%s3274_s3 + $0x53] sm:$0x80] %vm1957_vm2, %v2001_v56 }
 0x366   : > { %2548 = vst.msk [vmem:[%s3274_s3 + $0x1f9] sm:$0x1] %vm1959_vm1, %v1982_v57 }
 0x368   : > { %v2005_v44 = vpop.permute.xlu0 %2004  ;;  %v2003_v0 = vpop.permute.xlu1 %2002 }
 0x369   : > { %2551 = vst.msk [vmem:[%s3274_s3 + $0xd3] sm:$0x80] %vm1957_vm2, %v2005_v44 }
 0x36a   : > { %2550 = vst.msk [vmem:[%s3274_s3 + $0x5b] sm:$0x1] %vm1959_vm1, %v2003_v0 }
 0x36c   : > { %v2009_v63 = vpop.permute.xlu0 %2008  ;;  %v2007_v49 = vpop.permute.xlu1 %2006 }
 0x36d   : > { %2553 = vst.msk [vmem:[%s3274_s3 + $0x153] sm:$0x80] %vm1957_vm2, %v2009_v63 }
 0x36e   : > { %2552 = vst.msk [vmem:[%s3274_s3 + $0xdb] sm:$0x1] %vm1959_vm1, %v2007_v49 }
 0x370   : > { %v2013_v61 = vpop.permute.xlu0 %2012  ;;  %v2011_v1 = vpop.permute.xlu1 %2010 }
 0x371   : > { %2555 = vst.msk [vmem:[%s3274_s3 + $0x1d3] sm:$0x80] %vm1957_vm2, %v2013_v61 }
 0x372   : > { %2554 = vst.msk [vmem:[%s3274_s3 + $0x15b] sm:$0x1] %vm1959_vm1, %v2011_v1 }
 0x374   : > { %v2034_v2 = vpop.permute.xlu0 %2033  ;;  %v2015_v3 = vpop.permute.xlu1 %2014 }
 0x375   : > { %2557 = vst.msk [vmem:[%s3274_s3 + $0x73] sm:$0x80] %vm1957_vm2, %v2034_v2 }
 0x376   : > { %2556 = vst.msk [vmem:[%s3274_s3 + $0x1db] sm:$0x1] %vm1959_vm1, %v2015_v3 }
 0x378   : > { %v2038_v4 = vpop.permute.xlu0 %2037  ;;  %v2036_v5 = vpop.permute.xlu1 %2035 }
 0x379   : > { %2559 = vst.msk [vmem:[%s3274_s3 + $0xf3] sm:$0x80] %vm1957_vm2, %v2038_v4 }
 0x37a   : > { %2558 = vst.msk [vmem:[%s3274_s3 + $0x7b] sm:$0x1] %vm1959_vm1, %v2036_v5 }
 0x37c   : > { %v2042_v58 = vpop.permute.xlu0 %2041  ;;  %v2040_v6 = vpop.permute.xlu1 %2039 }
 0x37d   : > { %2561 = vst.msk [vmem:[%s3274_s3 + $0x173] sm:$0x80] %vm1957_vm2, %v2042_v58 }
 0x37e   : > { %2560 = vst.msk [vmem:[%s3274_s3 + $0xfb] sm:$0x1] %vm1959_vm1, %v2040_v6 }
 0x380   : > { %v2046_v7 = vpop.permute.xlu0 %2045  ;;  %v2044_v8 = vpop.permute.xlu1 %2043 }
 0x381   : > { %2563 = vst.msk [vmem:[%s3274_s3 + $0x1f3] sm:$0x80] %vm1957_vm2, %v2046_v7 }
 0x382   : > { %2562 = vst.msk [vmem:[%s3274_s3 + $0x17b] sm:$0x1] %vm1959_vm1, %v2044_v8 }
 0x384   : > { %v2067_v9 = vpop.permute.xlu0 %2066  ;;  %v2048_v10 = vpop.permute.xlu1 %2047 }
 0x385   : > { %2565 = vst.msk [vmem:[%s3274_s3 + $0x55] sm:$0x80] %vm1957_vm2, %v2067_v9 }
 0x386   : > { %2564 = vst.msk [vmem:[%s3274_s3 + $0x1fb] sm:$0x1] %vm1959_vm1, %v2048_v10 }
 0x388   : > { %v2071_v11 = vpop.permute.xlu0 %2070  ;;  %v2069_v12 = vpop.permute.xlu1 %2068 }
 0x389   : > { %2567 = vst.msk [vmem:[%s3274_s3 + $0xd5] sm:$0x80] %vm1957_vm2, %v2071_v11 }
 0x38a   : > { %2566 = vst.msk [vmem:[%s3274_s3 + $0x5d] sm:$0x1] %vm1959_vm1, %v2069_v12 }
 0x38c   : > { %v2075_v50 = vpop.permute.xlu0 %2074  ;;  %v2073_v13 = vpop.permute.xlu1 %2072 }
 0x38d   : > { %2569 = vst.msk [vmem:[%s3274_s3 + $0x155] sm:$0x80] %vm1957_vm2, %v2075_v50 }
 0x38e   : > { %2568 = vst.msk [vmem:[%s3274_s3 + $0xdd] sm:$0x1] %vm1959_vm1, %v2073_v13 }
 0x390   : > { %v2079_v14 = vpop.permute.xlu0 %2078  ;;  %v2077_v17 = vpop.permute.xlu1 %2076 }
 0x391   : > { %2571 = vst.msk [vmem:[%s3274_s3 + $0x1d5] sm:$0x80] %vm1957_vm2, %v2079_v14 }
 0x392   : > { %2570 = vst.msk [vmem:[%s3274_s3 + $0x15d] sm:$0x1] %vm1959_vm1, %v2077_v17 }
 0x394   : > { %v2100_v18 = vpop.permute.xlu0 %2099  ;;  %v2081_v19 = vpop.permute.xlu1 %2080 }
 0x395   : > { %2573 = vst.msk [vmem:[%s3274_s3 + $0x75] sm:$0x80] %vm1957_vm2, %v2100_v18 }
 0x396   : > { %2572 = vst.msk [vmem:[%s3274_s3 + $0x1dd] sm:$0x1] %vm1959_vm1, %v2081_v19 }
 0x398   : > { %v2104_v28 = vpop.permute.xlu0 %2103  ;;  %v2102_v59 = vpop.permute.xlu1 %2101 }
 0x399   : > { %2575 = vst.msk [vmem:[%s3274_s3 + $0xf5] sm:$0x80] %vm1957_vm2, %v2104_v28 }
 0x39a   : > { %2574 = vst.msk [vmem:[%s3274_s3 + $0x7d] sm:$0x1] %vm1959_vm1, %v2102_v59 }
 0x39c   : > { %v2108_v55 = vpop.permute.xlu0 %2107  ;;  %v2106_v20 = vpop.permute.xlu1 %2105 }
 0x39d   : > { %2577 = vst.msk [vmem:[%s3274_s3 + $0x175] sm:$0x80] %vm1957_vm2, %v2108_v55 }
 0x39e   : > { %2576 = vst.msk [vmem:[%s3274_s3 + $0xfd] sm:$0x1] %vm1959_vm1, %v2106_v20 }
 0x3a0   : > { %v2112_v43 = vpop.permute.xlu0 %2111  ;;  %v2110_v21 = vpop.permute.xlu1 %2109 }
 0x3a1   : > { %2579 = vst.msk [vmem:[%s3274_s3 + $0x1f5] sm:$0x80] %vm1957_vm2, %v2112_v43 }
 0x3a2   : > { %2578 = vst.msk [vmem:[%s3274_s3 + $0x17d] sm:$0x1] %vm1959_vm1, %v2110_v21 }
 0x3a4   : > { %v2133_v62 = vpop.permute.xlu0 %2132  ;;  %v2114_v22 = vpop.permute.xlu1 %2113 }
 0x3a5   : > { %2581 = vst.msk [vmem:[%s3274_s3 + $0x57] sm:$0x80] %vm1957_vm2, %v2133_v62 }
 0x3a6   : > { %2580 = vst.msk [vmem:[%s3274_s3 + $0x1fd] sm:$0x1] %vm1959_vm1, %v2114_v22 }
 0x3a8   : > { %v2137_v23 = vpop.permute.xlu0 %2136  ;;  %v2135_v24 = vpop.permute.xlu1 %2134 }
 0x3a9   : > { %2583 = vst.msk [vmem:[%s3274_s3 + $0xd7] sm:$0x80] %vm1957_vm2, %v2137_v23 }
 0x3aa   : > { %2582 = vst.msk [vmem:[%s3274_s3 + $0x5f] sm:$0x1] %vm1959_vm1, %v2135_v24 }
 0x3ac   : > { %v2141_v26 = vpop.permute.xlu0 %2140  ;;  %v2139_v27 = vpop.permute.xlu1 %2138 }
 0x3ad   : > { %2585 = vst.msk [vmem:[%s3274_s3 + $0x157] sm:$0x80] %vm1957_vm2, %v2141_v26 }
 0x3ae   : > { %2584 = vst.msk [vmem:[%s3274_s3 + $0xdf] sm:$0x1] %vm1959_vm1, %v2139_v27 }
 0x3b0   : > { %v2145_v52 = vpop.permute.xlu0 %2144  ;;  %v2143_v31 = vpop.permute.xlu1 %2142 }
 0x3b1   : > { %2587 = vst.msk [vmem:[%s3274_s3 + $0x1d7] sm:$0x80] %vm1957_vm2, %v2145_v52 }
 0x3b2   : > { %2586 = vst.msk [vmem:[%s3274_s3 + $0x15f] sm:$0x1] %vm1959_vm1, %v2143_v31 }
 0x3b4   : > { %v2166_v32 = vpop.permute.xlu0 %2165  ;;  %v2147_v33 = vpop.permute.xlu1 %2146 }
 0x3b5   : > { %2589 = vst.msk [vmem:[%s3274_s3 + $0x77] sm:$0x80] %vm1957_vm2, %v2166_v32 }
 0x3b6   : > { %2588 = vst.msk [vmem:[%s3274_s3 + $0x1df] sm:$0x1] %vm1959_vm1, %v2147_v33 }
 0x3b8   : > { %v2170_v34 = vpop.permute.xlu0 %2169  ;;  %v2168_v35 = vpop.permute.xlu1 %2167 }
 0x3b9   : > { %2591 = vst.msk [vmem:[%s3274_s3 + $0xf7] sm:$0x80] %vm1957_vm2, %v2170_v34 }
 0x3ba   : > { %2590 = vst.msk [vmem:[%s3274_s3 + $0x7f] sm:$0x1] %vm1959_vm1, %v2168_v35 }
 0x3bc   : > { %v2174_v60 = vpop.permute.xlu0 %2173  ;;  %v2172_v36 = vpop.permute.xlu1 %2171 }
 0x3bd   : > { %2593 = vst.msk [vmem:[%s3274_s3 + $0x177] sm:$0x80] %vm1957_vm2, %v2174_v60 }
 0x3be   : > { %2592 = vst.msk [vmem:[%s3274_s3 + $0xff] sm:$0x1] %vm1959_vm1, %v2172_v36 }
 0x3c0   : > { %v2178_v37 = vpop.permute.xlu0 %2177  ;;  %v2176_v38 = vpop.permute.xlu1 %2175 }
 0x3c1   : > { %2595 = vst.msk [vmem:[%s3274_s3 + $0x1f7] sm:$0x80] %vm1957_vm2, %v2178_v37 }
 0x3c2   : > { %2594 = vst.msk [vmem:[%s3274_s3 + $0x17f] sm:$0x1] %vm1959_vm1, %v2176_v38 }
 0x3c4   : > { %v2180_v40 = vpop.permute.xlu1 %2179 }
 0x3c5   : > { %2596 = vst.msk [vmem:[%s3274_s3 + $0x1ff] sm:$0x1] %vm1959_vm1, %v2180_v40 }
 0x3c6 PF: > { %s16_s14 = sadd.s32 1, %s3008_s14   ;;  %s4581_s9 = smov %s2992_s10 }
 0x3c7   : > { %p13_p1 = scmp.ge.s32.totalorder %s16_s14, 4   ;;  %s4582_s10 = smov %s2996_s11 }
 0x3c8   : > { %s4583_s11 = smov %s3122_s21  ;;  %s4584_s12 = smov %s3004_s13 }
 0x3c9   : > { %s4585_s13 = smov %s4587_s22  ;;  %15 = sbr.rel (!%p13_p1) target bundleno = 5 (0x5), region = 135 }
 0x3d0   :  { %2225 = vsyncpa [#allocation3], 1 }
 0x3d1   :  { %2227 = vsyncpa [#allocation3 + $0x1], 1 }
 0x3d2   :  { %2228 = vsyncpa [#allocation5], 1 }

</bundles_post_ra>
